<compile_context>
chip_gen: v6e
topology: v6e:2x2x1
jax: 0.10.0
libtpu: 0.0.40
codegen_flags: <defaults>
</compile_context>

<pallas_src>
import functools

import jax
import jax.numpy as jnp
from jax import lax
from jax.experimental import pallas as pl
from jax.experimental.pallas import tpu as pltpu


def _bilstm_kernel(x_ref,        # [T*B, D]   bf16, time-major, batch padded
                   wih_ref,      # [D, 8H]    bf16, concat(fwd, bwd) input weights
                   b_ref,        # [1, 8H]    f32, concat(fwd, bwd) of (b_ih + b_hh)
                   whh_f_ref,    # [H, 4H]    bf16
                   whh_b_ref,    # [H, 4H]    bf16
                   wout_ref,     # [2H, O]    bf16
                   bout_ref,     # [1, O]     f32
                   y_ref,        # [T*B, O]   f32 output
                   pre_ref,      # scratch [T*B, 8H] bf16: precomputed input proj
                   h_ref,        # scratch [T*B, 2H] bf16: fwd in 0:H, bwd in H:2H
                   *, T, B, H, unroll):
    f32 = jnp.float32
    bf16 = jnp.bfloat16

    # ---- 1) hoisted input projection: one large MXU matmul (bf16 in, f32 acc)
    pre_ref[...] = (
        jnp.dot(x_ref[...], wih_ref[...], preferred_element_type=f32)
        + b_ref[...]).astype(bf16)

    def gate_update(gates, c):
        # PyTorch gate order (i, f, g, o); H is a multiple of 128 so every
        # slice is lane-aligned.  All elementwise math stays f32.
        i = jax.nn.sigmoid(gates[:, 0 * H:1 * H])
        f = jax.nn.sigmoid(gates[:, 1 * H:2 * H])
        g = jnp.tanh(gates[:, 2 * H:3 * H])
        o = jax.nn.sigmoid(gates[:, 3 * H:4 * H])
        c_new = f * c + i * g
        h_new = o * jnp.tanh(c_new)
        return h_new, c_new

    # ---- 2) fused fwd/bwd recurrence: two independent latency chains --------
    def body(i, carry):
        hf, cf, hb, cb = carry  # all f32 [B, H]

        # forward direction at t = i
        row_f = pl.multiple_of(i * B, B)
        gates_f = (pre_ref[pl.ds(row_f, B), 0:4 * H].astype(f32)
                   + jnp.dot(hf.astype(bf16), whh_f_ref[...],
                             preferred_element_type=f32))
        hf, cf = gate_update(gates_f, cf)
        h_ref[pl.ds(row_f, B), 0:H] = hf.astype(bf16)

        # backward direction at t = T - 1 - i
        row_b = pl.multiple_of((T - 1 - i) * B, B)
        gates_b = (pre_ref[pl.ds(row_b, B), 4 * H:8 * H].astype(f32)
                   + jnp.dot(hb.astype(bf16), whh_b_ref[...],
                             preferred_element_type=f32))
        hb, cb = gate_update(gates_b, cb)
        h_ref[pl.ds(row_b, B), H:2 * H] = hb.astype(bf16)

        return (hf, cf, hb, cb)

    z = jnp.zeros((B, H), f32)
    lax.fori_loop(0, T, body, (z, z, z, z), unroll=min(unroll, T))

    # ---- 3) output projection: one MXU call + lane-dense store --------------
    y_ref[...] = (
        jnp.dot(h_ref[...], wout_ref[...], preferred_element_type=f32)
        + bout_ref[...]).astype(y_ref.dtype)


# ----------------------------- wrapper ------------------------------------
def _round_up(n, m):
    return ((n + m - 1) // m) * m


def _pad_to(w, rows, cols):
    return jnp.pad(w, ((0, rows - w.shape[0]), (0, cols - w.shape[1])))


def _pad_gate_cols(w, H, Hp):
    """[rows, 4H] -> [rows, 4Hp]; gate block k placed at columns k*Hp..k*Hp+H."""
    out = jnp.zeros((w.shape[0], 4 * Hp), w.dtype)
    for k in range(4):
        out = out.at[:, k * Hp:k * Hp + H].set(w[:, k * H:(k + 1) * H])
    return out


def prepare_bilstm_params(params, input_size):
    """One-time weight padding / concatenation / bf16 casting (hoisted out of
    the per-call path).  Padding is exact: padded units have zero weight+bias
    and stay zero through the recurrence."""
    H = params["whh_f"].shape[0]
    O = params["wout"].shape[1]
    Dp = _round_up(input_size, 128)
    Hp = _round_up(H, 128)
    Op = _round_up(O, 128)

    wih_f = _pad_to(_pad_gate_cols(params["wih_f"], H, Hp), Dp, 4 * Hp)
    wih_b = _pad_to(_pad_gate_cols(params["wih_b"], H, Hp), Dp, 4 * Hp)
    whh_f = _pad_to(_pad_gate_cols(params["whh_f"], H, Hp), Hp, 4 * Hp)
    whh_b = _pad_to(_pad_gate_cols(params["whh_b"], H, Hp), Hp, 4 * Hp)
    b_f = _pad_gate_cols(params["b_f"], H, Hp)
    b_b = _pad_gate_cols(params["b_b"], H, Hp)

    wout = params["wout"]
    wout_p = jnp.zeros((2 * Hp, Op), jnp.float32)
    wout_p = wout_p.at[:H, :O].set(wout[:H])
    wout_p = wout_p.at[Hp:Hp + H, :O].set(wout[H:2 * H])

    bf16 = jnp.bfloat16
    return {
        "wih_cat": jnp.concatenate([wih_f, wih_b], axis=1).astype(bf16),  # [Dp,8Hp]
        "b_cat": jnp.concatenate([b_f, b_b], axis=1),                     # [1,8Hp] f32
        "whh_f": whh_f.astype(bf16),                                      # [Hp,4Hp]
        "whh_b": whh_b.astype(bf16),                                      # [Hp,4Hp]
        "wout": wout_p.astype(bf16),                                      # [2Hp,Op]
        "bout": _pad_to(params["bout"], 1, Op),                           # [1,Op] f32
        "H": H, "O": O, "Dp": Dp, "Hp": Hp, "Op": Op,
    }


@functools.partial(jax.jit, static_argnames=("O",))
def _bilstm_call(x, wih_cat, b_cat, whh_f, whh_b, wout_p, bout_p, *, O):
    B, T, D = x.shape
    Dp = wih_cat.shape[0]
    Hp = whh_f.shape[0]
    Op = wout_p.shape[1]
    # Batch padded to a multiple of 16 so bf16 (16,128)-tiled row slices in the
    # recurrence are sublane-aligned.
    Bp = _round_up(B, 16)

    # input: batch_first -> time-major, bf16, padded and flattened to [T*Bp, Dp]
    x_tm = jnp.transpose(x, (1, 0, 2)).astype(jnp.bfloat16)
    x_p = jnp.pad(x_tm, ((0, 0), (0, Bp - B), (0, Dp - D)))
    x_flat = x_p.reshape(T * Bp, Dp)

    # Everything (inputs + output + scratch) is VMEM-resident; size the limit
    # from the actual byte footprint plus headroom, never below the footprint.
    def nb(a):
        return a.size * a.dtype.itemsize
    footprint = (nb(x_flat) + nb(wih_cat) + nb(b_cat) + nb(whh_f) + nb(whh_b)
                 + nb(wout_p) + nb(bout_p)
                 + T * Bp * Op * 4                    # f32 output
                 + T * Bp * 8 * Hp * 2                # bf16 pregates scratch
                 + T * Bp * 2 * Hp * 2)               # bf16 hidden scratch
    vmem_limit = max(int(footprint * 1.25), 32 * 2 ** 20)
    vmem_limit = min(vmem_limit, 100 * 2 ** 20)
    vmem_limit = max(vmem_limit, footprint)

    unroll = 8 if Hp <= 128 else 4
    kernel = functools.partial(_bilstm_kernel, T=T, B=Bp, H=Hp, unroll=unroll)
    vmem = pl.BlockSpec(memory_space=pltpu.MemorySpace.VMEM)
    y_flat = pl.pallas_call(
        kernel,
        out_shape=jax.ShapeDtypeStruct((T * Bp, Op), jnp.float32),
        in_specs=[vmem] * 7,
        out_specs=vmem,
        scratch_shapes=[
            pltpu.VMEM((T * Bp, 8 * Hp), jnp.bfloat16),   # pregates
            pltpu.VMEM((T * Bp, 2 * Hp), jnp.bfloat16),   # fwd|bwd hidden states
        ],
        compiler_params=pltpu.CompilerParams(vmem_limit_bytes=vmem_limit),
    )(x_flat, wih_cat, b_cat, whh_f, whh_b, wout_p, bout_p)

    # Padded batch rows carry the broadcast bias (garbage h/c/y); they are
    # sliced off here and never feed any real row.
    y = y_flat.reshape(T, Bp, Op)[:, :B, :O]
    return jnp.transpose(y, (1, 0, 2))  # back to [B, T, O]


def bidirectional_lstm_pallas(x, prep):
    """x: [B, T, input_size] float32 -> [B, T, output_size] float32."""
    return _bilstm_call(x, prep["wih_cat"], prep["b_cat"], prep["whh_f"],
                        prep["whh_b"], prep["wout"], prep["bout"], O=prep["O"])


# ----------------------------- reference (pure JAX) -----------------------------
def _lstm_dir_ref(x, wih, whh, b):
    B, T, D = x.shape
    H = whh.shape[0]

    def step(carry, x_t):
        h, c = carry
        gates = x_t @ wih + h @ whh + b
        i, f, g, o = jnp.split(gates, 4, axis=-1)
        i = jax.nn.sigmoid(i)
        f = jax.nn.sigmoid(f)
        g = jnp.tanh(g)
        o = jax.nn.sigmoid(o)
        c = f * c + i * g
        h = o * jnp.tanh(c)
        return (h, c), h

    h0 = jnp.zeros((B, H), jnp.float32)
    c0 = jnp.zeros((B, H), jnp.float32)
    _, hs = lax.scan(step, (h0, c0), jnp.swapaxes(x, 0, 1))
    return jnp.swapaxes(hs, 0, 1)


def bidirectional_lstm_ref(x, params):
    hf = _lstm_dir_ref(x, params["wih_f"], params["whh_f"], params["b_f"])
    hb = _lstm_dir_ref(x[:, ::-1, :], params["wih_b"], params["whh_b"],
                       params["b_b"])[:, ::-1, :]
    rec = jnp.concatenate([hf, hb], axis=-1)
    return rec @ params["wout"] + params["bout"]


# ----------------------------- deterministic params -----------------------------
def make_params(key, input_size, hidden_size, output_size):
    H = hidden_size
    k_lstm = 1.0 / jnp.sqrt(jnp.float32(H))
    k_lin = 1.0 / jnp.sqrt(jnp.float32(2 * H))
    keys = jax.random.split(key, 12)

    def u(k, shape, bound):
        return jax.random.uniform(k, shape, jnp.float32, -bound, bound)

    # PyTorch: weight_ih [4H, D], weight_hh [4H, H]; stored transposed here.
    params = {
        "wih_f": u(keys[0], (input_size, 4 * H), k_lstm),
        "whh_f": u(keys[1], (H, 4 * H), k_lstm),
        "b_f": (u(keys[2], (1, 4 * H), k_lstm) + u(keys[3], (1, 4 * H), k_lstm)),
        "wih_b": u(keys[4], (input_size, 4 * H), k_lstm),
        "whh_b": u(keys[5], (H, 4 * H), k_lstm),
        "b_b": (u(keys[6], (1, 4 * H), k_lstm) + u(keys[7], (1, 4 * H), k_lstm)),
        # nn.Linear(2H, O): weight [O, 2H]; stored transposed [2H, O].
        "wout": u(keys[8], (2 * H, output_size), k_lin),
        "bout": u(keys[9], (1, output_size), k_lin),
    }
    return params


if __name__ == "__main__":
    B, T = 2, 8
    input_size, hidden_size, output_size = 32, 32, 32

    key = jax.random.PRNGKey(0)
    kx, kp = jax.random.split(key)
    x = jax.random.normal(kx, (B, T, input_size), jnp.float32)
    params = make_params(kp, input_size, hidden_size, output_size)

    prep = prepare_bilstm_params(params, input_size)   # one-time weight prep
    y = bidirectional_lstm_pallas(x, prep)
    y = jax.block_until_ready(y)

    y_ref = jax.block_until_ready(bidirectional_lstm_ref(x, params))
    assert y.shape == (B, T, output_size)
    # Tolerance widened per bf16-operand recommendation (gate math / cell state
    # remain f32; only matmul operands and the pregate/hidden buffers are bf16).
    assert jnp.allclose(y, y_ref, atol=2e-2, rtol=2e-2), (
        float(jnp.max(jnp.abs(y - y_ref))))

    print("KERNEL_OK")
</pallas_src>

<mosaic_0001>
module attributes {stable_mosaic.version = 11 : i64} {
  func.func @_bilstm_kernel(%arg0: memref<128x128xbf16, #tpu.memory_space<vmem>>, %arg1: memref<128x1024xbf16, #tpu.memory_space<vmem>>, %arg2: memref<1x1024xf32, #tpu.memory_space<vmem>>, %arg3: memref<128x512xbf16, #tpu.memory_space<vmem>>, %arg4: memref<128x512xbf16, #tpu.memory_space<vmem>>, %arg5: memref<256x128xbf16, #tpu.memory_space<vmem>>, %arg6: memref<1x128xf32, #tpu.memory_space<vmem>>, %arg7: memref<128x128xf32, #tpu.memory_space<vmem>>, %arg8: memref<128x1024xbf16, #tpu.memory_space<vmem>>, %arg9: memref<128x256xbf16, #tpu.memory_space<vmem>>) attributes {dimension_semantics = [], scalar_prefetch = 0 : i64, scratch_operands = 2 : i64, tpu.core_type = #tpu.core_type<tc>} {
    %c0 = arith.constant 0 : index
    %c0_0 = arith.constant 0 : index
    %0 = vector.load %arg0[%c0, %c0_0] : memref<128x128xbf16, #tpu.memory_space<vmem>>, vector<128x128xbf16>
    %c0_1 = arith.constant 0 : index
    %c0_2 = arith.constant 0 : index
    %1 = vector.load %arg1[%c0_1, %c0_2] : memref<128x1024xbf16, #tpu.memory_space<vmem>>, vector<128x1024xbf16>
    %cst = arith.constant dense<0.000000e+00> : vector<128x1024xf32>
    %2 = tpu.matmul %0, %1, %cst {dimension_numbers = #tpu.dot_dimension_numbers<[1], [0], [0], [1], [0, 0, 1, 1], [], []>} : vector<128x128xbf16>, vector<128x1024xbf16>, vector<128x1024xf32> -> vector<128x1024xf32>
    %c0_3 = arith.constant 0 : index
    %c0_4 = arith.constant 0 : index
    %3 = vector.load %arg2[%c0_3, %c0_4] : memref<1x1024xf32, #tpu.memory_space<vmem>>, vector<1x1024xf32>
    %4 = vector.broadcast %3 : vector<1x1024xf32> to vector<128x1024xf32>
    %5 = arith.addf %2, %4 : vector<128x1024xf32>
    %6 = arith.truncf %5 : vector<128x1024xf32> to vector<128x1024xbf16>
    %c0_5 = arith.constant 0 : index
    %c0_6 = arith.constant 0 : index
    %7 = vector.load %arg8[%c0_5, %c0_6] : memref<128x1024xbf16, #tpu.memory_space<vmem>>, vector<128x1024xbf16>
    tpu.vector_store %arg8[%c0_5, %c0_6], %6 {strides = array<i32>} : memref<128x1024xbf16, #tpu.memory_space<vmem>>, vector<128x1024xbf16>,
    %cst_7 = arith.constant 0.000000e+00 : f32
    %8 = vector.broadcast %cst_7 : f32 to vector<16x128xf32>
    %c0_i32 = arith.constant 0 : i32
    %c16_i32 = arith.constant 16 : i32
    %9 = arith.muli %c0_i32, %c16_i32 : i32
    %10 = tpu.assume_multiple %9, 16 : i32
    %11 = arith.index_cast %10 : i32 to index
    %c0_8 = arith.constant 0 : index
    %12 = vector.load %arg8[%11, %c0_8] : memref<128x1024xbf16, #tpu.memory_space<vmem>>, vector<16x512xbf16>
    %13 = arith.extf %12 : vector<16x512xbf16> to vector<16x512xf32>
    %14 = arith.truncf %8 : vector<16x128xf32> to vector<16x128xbf16>
    %c0_9 = arith.constant 0 : index
    %c0_10 = arith.constant 0 : index
    %15 = vector.load %arg3[%c0_9, %c0_10] : memref<128x512xbf16, #tpu.memory_space<vmem>>, vector<128x512xbf16>
    %cst_11 = arith.constant dense<0.000000e+00> : vector<16x512xf32>
    %16 = tpu.matmul %14, %15, %cst_11 {dimension_numbers = #tpu.dot_dimension_numbers<[1], [0], [0], [1], [0, 0, 1, 1], [], []>} : vector<16x128xbf16>, vector<128x512xbf16>, vector<16x512xf32> -> vector<16x512xf32>
    %17 = arith.addf %13, %16 : vector<16x512xf32>
    %18 = vector.extract_strided_slice %17 {offsets = [0, 0], sizes = [16, 128], strides = [1, 1]} : vector<16x512xf32> to vector<16x128xf32>
    %19 = arith.negf %18 : vector<16x128xf32>
    %20 = math.exp %19 : vector<16x128xf32>
    %cst_12 = arith.constant 1.000000e+00 : f32
    %21 = vector.broadcast %cst_12 : f32 to vector<16x128xf32>
    %22 = arith.addf %21, %20 : vector<16x128xf32>
    %23 = arith.divf %21, %22 : vector<16x128xf32>
    %24 = vector.extract_strided_slice %17 {offsets = [0, 128], sizes = [16, 128], strides = [1, 1]} : vector<16x512xf32> to vector<16x128xf32>
    %25 = arith.negf %24 : vector<16x128xf32>
    %26 = math.exp %25 : vector<16x128xf32>
    %cst_13 = arith.constant 1.000000e+00 : f32
    %27 = vector.broadcast %cst_13 : f32 to vector<16x128xf32>
    %28 = arith.addf %27, %26 : vector<16x128xf32>
    %29 = arith.divf %27, %28 : vector<16x128xf32>
    %30 = vector.extract_strided_slice %17 {offsets = [0, 256], sizes = [16, 128], strides = [1, 1]} : vector<16x512xf32> to vector<16x128xf32>
    %31 = math.tanh %30 : vector<16x128xf32>
    %32 = vector.extract_strided_slice %17 {offsets = [0, 384], sizes = [16, 128], strides = [1, 1]} : vector<16x512xf32> to vector<16x128xf32>
    %33 = arith.negf %32 : vector<16x128xf32>
    %34 = math.exp %33 : vector<16x128xf32>
    %cst_14 = arith.constant 1.000000e+00 : f32
    %35 = vector.broadcast %cst_14 : f32 to vector<16x128xf32>
    %36 = arith.addf %35, %34 : vector<16x128xf32>
    %37 = arith.divf %35, %36 : vector<16x128xf32>
    %38 = arith.mulf %29, %8 : vector<16x128xf32>
    %39 = arith.mulf %23, %31 : vector<16x128xf32>
    %40 = arith.addf %38, %39 : vector<16x128xf32>
    %41 = math.tanh %40 : vector<16x128xf32>
    %42 = arith.mulf %37, %41 : vector<16x128xf32>
    %43 = arith.truncf %42 : vector<16x128xf32> to vector<16x128xbf16>
    %44 = arith.index_cast %10 : i32 to index
    %c0_15 = arith.constant 0 : index
    %45 = vector.load %arg9[%44, %c0_15] : memref<128x256xbf16, #tpu.memory_space<vmem>>, vector<16x128xbf16>
    tpu.vector_store %arg9[%44, %c0_15], %43 {strides = array<i32>} : memref<128x256xbf16, #tpu.memory_space<vmem>>, vector<16x128xbf16>,
    %c7_i32 = arith.constant 7 : i32
    %46 = arith.subi %c7_i32, %c0_i32 : i32
    %c16_i32_16 = arith.constant 16 : i32
    %47 = arith.muli %46, %c16_i32_16 : i32
    %48 = tpu.assume_multiple %47, 16 : i32
    %49 = arith.index_cast %48 : i32 to index
    %c512 = arith.constant 512 : index
    %50 = vector.load %arg8[%49, %c512] : memref<128x1024xbf16, #tpu.memory_space<vmem>>, vector<16x512xbf16>
    %51 = arith.extf %50 : vector<16x512xbf16> to vector<16x512xf32>
    %52 = arith.truncf %8 : vector<16x128xf32> to vector<16x128xbf16>
    %c0_17 = arith.constant 0 : index
    %c0_18 = arith.constant 0 : index
    %53 = vector.load %arg4[%c0_17, %c0_18] : memref<128x512xbf16, #tpu.memory_space<vmem>>, vector<128x512xbf16>
    %cst_19 = arith.constant dense<0.000000e+00> : vector<16x512xf32>
    %54 = tpu.matmul %52, %53, %cst_19 {dimension_numbers = #tpu.dot_dimension_numbers<[1], [0], [0], [1], [0, 0, 1, 1], [], []>} : vector<16x128xbf16>, vector<128x512xbf16>, vector<16x512xf32> -> vector<16x512xf32>
    %55 = arith.addf %51, %54 : vector<16x512xf32>
    %56 = vector.extract_strided_slice %55 {offsets = [0, 0], sizes = [16, 128], strides = [1, 1]} : vector<16x512xf32> to vector<16x128xf32>
    %57 = arith.negf %56 : vector<16x128xf32>
    %58 = math.exp %57 : vector<16x128xf32>
    %cst_20 = arith.constant 1.000000e+00 : f32
    %59 = vector.broadcast %cst_20 : f32 to vector<16x128xf32>
    %60 = arith.addf %59, %58 : vector<16x128xf32>
    %61 = arith.divf %59, %60 : vector<16x128xf32>
    %62 = vector.extract_strided_slice %55 {offsets = [0, 128], sizes = [16, 128], strides = [1, 1]} : vector<16x512xf32> to vector<16x128xf32>
    %63 = arith.negf %62 : vector<16x128xf32>
    %64 = math.exp %63 : vector<16x128xf32>
    %cst_21 = arith.constant 1.000000e+00 : f32
    %65 = vector.broadcast %cst_21 : f32 to vector<16x128xf32>
    %66 = arith.addf %65, %64 : vector<16x128xf32>
    %67 = arith.divf %65, %66 : vector<16x128xf32>
    %68 = vector.extract_strided_slice %55 {offsets = [0, 256], sizes = [16, 128], strides = [1, 1]} : vector<16x512xf32> to vector<16x128xf32>
    %69 = math.tanh %68 : vector<16x128xf32>
    %70 = vector.extract_strided_slice %55 {offsets = [0, 384], sizes = [16, 128], strides = [1, 1]} : vector<16x512xf32> to vector<16x128xf32>
    %71 = arith.negf %70 : vector<16x128xf32>
    %72 = math.exp %71 : vector<16x128xf32>
    %cst_22 = arith.constant 1.000000e+00 : f32
    %73 = vector.broadcast %cst_22 : f32 to vector<16x128xf32>
    %74 = arith.addf %73, %72 : vector<16x128xf32>
    %75 = arith.divf %73, %74 : vector<16x128xf32>
    %76 = arith.mulf %67, %8 : vector<16x128xf32>
    %77 = arith.mulf %61, %69 : vector<16x128xf32>
    %78 = arith.addf %76, %77 : vector<16x128xf32>
    %79 = math.tanh %78 : vector<16x128xf32>
    %80 = arith.mulf %75, %79 : vector<16x128xf32>
    %81 = arith.truncf %80 : vector<16x128xf32> to vector<16x128xbf16>
    %82 = arith.index_cast %48 : i32 to index
    %c128 = arith.constant 128 : index
    %83 = vector.load %arg9[%82, %c128] : memref<128x256xbf16, #tpu.memory_space<vmem>>, vector<16x128xbf16>
    tpu.vector_store %arg9[%82, %c128], %81 {strides = array<i32>} : memref<128x256xbf16, #tpu.memory_space<vmem>>, vector<16x128xbf16>,
    %c1_i32 = arith.constant 1 : i32
    %c16_i32_23 = arith.constant 16 : i32
    %84 = arith.muli %c1_i32, %c16_i32_23 : i32
    %85 = tpu.assume_multiple %84, 16 : i32
    %86 = arith.index_cast %85 : i32 to index
    %c0_24 = arith.constant 0 : index
    %87 = vector.load %arg8[%86, %c0_24] : memref<128x1024xbf16, #tpu.memory_space<vmem>>, vector<16x512xbf16>
    %88 = arith.extf %87 : vector<16x512xbf16> to vector<16x512xf32>
    %89 = arith.truncf %42 : vector<16x128xf32> to vector<16x128xbf16>
    %c0_25 = arith.constant 0 : index
    %c0_26 = arith.constant 0 : index
    %90 = vector.load %arg3[%c0_25, %c0_26] : memref<128x512xbf16, #tpu.memory_space<vmem>>, vector<128x512xbf16>
    %cst_27 = arith.constant dense<0.000000e+00> : vector<16x512xf32>
    %91 = tpu.matmul %89, %90, %cst_27 {dimension_numbers = #tpu.dot_dimension_numbers<[1], [0], [0], [1], [0, 0, 1, 1], [], []>} : vector<16x128xbf16>, vector<128x512xbf16>, vector<16x512xf32> -> vector<16x512xf32>
    %92 = arith.addf %88, %91 : vector<16x512xf32>
    %93 = vector.extract_strided_slice %92 {offsets = [0, 0], sizes = [16, 128], strides = [1, 1]} : vector<16x512xf32> to vector<16x128xf32>
    %94 = arith.negf %93 : vector<16x128xf32>
    %95 = math.exp %94 : vector<16x128xf32>
    %cst_28 = arith.constant 1.000000e+00 : f32
    %96 = vector.broadcast %cst_28 : f32 to vector<16x128xf32>
    %97 = arith.addf %96, %95 : vector<16x128xf32>
    %98 = arith.divf %96, %97 : vector<16x128xf32>
    %99 = vector.extract_strided_slice %92 {offsets = [0, 128], sizes = [16, 128], strides = [1, 1]} : vector<16x512xf32> to vector<16x128xf32>
    %100 = arith.negf %99 : vector<16x128xf32>
    %101 = math.exp %100 : vector<16x128xf32>
    %cst_29 = arith.constant 1.000000e+00 : f32
    %102 = vector.broadcast %cst_29 : f32 to vector<16x128xf32>
    %103 = arith.addf %102, %101 : vector<16x128xf32>
    %104 = arith.divf %102, %103 : vector<16x128xf32>
    %105 = vector.extract_strided_slice %92 {offsets = [0, 256], sizes = [16, 128], strides = [1, 1]} : vector<16x512xf32> to vector<16x128xf32>
    %106 = math.tanh %105 : vector<16x128xf32>
    %107 = vector.extract_strided_slice %92 {offsets = [0, 384], sizes = [16, 128], strides = [1, 1]} : vector<16x512xf32> to vector<16x128xf32>
    %108 = arith.negf %107 : vector<16x128xf32>
    %109 = math.exp %108 : vector<16x128xf32>
    %cst_30 = arith.constant 1.000000e+00 : f32
    %110 = vector.broadcast %cst_30 : f32 to vector<16x128xf32>
    %111 = arith.addf %110, %109 : vector<16x128xf32>
    %112 = arith.divf %110, %111 : vector<16x128xf32>
    %113 = arith.mulf %104, %40 : vector<16x128xf32>
    %114 = arith.mulf %98, %106 : vector<16x128xf32>
    %115 = arith.addf %113, %114 : vector<16x128xf32>
    %116 = math.tanh %115 : vector<16x128xf32>
    %117 = arith.mulf %112, %116 : vector<16x128xf32>
    %118 = arith.truncf %117 : vector<16x128xf32> to vector<16x128xbf16>
    %119 = arith.index_cast %85 : i32 to index
    %c0_31 = arith.constant 0 : index
    %120 = vector.load %arg9[%119, %c0_31] : memref<128x256xbf16, #tpu.memory_space<vmem>>, vector<16x128xbf16>
    tpu.vector_store %arg9[%119, %c0_31], %118 {strides = array<i32>} : memref<128x256xbf16, #tpu.memory_space<vmem>>, vector<16x128xbf16>,
    %c7_i32_32 = arith.constant 7 : i32
    %121 = arith.subi %c7_i32_32, %c1_i32 : i32
    %c16_i32_33 = arith.constant 16 : i32
    %122 = arith.muli %121, %c16_i32_33 : i32
    %123 = tpu.assume_multiple %122, 16 : i32
    %124 = arith.index_cast %123 : i32 to index
    %c512_34 = arith.constant 512 : index
    %125 = vector.load %arg8[%124, %c512_34] : memref<128x1024xbf16, #tpu.memory_space<vmem>>, vector<16x512xbf16>
    %126 = arith.extf %125 : vector<16x512xbf16> to vector<16x512xf32>
    %127 = arith.truncf %80 : vector<16x128xf32> to vector<16x128xbf16>
    %c0_35 = arith.constant 0 : index
    %c0_36 = arith.constant 0 : index
    %128 = vector.load %arg4[%c0_35, %c0_36] : memref<128x512xbf16, #tpu.memory_space<vmem>>, vector<128x512xbf16>
    %cst_37 = arith.constant dense<0.000000e+00> : vector<16x512xf32>
    %129 = tpu.matmul %127, %128, %cst_37 {dimension_numbers = #tpu.dot_dimension_numbers<[1], [0], [0], [1], [0, 0, 1, 1], [], []>} : vector<16x128xbf16>, vector<128x512xbf16>, vector<16x512xf32> -> vector<16x512xf32>
    %130 = arith.addf %126, %129 : vector<16x512xf32>
    %131 = vector.extract_strided_slice %130 {offsets = [0, 0], sizes = [16, 128], strides = [1, 1]} : vector<16x512xf32> to vector<16x128xf32>
    %132 = arith.negf %131 : vector<16x128xf32>
    %133 = math.exp %132 : vector<16x128xf32>
    %cst_38 = arith.constant 1.000000e+00 : f32
    %134 = vector.broadcast %cst_38 : f32 to vector<16x128xf32>
    %135 = arith.addf %134, %133 : vector<16x128xf32>
    %136 = arith.divf %134, %135 : vector<16x128xf32>
    %137 = vector.extract_strided_slice %130 {offsets = [0, 128], sizes = [16, 128], strides = [1, 1]} : vector<16x512xf32> to vector<16x128xf32>
    %138 = arith.negf %137 : vector<16x128xf32>
    %139 = math.exp %138 : vector<16x128xf32>
    %cst_39 = arith.constant 1.000000e+00 : f32
    %140 = vector.broadcast %cst_39 : f32 to vector<16x128xf32>
    %141 = arith.addf %140, %139 : vector<16x128xf32>
    %142 = arith.divf %140, %141 : vector<16x128xf32>
    %143 = vector.extract_strided_slice %130 {offsets = [0, 256], sizes = [16, 128], strides = [1, 1]} : vector<16x512xf32> to vector<16x128xf32>
    %144 = math.tanh %143 : vector<16x128xf32>
    %145 = vector.extract_strided_slice %130 {offsets = [0, 384], sizes = [16, 128], strides = [1, 1]} : vector<16x512xf32> to vector<16x128xf32>
    %146 = arith.negf %145 : vector<16x128xf32>
    %147 = math.exp %146 : vector<16x128xf32>
    %cst_40 = arith.constant 1.000000e+00 : f32
    %148 = vector.broadcast %cst_40 : f32 to vector<16x128xf32>
    %149 = arith.addf %148, %147 : vector<16x128xf32>
    %150 = arith.divf %148, %149 : vector<16x128xf32>
    %151 = arith.mulf %142, %78 : vector<16x128xf32>
    %152 = arith.mulf %136, %144 : vector<16x128xf32>
    %153 = arith.addf %151, %152 : vector<16x128xf32>
    %154 = math.tanh %153 : vector<16x128xf32>
    %155 = arith.mulf %150, %154 : vector<16x128xf32>
    %156 = arith.truncf %155 : vector<16x128xf32> to vector<16x128xbf16>
    %157 = arith.index_cast %123 : i32 to index
    %c128_41 = arith.constant 128 : index
    %158 = vector.load %arg9[%157, %c128_41] : memref<128x256xbf16, #tpu.memory_space<vmem>>, vector<16x128xbf16>
    tpu.vector_store %arg9[%157, %c128_41], %156 {strides = array<i32>} : memref<128x256xbf16, #tpu.memory_space<vmem>>, vector<16x128xbf16>,
    %c2_i32 = arith.constant 2 : i32
    %c16_i32_42 = arith.constant 16 : i32
    %159 = arith.muli %c2_i32, %c16_i32_42 : i32
    %160 = tpu.assume_multiple %159, 16 : i32
    %161 = arith.index_cast %160 : i32 to index
    %c0_43 = arith.constant 0 : index
    %162 = vector.load %arg8[%161, %c0_43] : memref<128x1024xbf16, #tpu.memory_space<vmem>>, vector<16x512xbf16>
    %163 = arith.extf %162 : vector<16x512xbf16> to vector<16x512xf32>
    %164 = arith.truncf %117 : vector<16x128xf32> to vector<16x128xbf16>
    %c0_44 = arith.constant 0 : index
    %c0_45 = arith.constant 0 : index
    %165 = vector.load %arg3[%c0_44, %c0_45] : memref<128x512xbf16, #tpu.memory_space<vmem>>, vector<128x512xbf16>
    %cst_46 = arith.constant dense<0.000000e+00> : vector<16x512xf32>
    %166 = tpu.matmul %164, %165, %cst_46 {dimension_numbers = #tpu.dot_dimension_numbers<[1], [0], [0], [1], [0, 0, 1, 1], [], []>} : vector<16x128xbf16>, vector<128x512xbf16>, vector<16x512xf32> -> vector<16x512xf32>
    %167 = arith.addf %163, %166 : vector<16x512xf32>
    %168 = vector.extract_strided_slice %167 {offsets = [0, 0], sizes = [16, 128], strides = [1, 1]} : vector<16x512xf32> to vector<16x128xf32>
    %169 = arith.negf %168 : vector<16x128xf32>
    %170 = math.exp %169 : vector<16x128xf32>
    %cst_47 = arith.constant 1.000000e+00 : f32
    %171 = vector.broadcast %cst_47 : f32 to vector<16x128xf32>
    %172 = arith.addf %171, %170 : vector<16x128xf32>
    %173 = arith.divf %171, %172 : vector<16x128xf32>
    %174 = vector.extract_strided_slice %167 {offsets = [0, 128], sizes = [16, 128], strides = [1, 1]} : vector<16x512xf32> to vector<16x128xf32>
    %175 = arith.negf %174 : vector<16x128xf32>
    %176 = math.exp %175 : vector<16x128xf32>
    %cst_48 = arith.constant 1.000000e+00 : f32
    %177 = vector.broadcast %cst_48 : f32 to vector<16x128xf32>
    %178 = arith.addf %177, %176 : vector<16x128xf32>
    %179 = arith.divf %177, %178 : vector<16x128xf32>
    %180 = vector.extract_strided_slice %167 {offsets = [0, 256], sizes = [16, 128], strides = [1, 1]} : vector<16x512xf32> to vector<16x128xf32>
    %181 = math.tanh %180 : vector<16x128xf32>
    %182 = vector.extract_strided_slice %167 {offsets = [0, 384], sizes = [16, 128], strides = [1, 1]} : vector<16x512xf32> to vector<16x128xf32>
    %183 = arith.negf %182 : vector<16x128xf32>
    %184 = math.exp %183 : vector<16x128xf32>
    %cst_49 = arith.constant 1.000000e+00 : f32
    %185 = vector.broadcast %cst_49 : f32 to vector<16x128xf32>
    %186 = arith.addf %185, %184 : vector<16x128xf32>
    %187 = arith.divf %185, %186 : vector<16x128xf32>
    %188 = arith.mulf %179, %115 : vector<16x128xf32>
    %189 = arith.mulf %173, %181 : vector<16x128xf32>
    %190 = arith.addf %188, %189 : vector<16x128xf32>
    %191 = math.tanh %190 : vector<16x128xf32>
    %192 = arith.mulf %187, %191 : vector<16x128xf32>
    %193 = arith.truncf %192 : vector<16x128xf32> to vector<16x128xbf16>
    %194 = arith.index_cast %160 : i32 to index
    %c0_50 = arith.constant 0 : index
    %195 = vector.load %arg9[%194, %c0_50] : memref<128x256xbf16, #tpu.memory_space<vmem>>, vector<16x128xbf16>
    tpu.vector_store %arg9[%194, %c0_50], %193 {strides = array<i32>} : memref<128x256xbf16, #tpu.memory_space<vmem>>, vector<16x128xbf16>,
    %c7_i32_51 = arith.constant 7 : i32
    %196 = arith.subi %c7_i32_51, %c2_i32 : i32
    %c16_i32_52 = arith.constant 16 : i32
    %197 = arith.muli %196, %c16_i32_52 : i32
    %198 = tpu.assume_multiple %197, 16 : i32
    %199 = arith.index_cast %198 : i32 to index
    %c512_53 = arith.constant 512 : index
    %200 = vector.load %arg8[%199, %c512_53] : memref<128x1024xbf16, #tpu.memory_space<vmem>>, vector<16x512xbf16>
    %201 = arith.extf %200 : vector<16x512xbf16> to vector<16x512xf32>
    %202 = arith.truncf %155 : vector<16x128xf32> to vector<16x128xbf16>
    %c0_54 = arith.constant 0 : index
    %c0_55 = arith.constant 0 : index
    %203 = vector.load %arg4[%c0_54, %c0_55] : memref<128x512xbf16, #tpu.memory_space<vmem>>, vector<128x512xbf16>
    %cst_56 = arith.constant dense<0.000000e+00> : vector<16x512xf32>
    %204 = tpu.matmul %202, %203, %cst_56 {dimension_numbers = #tpu.dot_dimension_numbers<[1], [0], [0], [1], [0, 0, 1, 1], [], []>} : vector<16x128xbf16>, vector<128x512xbf16>, vector<16x512xf32> -> vector<16x512xf32>
    %205 = arith.addf %201, %204 : vector<16x512xf32>
    %206 = vector.extract_strided_slice %205 {offsets = [0, 0], sizes = [16, 128], strides = [1, 1]} : vector<16x512xf32> to vector<16x128xf32>
    %207 = arith.negf %206 : vector<16x128xf32>
    %208 = math.exp %207 : vector<16x128xf32>
    %cst_57 = arith.constant 1.000000e+00 : f32
    %209 = vector.broadcast %cst_57 : f32 to vector<16x128xf32>
    %210 = arith.addf %209, %208 : vector<16x128xf32>
    %211 = arith.divf %209, %210 : vector<16x128xf32>
    %212 = vector.extract_strided_slice %205 {offsets = [0, 128], sizes = [16, 128], strides = [1, 1]} : vector<16x512xf32> to vector<16x128xf32>
    %213 = arith.negf %212 : vector<16x128xf32>
    %214 = math.exp %213 : vector<16x128xf32>
    %cst_58 = arith.constant 1.000000e+00 : f32
    %215 = vector.broadcast %cst_58 : f32 to vector<16x128xf32>
    %216 = arith.addf %215, %214 : vector<16x128xf32>
    %217 = arith.divf %215, %216 : vector<16x128xf32>
    %218 = vector.extract_strided_slice %205 {offsets = [0, 256], sizes = [16, 128], strides = [1, 1]} : vector<16x512xf32> to vector<16x128xf32>
    %219 = math.tanh %218 : vector<16x128xf32>
    %220 = vector.extract_strided_slice %205 {offsets = [0, 384], sizes = [16, 128], strides = [1, 1]} : vector<16x512xf32> to vector<16x128xf32>
    %221 = arith.negf %220 : vector<16x128xf32>
    %222 = math.exp %221 : vector<16x128xf32>
    %cst_59 = arith.constant 1.000000e+00 : f32
    %223 = vector.broadcast %cst_59 : f32 to vector<16x128xf32>
    %224 = arith.addf %223, %222 : vector<16x128xf32>
    %225 = arith.divf %223, %224 : vector<16x128xf32>
    %226 = arith.mulf %217, %153 : vector<16x128xf32>
    %227 = arith.mulf %211, %219 : vector<16x128xf32>
    %228 = arith.addf %226, %227 : vector<16x128xf32>
    %229 = math.tanh %228 : vector<16x128xf32>
    %230 = arith.mulf %225, %229 : vector<16x128xf32>
    %231 = arith.truncf %230 : vector<16x128xf32> to vector<16x128xbf16>
    %232 = arith.index_cast %198 : i32 to index
    %c128_60 = arith.constant 128 : index
    %233 = vector.load %arg9[%232, %c128_60] : memref<128x256xbf16, #tpu.memory_space<vmem>>, vector<16x128xbf16>
    tpu.vector_store %arg9[%232, %c128_60], %231 {strides = array<i32>} : memref<128x256xbf16, #tpu.memory_space<vmem>>, vector<16x128xbf16>,
    %c3_i32 = arith.constant 3 : i32
    %c16_i32_61 = arith.constant 16 : i32
    %234 = arith.muli %c3_i32, %c16_i32_61 : i32
    %235 = tpu.assume_multiple %234, 16 : i32
    %236 = arith.index_cast %235 : i32 to index
    %c0_62 = arith.constant 0 : index
    %237 = vector.load %arg8[%236, %c0_62] : memref<128x1024xbf16, #tpu.memory_space<vmem>>, vector<16x512xbf16>
    %238 = arith.extf %237 : vector<16x512xbf16> to vector<16x512xf32>
    %239 = arith.truncf %192 : vector<16x128xf32> to vector<16x128xbf16>
    %c0_63 = arith.constant 0 : index
    %c0_64 = arith.constant 0 : index
    %240 = vector.load %arg3[%c0_63, %c0_64] : memref<128x512xbf16, #tpu.memory_space<vmem>>, vector<128x512xbf16>
    %cst_65 = arith.constant dense<0.000000e+00> : vector<16x512xf32>
    %241 = tpu.matmul %239, %240, %cst_65 {dimension_numbers = #tpu.dot_dimension_numbers<[1], [0], [0], [1], [0, 0, 1, 1], [], []>} : vector<16x128xbf16>, vector<128x512xbf16>, vector<16x512xf32> -> vector<16x512xf32>
    %242 = arith.addf %238, %241 : vector<16x512xf32>
    %243 = vector.extract_strided_slice %242 {offsets = [0, 0], sizes = [16, 128], strides = [1, 1]} : vector<16x512xf32> to vector<16x128xf32>
    %244 = arith.negf %243 : vector<16x128xf32>
    %245 = math.exp %244 : vector<16x128xf32>
    %cst_66 = arith.constant 1.000000e+00 : f32
    %246 = vector.broadcast %cst_66 : f32 to vector<16x128xf32>
    %247 = arith.addf %246, %245 : vector<16x128xf32>
    %248 = arith.divf %246, %247 : vector<16x128xf32>
    %249 = vector.extract_strided_slice %242 {offsets = [0, 128], sizes = [16, 128], strides = [1, 1]} : vector<16x512xf32> to vector<16x128xf32>
    %250 = arith.negf %249 : vector<16x128xf32>
    %251 = math.exp %250 : vector<16x128xf32>
    %cst_67 = arith.constant 1.000000e+00 : f32
    %252 = vector.broadcast %cst_67 : f32 to vector<16x128xf32>
    %253 = arith.addf %252, %251 : vector<16x128xf32>
    %254 = arith.divf %252, %253 : vector<16x128xf32>
    %255 = vector.extract_strided_slice %242 {offsets = [0, 256], sizes = [16, 128], strides = [1, 1]} : vector<16x512xf32> to vector<16x128xf32>
    %256 = math.tanh %255 : vector<16x128xf32>
    %257 = vector.extract_strided_slice %242 {offsets = [0, 384], sizes = [16, 128], strides = [1, 1]} : vector<16x512xf32> to vector<16x128xf32>
    %258 = arith.negf %257 : vector<16x128xf32>
    %259 = math.exp %258 : vector<16x128xf32>
    %cst_68 = arith.constant 1.000000e+00 : f32
    %260 = vector.broadcast %cst_68 : f32 to vector<16x128xf32>
    %261 = arith.addf %260, %259 : vector<16x128xf32>
    %262 = arith.divf %260, %261 : vector<16x128xf32>
    %263 = arith.mulf %254, %190 : vector<16x128xf32>
    %264 = arith.mulf %248, %256 : vector<16x128xf32>
    %265 = arith.addf %263, %264 : vector<16x128xf32>
    %266 = math.tanh %265 : vector<16x128xf32>
    %267 = arith.mulf %262, %266 : vector<16x128xf32>
    %268 = arith.truncf %267 : vector<16x128xf32> to vector<16x128xbf16>
    %269 = arith.index_cast %235 : i32 to index
    %c0_69 = arith.constant 0 : index
    %270 = vector.load %arg9[%269, %c0_69] : memref<128x256xbf16, #tpu.memory_space<vmem>>, vector<16x128xbf16>
    tpu.vector_store %arg9[%269, %c0_69], %268 {strides = array<i32>} : memref<128x256xbf16, #tpu.memory_space<vmem>>, vector<16x128xbf16>,
    %c7_i32_70 = arith.constant 7 : i32
    %271 = arith.subi %c7_i32_70, %c3_i32 : i32
    %c16_i32_71 = arith.constant 16 : i32
    %272 = arith.muli %271, %c16_i32_71 : i32
    %273 = tpu.assume_multiple %272, 16 : i32
    %274 = arith.index_cast %273 : i32 to index
    %c512_72 = arith.constant 512 : index
    %275 = vector.load %arg8[%274, %c512_72] : memref<128x1024xbf16, #tpu.memory_space<vmem>>, vector<16x512xbf16>
    %276 = arith.extf %275 : vector<16x512xbf16> to vector<16x512xf32>
    %277 = arith.truncf %230 : vector<16x128xf32> to vector<16x128xbf16>
    %c0_73 = arith.constant 0 : index
    %c0_74 = arith.constant 0 : index
    %278 = vector.load %arg4[%c0_73, %c0_74] : memref<128x512xbf16, #tpu.memory_space<vmem>>, vector<128x512xbf16>
    %cst_75 = arith.constant dense<0.000000e+00> : vector<16x512xf32>
    %279 = tpu.matmul %277, %278, %cst_75 {dimension_numbers = #tpu.dot_dimension_numbers<[1], [0], [0], [1], [0, 0, 1, 1], [], []>} : vector<16x128xbf16>, vector<128x512xbf16>, vector<16x512xf32> -> vector<16x512xf32>
    %280 = arith.addf %276, %279 : vector<16x512xf32>
    %281 = vector.extract_strided_slice %280 {offsets = [0, 0], sizes = [16, 128], strides = [1, 1]} : vector<16x512xf32> to vector<16x128xf32>
    %282 = arith.negf %281 : vector<16x128xf32>
    %283 = math.exp %282 : vector<16x128xf32>
    %cst_76 = arith.constant 1.000000e+00 : f32
    %284 = vector.broadcast %cst_76 : f32 to vector<16x128xf32>
    %285 = arith.addf %284, %283 : vector<16x128xf32>
    %286 = arith.divf %284, %285 : vector<16x128xf32>
    %287 = vector.extract_strided_slice %280 {offsets = [0, 128], sizes = [16, 128], strides = [1, 1]} : vector<16x512xf32> to vector<16x128xf32>
    %288 = arith.negf %287 : vector<16x128xf32>
    %289 = math.exp %288 : vector<16x128xf32>
    %cst_77 = arith.constant 1.000000e+00 : f32
    %290 = vector.broadcast %cst_77 : f32 to vector<16x128xf32>
    %291 = arith.addf %290, %289 : vector<16x128xf32>
    %292 = arith.divf %290, %291 : vector<16x128xf32>
    %293 = vector.extract_strided_slice %280 {offsets = [0, 256], sizes = [16, 128], strides = [1, 1]} : vector<16x512xf32> to vector<16x128xf32>
    %294 = math.tanh %293 : vector<16x128xf32>
    %295 = vector.extract_strided_slice %280 {offsets = [0, 384], sizes = [16, 128], strides = [1, 1]} : vector<16x512xf32> to vector<16x128xf32>
    %296 = arith.negf %295 : vector<16x128xf32>
    %297 = math.exp %296 : vector<16x128xf32>
    %cst_78 = arith.constant 1.000000e+00 : f32
    %298 = vector.broadcast %cst_78 : f32 to vector<16x128xf32>
    %299 = arith.addf %298, %297 : vector<16x128xf32>
    %300 = arith.divf %298, %299 : vector<16x128xf32>
    %301 = arith.mulf %292, %228 : vector<16x128xf32>
    %302 = arith.mulf %286, %294 : vector<16x128xf32>
    %303 = arith.addf %301, %302 : vector<16x128xf32>
    %304 = math.tanh %303 : vector<16x128xf32>
    %305 = arith.mulf %300, %304 : vector<16x128xf32>
    %306 = arith.truncf %305 : vector<16x128xf32> to vector<16x128xbf16>
    %307 = arith.index_cast %273 : i32 to index
    %c128_79 = arith.constant 128 : index
    %308 = vector.load %arg9[%307, %c128_79] : memref<128x256xbf16, #tpu.memory_space<vmem>>, vector<16x128xbf16>
    tpu.vector_store %arg9[%307, %c128_79], %306 {strides = array<i32>} : memref<128x256xbf16, #tpu.memory_space<vmem>>, vector<16x128xbf16>,
    %c4_i32 = arith.constant 4 : i32
    %c16_i32_80 = arith.constant 16 : i32
    %309 = arith.muli %c4_i32, %c16_i32_80 : i32
    %310 = tpu.assume_multiple %309, 16 : i32
    %311 = arith.index_cast %310 : i32 to index
    %c0_81 = arith.constant 0 : index
    %312 = vector.load %arg8[%311, %c0_81] : memref<128x1024xbf16, #tpu.memory_space<vmem>>, vector<16x512xbf16>
    %313 = arith.extf %312 : vector<16x512xbf16> to vector<16x512xf32>
    %314 = arith.truncf %267 : vector<16x128xf32> to vector<16x128xbf16>
    %c0_82 = arith.constant 0 : index
    %c0_83 = arith.constant 0 : index
    %315 = vector.load %arg3[%c0_82, %c0_83] : memref<128x512xbf16, #tpu.memory_space<vmem>>, vector<128x512xbf16>
    %cst_84 = arith.constant dense<0.000000e+00> : vector<16x512xf32>
    %316 = tpu.matmul %314, %315, %cst_84 {dimension_numbers = #tpu.dot_dimension_numbers<[1], [0], [0], [1], [0, 0, 1, 1], [], []>} : vector<16x128xbf16>, vector<128x512xbf16>, vector<16x512xf32> -> vector<16x512xf32>
    %317 = arith.addf %313, %316 : vector<16x512xf32>
    %318 = vector.extract_strided_slice %317 {offsets = [0, 0], sizes = [16, 128], strides = [1, 1]} : vector<16x512xf32> to vector<16x128xf32>
    %319 = arith.negf %318 : vector<16x128xf32>
    %320 = math.exp %319 : vector<16x128xf32>
    %cst_85 = arith.constant 1.000000e+00 : f32
    %321 = vector.broadcast %cst_85 : f32 to vector<16x128xf32>
    %322 = arith.addf %321, %320 : vector<16x128xf32>
    %323 = arith.divf %321, %322 : vector<16x128xf32>
    %324 = vector.extract_strided_slice %317 {offsets = [0, 128], sizes = [16, 128], strides = [1, 1]} : vector<16x512xf32> to vector<16x128xf32>
    %325 = arith.negf %324 : vector<16x128xf32>
    %326 = math.exp %325 : vector<16x128xf32>
    %cst_86 = arith.constant 1.000000e+00 : f32
    %327 = vector.broadcast %cst_86 : f32 to vector<16x128xf32>
    %328 = arith.addf %327, %326 : vector<16x128xf32>
    %329 = arith.divf %327, %328 : vector<16x128xf32>
    %330 = vector.extract_strided_slice %317 {offsets = [0, 256], sizes = [16, 128], strides = [1, 1]} : vector<16x512xf32> to vector<16x128xf32>
    %331 = math.tanh %330 : vector<16x128xf32>
    %332 = vector.extract_strided_slice %317 {offsets = [0, 384], sizes = [16, 128], strides = [1, 1]} : vector<16x512xf32> to vector<16x128xf32>
    %333 = arith.negf %332 : vector<16x128xf32>
    %334 = math.exp %333 : vector<16x128xf32>
    %cst_87 = arith.constant 1.000000e+00 : f32
    %335 = vector.broadcast %cst_87 : f32 to vector<16x128xf32>
    %336 = arith.addf %335, %334 : vector<16x128xf32>
    %337 = arith.divf %335, %336 : vector<16x128xf32>
    %338 = arith.mulf %329, %265 : vector<16x128xf32>
    %339 = arith.mulf %323, %331 : vector<16x128xf32>
    %340 = arith.addf %338, %339 : vector<16x128xf32>
    %341 = math.tanh %340 : vector<16x128xf32>
    %342 = arith.mulf %337, %341 : vector<16x128xf32>
    %343 = arith.truncf %342 : vector<16x128xf32> to vector<16x128xbf16>
    %344 = arith.index_cast %310 : i32 to index
    %c0_88 = arith.constant 0 : index
    %345 = vector.load %arg9[%344, %c0_88] : memref<128x256xbf16, #tpu.memory_space<vmem>>, vector<16x128xbf16>
    tpu.vector_store %arg9[%344, %c0_88], %343 {strides = array<i32>} : memref<128x256xbf16, #tpu.memory_space<vmem>>, vector<16x128xbf16>,
    %c7_i32_89 = arith.constant 7 : i32
    %346 = arith.subi %c7_i32_89, %c4_i32 : i32
    %c16_i32_90 = arith.constant 16 : i32
    %347 = arith.muli %346, %c16_i32_90 : i32
    %348 = tpu.assume_multiple %347, 16 : i32
    %349 = arith.index_cast %348 : i32 to index
    %c512_91 = arith.constant 512 : index
    %350 = vector.load %arg8[%349, %c512_91] : memref<128x1024xbf16, #tpu.memory_space<vmem>>, vector<16x512xbf16>
    %351 = arith.extf %350 : vector<16x512xbf16> to vector<16x512xf32>
    %352 = arith.truncf %305 : vector<16x128xf32> to vector<16x128xbf16>
    %c0_92 = arith.constant 0 : index
    %c0_93 = arith.constant 0 : index
    %353 = vector.load %arg4[%c0_92, %c0_93] : memref<128x512xbf16, #tpu.memory_space<vmem>>, vector<128x512xbf16>
    %cst_94 = arith.constant dense<0.000000e+00> : vector<16x512xf32>
    %354 = tpu.matmul %352, %353, %cst_94 {dimension_numbers = #tpu.dot_dimension_numbers<[1], [0], [0], [1], [0, 0, 1, 1], [], []>} : vector<16x128xbf16>, vector<128x512xbf16>, vector<16x512xf32> -> vector<16x512xf32>
    %355 = arith.addf %351, %354 : vector<16x512xf32>
    %356 = vector.extract_strided_slice %355 {offsets = [0, 0], sizes = [16, 128], strides = [1, 1]} : vector<16x512xf32> to vector<16x128xf32>
    %357 = arith.negf %356 : vector<16x128xf32>
    %358 = math.exp %357 : vector<16x128xf32>
    %cst_95 = arith.constant 1.000000e+00 : f32
    %359 = vector.broadcast %cst_95 : f32 to vector<16x128xf32>
    %360 = arith.addf %359, %358 : vector<16x128xf32>
    %361 = arith.divf %359, %360 : vector<16x128xf32>
    %362 = vector.extract_strided_slice %355 {offsets = [0, 128], sizes = [16, 128], strides = [1, 1]} : vector<16x512xf32> to vector<16x128xf32>
    %363 = arith.negf %362 : vector<16x128xf32>
    %364 = math.exp %363 : vector<16x128xf32>
    %cst_96 = arith.constant 1.000000e+00 : f32
    %365 = vector.broadcast %cst_96 : f32 to vector<16x128xf32>
    %366 = arith.addf %365, %364 : vector<16x128xf32>
    %367 = arith.divf %365, %366 : vector<16x128xf32>
    %368 = vector.extract_strided_slice %355 {offsets = [0, 256], sizes = [16, 128], strides = [1, 1]} : vector<16x512xf32> to vector<16x128xf32>
    %369 = math.tanh %368 : vector<16x128xf32>
    %370 = vector.extract_strided_slice %355 {offsets = [0, 384], sizes = [16, 128], strides = [1, 1]} : vector<16x512xf32> to vector<16x128xf32>
    %371 = arith.negf %370 : vector<16x128xf32>
    %372 = math.exp %371 : vector<16x128xf32>
    %cst_97 = arith.constant 1.000000e+00 : f32
    %373 = vector.broadcast %cst_97 : f32 to vector<16x128xf32>
    %374 = arith.addf %373, %372 : vector<16x128xf32>
    %375 = arith.divf %373, %374 : vector<16x128xf32>
    %376 = arith.mulf %367, %303 : vector<16x128xf32>
    %377 = arith.mulf %361, %369 : vector<16x128xf32>
    %378 = arith.addf %376, %377 : vector<16x128xf32>
    %379 = math.tanh %378 : vector<16x128xf32>
    %380 = arith.mulf %375, %379 : vector<16x128xf32>
    %381 = arith.truncf %380 : vector<16x128xf32> to vector<16x128xbf16>
    %382 = arith.index_cast %348 : i32 to index
    %c128_98 = arith.constant 128 : index
    %383 = vector.load %arg9[%382, %c128_98] : memref<128x256xbf16, #tpu.memory_space<vmem>>, vector<16x128xbf16>
    tpu.vector_store %arg9[%382, %c128_98], %381 {strides = array<i32>} : memref<128x256xbf16, #tpu.memory_space<vmem>>, vector<16x128xbf16>,
    %c5_i32 = arith.constant 5 : i32
    %c16_i32_99 = arith.constant 16 : i32
    %384 = arith.muli %c5_i32, %c16_i32_99 : i32
    %385 = tpu.assume_multiple %384, 16 : i32
    %386 = arith.index_cast %385 : i32 to index
    %c0_100 = arith.constant 0 : index
    %387 = vector.load %arg8[%386, %c0_100] : memref<128x1024xbf16, #tpu.memory_space<vmem>>, vector<16x512xbf16>
    %388 = arith.extf %387 : vector<16x512xbf16> to vector<16x512xf32>
    %389 = arith.truncf %342 : vector<16x128xf32> to vector<16x128xbf16>
    %c0_101 = arith.constant 0 : index
    %c0_102 = arith.constant 0 : index
    %390 = vector.load %arg3[%c0_101, %c0_102] : memref<128x512xbf16, #tpu.memory_space<vmem>>, vector<128x512xbf16>
    %cst_103 = arith.constant dense<0.000000e+00> : vector<16x512xf32>
    %391 = tpu.matmul %389, %390, %cst_103 {dimension_numbers = #tpu.dot_dimension_numbers<[1], [0], [0], [1], [0, 0, 1, 1], [], []>} : vector<16x128xbf16>, vector<128x512xbf16>, vector<16x512xf32> -> vector<16x512xf32>
    %392 = arith.addf %388, %391 : vector<16x512xf32>
    %393 = vector.extract_strided_slice %392 {offsets = [0, 0], sizes = [16, 128], strides = [1, 1]} : vector<16x512xf32> to vector<16x128xf32>
    %394 = arith.negf %393 : vector<16x128xf32>
    %395 = math.exp %394 : vector<16x128xf32>
    %cst_104 = arith.constant 1.000000e+00 : f32
    %396 = vector.broadcast %cst_104 : f32 to vector<16x128xf32>
    %397 = arith.addf %396, %395 : vector<16x128xf32>
    %398 = arith.divf %396, %397 : vector<16x128xf32>
    %399 = vector.extract_strided_slice %392 {offsets = [0, 128], sizes = [16, 128], strides = [1, 1]} : vector<16x512xf32> to vector<16x128xf32>
    %400 = arith.negf %399 : vector<16x128xf32>
    %401 = math.exp %400 : vector<16x128xf32>
    %cst_105 = arith.constant 1.000000e+00 : f32
    %402 = vector.broadcast %cst_105 : f32 to vector<16x128xf32>
    %403 = arith.addf %402, %401 : vector<16x128xf32>
    %404 = arith.divf %402, %403 : vector<16x128xf32>
    %405 = vector.extract_strided_slice %392 {offsets = [0, 256], sizes = [16, 128], strides = [1, 1]} : vector<16x512xf32> to vector<16x128xf32>
    %406 = math.tanh %405 : vector<16x128xf32>
    %407 = vector.extract_strided_slice %392 {offsets = [0, 384], sizes = [16, 128], strides = [1, 1]} : vector<16x512xf32> to vector<16x128xf32>
    %408 = arith.negf %407 : vector<16x128xf32>
    %409 = math.exp %408 : vector<16x128xf32>
    %cst_106 = arith.constant 1.000000e+00 : f32
    %410 = vector.broadcast %cst_106 : f32 to vector<16x128xf32>
    %411 = arith.addf %410, %409 : vector<16x128xf32>
    %412 = arith.divf %410, %411 : vector<16x128xf32>
    %413 = arith.mulf %404, %340 : vector<16x128xf32>
    %414 = arith.mulf %398, %406 : vector<16x128xf32>
    %415 = arith.addf %413, %414 : vector<16x128xf32>
    %416 = math.tanh %415 : vector<16x128xf32>
    %417 = arith.mulf %412, %416 : vector<16x128xf32>
    %418 = arith.truncf %417 : vector<16x128xf32> to vector<16x128xbf16>
    %419 = arith.index_cast %385 : i32 to index
    %c0_107 = arith.constant 0 : index
    %420 = vector.load %arg9[%419, %c0_107] : memref<128x256xbf16, #tpu.memory_space<vmem>>, vector<16x128xbf16>
    tpu.vector_store %arg9[%419, %c0_107], %418 {strides = array<i32>} : memref<128x256xbf16, #tpu.memory_space<vmem>>, vector<16x128xbf16>,
    %c7_i32_108 = arith.constant 7 : i32
    %421 = arith.subi %c7_i32_108, %c5_i32 : i32
    %c16_i32_109 = arith.constant 16 : i32
    %422 = arith.muli %421, %c16_i32_109 : i32
    %423 = tpu.assume_multiple %422, 16 : i32
    %424 = arith.index_cast %423 : i32 to index
    %c512_110 = arith.constant 512 : index
    %425 = vector.load %arg8[%424, %c512_110] : memref<128x1024xbf16, #tpu.memory_space<vmem>>, vector<16x512xbf16>
    %426 = arith.extf %425 : vector<16x512xbf16> to vector<16x512xf32>
    %427 = arith.truncf %380 : vector<16x128xf32> to vector<16x128xbf16>
    %c0_111 = arith.constant 0 : index
    %c0_112 = arith.constant 0 : index
    %428 = vector.load %arg4[%c0_111, %c0_112] : memref<128x512xbf16, #tpu.memory_space<vmem>>, vector<128x512xbf16>
    %cst_113 = arith.constant dense<0.000000e+00> : vector<16x512xf32>
    %429 = tpu.matmul %427, %428, %cst_113 {dimension_numbers = #tpu.dot_dimension_numbers<[1], [0], [0], [1], [0, 0, 1, 1], [], []>} : vector<16x128xbf16>, vector<128x512xbf16>, vector<16x512xf32> -> vector<16x512xf32>
    %430 = arith.addf %426, %429 : vector<16x512xf32>
    %431 = vector.extract_strided_slice %430 {offsets = [0, 0], sizes = [16, 128], strides = [1, 1]} : vector<16x512xf32> to vector<16x128xf32>
    %432 = arith.negf %431 : vector<16x128xf32>
    %433 = math.exp %432 : vector<16x128xf32>
    %cst_114 = arith.constant 1.000000e+00 : f32
    %434 = vector.broadcast %cst_114 : f32 to vector<16x128xf32>
    %435 = arith.addf %434, %433 : vector<16x128xf32>
    %436 = arith.divf %434, %435 : vector<16x128xf32>
    %437 = vector.extract_strided_slice %430 {offsets = [0, 128], sizes = [16, 128], strides = [1, 1]} : vector<16x512xf32> to vector<16x128xf32>
    %438 = arith.negf %437 : vector<16x128xf32>
    %439 = math.exp %438 : vector<16x128xf32>
    %cst_115 = arith.constant 1.000000e+00 : f32
    %440 = vector.broadcast %cst_115 : f32 to vector<16x128xf32>
    %441 = arith.addf %440, %439 : vector<16x128xf32>
    %442 = arith.divf %440, %441 : vector<16x128xf32>
    %443 = vector.extract_strided_slice %430 {offsets = [0, 256], sizes = [16, 128], strides = [1, 1]} : vector<16x512xf32> to vector<16x128xf32>
    %444 = math.tanh %443 : vector<16x128xf32>
    %445 = vector.extract_strided_slice %430 {offsets = [0, 384], sizes = [16, 128], strides = [1, 1]} : vector<16x512xf32> to vector<16x128xf32>
    %446 = arith.negf %445 : vector<16x128xf32>
    %447 = math.exp %446 : vector<16x128xf32>
    %cst_116 = arith.constant 1.000000e+00 : f32
    %448 = vector.broadcast %cst_116 : f32 to vector<16x128xf32>
    %449 = arith.addf %448, %447 : vector<16x128xf32>
    %450 = arith.divf %448, %449 : vector<16x128xf32>
    %451 = arith.mulf %442, %378 : vector<16x128xf32>
    %452 = arith.mulf %436, %444 : vector<16x128xf32>
    %453 = arith.addf %451, %452 : vector<16x128xf32>
    %454 = math.tanh %453 : vector<16x128xf32>
    %455 = arith.mulf %450, %454 : vector<16x128xf32>
    %456 = arith.truncf %455 : vector<16x128xf32> to vector<16x128xbf16>
    %457 = arith.index_cast %423 : i32 to index
    %c128_117 = arith.constant 128 : index
    %458 = vector.load %arg9[%457, %c128_117] : memref<128x256xbf16, #tpu.memory_space<vmem>>, vector<16x128xbf16>
    tpu.vector_store %arg9[%457, %c128_117], %456 {strides = array<i32>} : memref<128x256xbf16, #tpu.memory_space<vmem>>, vector<16x128xbf16>,
    %c6_i32 = arith.constant 6 : i32
    %c16_i32_118 = arith.constant 16 : i32
    %459 = arith.muli %c6_i32, %c16_i32_118 : i32
    %460 = tpu.assume_multiple %459, 16 : i32
    %461 = arith.index_cast %460 : i32 to index
    %c0_119 = arith.constant 0 : index
    %462 = vector.load %arg8[%461, %c0_119] : memref<128x1024xbf16, #tpu.memory_space<vmem>>, vector<16x512xbf16>
    %463 = arith.extf %462 : vector<16x512xbf16> to vector<16x512xf32>
    %464 = arith.truncf %417 : vector<16x128xf32> to vector<16x128xbf16>
    %c0_120 = arith.constant 0 : index
    %c0_121 = arith.constant 0 : index
    %465 = vector.load %arg3[%c0_120, %c0_121] : memref<128x512xbf16, #tpu.memory_space<vmem>>, vector<128x512xbf16>
    %cst_122 = arith.constant dense<0.000000e+00> : vector<16x512xf32>
    %466 = tpu.matmul %464, %465, %cst_122 {dimension_numbers = #tpu.dot_dimension_numbers<[1], [0], [0], [1], [0, 0, 1, 1], [], []>} : vector<16x128xbf16>, vector<128x512xbf16>, vector<16x512xf32> -> vector<16x512xf32>
    %467 = arith.addf %463, %466 : vector<16x512xf32>
    %468 = vector.extract_strided_slice %467 {offsets = [0, 0], sizes = [16, 128], strides = [1, 1]} : vector<16x512xf32> to vector<16x128xf32>
    %469 = arith.negf %468 : vector<16x128xf32>
    %470 = math.exp %469 : vector<16x128xf32>
    %cst_123 = arith.constant 1.000000e+00 : f32
    %471 = vector.broadcast %cst_123 : f32 to vector<16x128xf32>
    %472 = arith.addf %471, %470 : vector<16x128xf32>
    %473 = arith.divf %471, %472 : vector<16x128xf32>
    %474 = vector.extract_strided_slice %467 {offsets = [0, 128], sizes = [16, 128], strides = [1, 1]} : vector<16x512xf32> to vector<16x128xf32>
    %475 = arith.negf %474 : vector<16x128xf32>
    %476 = math.exp %475 : vector<16x128xf32>
    %cst_124 = arith.constant 1.000000e+00 : f32
    %477 = vector.broadcast %cst_124 : f32 to vector<16x128xf32>
    %478 = arith.addf %477, %476 : vector<16x128xf32>
    %479 = arith.divf %477, %478 : vector<16x128xf32>
    %480 = vector.extract_strided_slice %467 {offsets = [0, 256], sizes = [16, 128], strides = [1, 1]} : vector<16x512xf32> to vector<16x128xf32>
    %481 = math.tanh %480 : vector<16x128xf32>
    %482 = vector.extract_strided_slice %467 {offsets = [0, 384], sizes = [16, 128], strides = [1, 1]} : vector<16x512xf32> to vector<16x128xf32>
    %483 = arith.negf %482 : vector<16x128xf32>
    %484 = math.exp %483 : vector<16x128xf32>
    %cst_125 = arith.constant 1.000000e+00 : f32
    %485 = vector.broadcast %cst_125 : f32 to vector<16x128xf32>
    %486 = arith.addf %485, %484 : vector<16x128xf32>
    %487 = arith.divf %485, %486 : vector<16x128xf32>
    %488 = arith.mulf %479, %415 : vector<16x128xf32>
    %489 = arith.mulf %473, %481 : vector<16x128xf32>
    %490 = arith.addf %488, %489 : vector<16x128xf32>
    %491 = math.tanh %490 : vector<16x128xf32>
    %492 = arith.mulf %487, %491 : vector<16x128xf32>
    %493 = arith.truncf %492 : vector<16x128xf32> to vector<16x128xbf16>
    %494 = arith.index_cast %460 : i32 to index
    %c0_126 = arith.constant 0 : index
    %495 = vector.load %arg9[%494, %c0_126] : memref<128x256xbf16, #tpu.memory_space<vmem>>, vector<16x128xbf16>
    tpu.vector_store %arg9[%494, %c0_126], %493 {strides = array<i32>} : memref<128x256xbf16, #tpu.memory_space<vmem>>, vector<16x128xbf16>,
    %c7_i32_127 = arith.constant 7 : i32
    %496 = arith.subi %c7_i32_127, %c6_i32 : i32
    %c16_i32_128 = arith.constant 16 : i32
    %497 = arith.muli %496, %c16_i32_128 : i32
    %498 = tpu.assume_multiple %497, 16 : i32
    %499 = arith.index_cast %498 : i32 to index
    %c512_129 = arith.constant 512 : index
    %500 = vector.load %arg8[%499, %c512_129] : memref<128x1024xbf16, #tpu.memory_space<vmem>>, vector<16x512xbf16>
    %501 = arith.extf %500 : vector<16x512xbf16> to vector<16x512xf32>
    %502 = arith.truncf %455 : vector<16x128xf32> to vector<16x128xbf16>
    %c0_130 = arith.constant 0 : index
    %c0_131 = arith.constant 0 : index
    %503 = vector.load %arg4[%c0_130, %c0_131] : memref<128x512xbf16, #tpu.memory_space<vmem>>, vector<128x512xbf16>
    %cst_132 = arith.constant dense<0.000000e+00> : vector<16x512xf32>
    %504 = tpu.matmul %502, %503, %cst_132 {dimension_numbers = #tpu.dot_dimension_numbers<[1], [0], [0], [1], [0, 0, 1, 1], [], []>} : vector<16x128xbf16>, vector<128x512xbf16>, vector<16x512xf32> -> vector<16x512xf32>
    %505 = arith.addf %501, %504 : vector<16x512xf32>
    %506 = vector.extract_strided_slice %505 {offsets = [0, 0], sizes = [16, 128], strides = [1, 1]} : vector<16x512xf32> to vector<16x128xf32>
    %507 = arith.negf %506 : vector<16x128xf32>
    %508 = math.exp %507 : vector<16x128xf32>
    %cst_133 = arith.constant 1.000000e+00 : f32
    %509 = vector.broadcast %cst_133 : f32 to vector<16x128xf32>
    %510 = arith.addf %509, %508 : vector<16x128xf32>
    %511 = arith.divf %509, %510 : vector<16x128xf32>
    %512 = vector.extract_strided_slice %505 {offsets = [0, 128], sizes = [16, 128], strides = [1, 1]} : vector<16x512xf32> to vector<16x128xf32>
    %513 = arith.negf %512 : vector<16x128xf32>
    %514 = math.exp %513 : vector<16x128xf32>
    %cst_134 = arith.constant 1.000000e+00 : f32
    %515 = vector.broadcast %cst_134 : f32 to vector<16x128xf32>
    %516 = arith.addf %515, %514 : vector<16x128xf32>
    %517 = arith.divf %515, %516 : vector<16x128xf32>
    %518 = vector.extract_strided_slice %505 {offsets = [0, 256], sizes = [16, 128], strides = [1, 1]} : vector<16x512xf32> to vector<16x128xf32>
    %519 = math.tanh %518 : vector<16x128xf32>
    %520 = vector.extract_strided_slice %505 {offsets = [0, 384], sizes = [16, 128], strides = [1, 1]} : vector<16x512xf32> to vector<16x128xf32>
    %521 = arith.negf %520 : vector<16x128xf32>
    %522 = math.exp %521 : vector<16x128xf32>
    %cst_135 = arith.constant 1.000000e+00 : f32
    %523 = vector.broadcast %cst_135 : f32 to vector<16x128xf32>
    %524 = arith.addf %523, %522 : vector<16x128xf32>
    %525 = arith.divf %523, %524 : vector<16x128xf32>
    %526 = arith.mulf %517, %453 : vector<16x128xf32>
    %527 = arith.mulf %511, %519 : vector<16x128xf32>
    %528 = arith.addf %526, %527 : vector<16x128xf32>
    %529 = math.tanh %528 : vector<16x128xf32>
    %530 = arith.mulf %525, %529 : vector<16x128xf32>
    %531 = arith.truncf %530 : vector<16x128xf32> to vector<16x128xbf16>
    %532 = arith.index_cast %498 : i32 to index
    %c128_136 = arith.constant 128 : index
    %533 = vector.load %arg9[%532, %c128_136] : memref<128x256xbf16, #tpu.memory_space<vmem>>, vector<16x128xbf16>
    tpu.vector_store %arg9[%532, %c128_136], %531 {strides = array<i32>} : memref<128x256xbf16, #tpu.memory_space<vmem>>, vector<16x128xbf16>,
    %c7_i32_137 = arith.constant 7 : i32
    %c16_i32_138 = arith.constant 16 : i32
    %534 = arith.muli %c7_i32_137, %c16_i32_138 : i32
    %535 = tpu.assume_multiple %534, 16 : i32
    %536 = arith.index_cast %535 : i32 to index
    %c0_139 = arith.constant 0 : index
    %537 = vector.load %arg8[%536, %c0_139] : memref<128x1024xbf16, #tpu.memory_space<vmem>>, vector<16x512xbf16>
    %538 = arith.extf %537 : vector<16x512xbf16> to vector<16x512xf32>
    %539 = arith.truncf %492 : vector<16x128xf32> to vector<16x128xbf16>
    %c0_140 = arith.constant 0 : index
    %c0_141 = arith.constant 0 : index
    %540 = vector.load %arg3[%c0_140, %c0_141] : memref<128x512xbf16, #tpu.memory_space<vmem>>, vector<128x512xbf16>
    %cst_142 = arith.constant dense<0.000000e+00> : vector<16x512xf32>
    %541 = tpu.matmul %539, %540, %cst_142 {dimension_numbers = #tpu.dot_dimension_numbers<[1], [0], [0], [1], [0, 0, 1, 1], [], []>} : vector<16x128xbf16>, vector<128x512xbf16>, vector<16x512xf32> -> vector<16x512xf32>
    %542 = arith.addf %538, %541 : vector<16x512xf32>
    %543 = vector.extract_strided_slice %542 {offsets = [0, 0], sizes = [16, 128], strides = [1, 1]} : vector<16x512xf32> to vector<16x128xf32>
    %544 = arith.negf %543 : vector<16x128xf32>
    %545 = math.exp %544 : vector<16x128xf32>
    %cst_143 = arith.constant 1.000000e+00 : f32
    %546 = vector.broadcast %cst_143 : f32 to vector<16x128xf32>
    %547 = arith.addf %546, %545 : vector<16x128xf32>
    %548 = arith.divf %546, %547 : vector<16x128xf32>
    %549 = vector.extract_strided_slice %542 {offsets = [0, 128], sizes = [16, 128], strides = [1, 1]} : vector<16x512xf32> to vector<16x128xf32>
    %550 = arith.negf %549 : vector<16x128xf32>
    %551 = math.exp %550 : vector<16x128xf32>
    %cst_144 = arith.constant 1.000000e+00 : f32
    %552 = vector.broadcast %cst_144 : f32 to vector<16x128xf32>
    %553 = arith.addf %552, %551 : vector<16x128xf32>
    %554 = arith.divf %552, %553 : vector<16x128xf32>
    %555 = vector.extract_strided_slice %542 {offsets = [0, 256], sizes = [16, 128], strides = [1, 1]} : vector<16x512xf32> to vector<16x128xf32>
    %556 = math.tanh %555 : vector<16x128xf32>
    %557 = vector.extract_strided_slice %542 {offsets = [0, 384], sizes = [16, 128], strides = [1, 1]} : vector<16x512xf32> to vector<16x128xf32>
    %558 = arith.negf %557 : vector<16x128xf32>
    %559 = math.exp %558 : vector<16x128xf32>
    %cst_145 = arith.constant 1.000000e+00 : f32
    %560 = vector.broadcast %cst_145 : f32 to vector<16x128xf32>
    %561 = arith.addf %560, %559 : vector<16x128xf32>
    %562 = arith.divf %560, %561 : vector<16x128xf32>
    %563 = arith.mulf %554, %490 : vector<16x128xf32>
    %564 = arith.mulf %548, %556 : vector<16x128xf32>
    %565 = arith.addf %563, %564 : vector<16x128xf32>
    %566 = math.tanh %565 : vector<16x128xf32>
    %567 = arith.mulf %562, %566 : vector<16x128xf32>
    %568 = arith.truncf %567 : vector<16x128xf32> to vector<16x128xbf16>
    %569 = arith.index_cast %535 : i32 to index
    %c0_146 = arith.constant 0 : index
    %570 = vector.load %arg9[%569, %c0_146] : memref<128x256xbf16, #tpu.memory_space<vmem>>, vector<16x128xbf16>
    tpu.vector_store %arg9[%569, %c0_146], %568 {strides = array<i32>} : memref<128x256xbf16, #tpu.memory_space<vmem>>, vector<16x128xbf16>,
    %c7_i32_147 = arith.constant 7 : i32
    %571 = arith.subi %c7_i32_147, %c7_i32_137 : i32
    %c16_i32_148 = arith.constant 16 : i32
    %572 = arith.muli %571, %c16_i32_148 : i32
    %573 = tpu.assume_multiple %572, 16 : i32
    %574 = arith.index_cast %573 : i32 to index
    %c512_149 = arith.constant 512 : index
    %575 = vector.load %arg8[%574, %c512_149] : memref<128x1024xbf16, #tpu.memory_space<vmem>>, vector<16x512xbf16>
    %576 = arith.extf %575 : vector<16x512xbf16> to vector<16x512xf32>
    %577 = arith.truncf %530 : vector<16x128xf32> to vector<16x128xbf16>
    %c0_150 = arith.constant 0 : index
    %c0_151 = arith.constant 0 : index
    %578 = vector.load %arg4[%c0_150, %c0_151] : memref<128x512xbf16, #tpu.memory_space<vmem>>, vector<128x512xbf16>
    %cst_152 = arith.constant dense<0.000000e+00> : vector<16x512xf32>
    %579 = tpu.matmul %577, %578, %cst_152 {dimension_numbers = #tpu.dot_dimension_numbers<[1], [0], [0], [1], [0, 0, 1, 1], [], []>} : vector<16x128xbf16>, vector<128x512xbf16>, vector<16x512xf32> -> vector<16x512xf32>
    %580 = arith.addf %576, %579 : vector<16x512xf32>
    %581 = vector.extract_strided_slice %580 {offsets = [0, 0], sizes = [16, 128], strides = [1, 1]} : vector<16x512xf32> to vector<16x128xf32>
    %582 = arith.negf %581 : vector<16x128xf32>
    %583 = math.exp %582 : vector<16x128xf32>
    %cst_153 = arith.constant 1.000000e+00 : f32
    %584 = vector.broadcast %cst_153 : f32 to vector<16x128xf32>
    %585 = arith.addf %584, %583 : vector<16x128xf32>
    %586 = arith.divf %584, %585 : vector<16x128xf32>
    %587 = vector.extract_strided_slice %580 {offsets = [0, 128], sizes = [16, 128], strides = [1, 1]} : vector<16x512xf32> to vector<16x128xf32>
    %588 = arith.negf %587 : vector<16x128xf32>
    %589 = math.exp %588 : vector<16x128xf32>
    %cst_154 = arith.constant 1.000000e+00 : f32
    %590 = vector.broadcast %cst_154 : f32 to vector<16x128xf32>
    %591 = arith.addf %590, %589 : vector<16x128xf32>
    %592 = arith.divf %590, %591 : vector<16x128xf32>
    %593 = vector.extract_strided_slice %580 {offsets = [0, 256], sizes = [16, 128], strides = [1, 1]} : vector<16x512xf32> to vector<16x128xf32>
    %594 = math.tanh %593 : vector<16x128xf32>
    %595 = vector.extract_strided_slice %580 {offsets = [0, 384], sizes = [16, 128], strides = [1, 1]} : vector<16x512xf32> to vector<16x128xf32>
    %596 = arith.negf %595 : vector<16x128xf32>
    %597 = math.exp %596 : vector<16x128xf32>
    %cst_155 = arith.constant 1.000000e+00 : f32
    %598 = vector.broadcast %cst_155 : f32 to vector<16x128xf32>
    %599 = arith.addf %598, %597 : vector<16x128xf32>
    %600 = arith.divf %598, %599 : vector<16x128xf32>
    %601 = arith.mulf %592, %528 : vector<16x128xf32>
    %602 = arith.mulf %586, %594 : vector<16x128xf32>
    %603 = arith.addf %601, %602 : vector<16x128xf32>
    %604 = math.tanh %603 : vector<16x128xf32>
    %605 = arith.mulf %600, %604 : vector<16x128xf32>
    %606 = arith.truncf %605 : vector<16x128xf32> to vector<16x128xbf16>
    %607 = arith.index_cast %573 : i32 to index
    %c128_156 = arith.constant 128 : index
    %608 = vector.load %arg9[%607, %c128_156] : memref<128x256xbf16, #tpu.memory_space<vmem>>, vector<16x128xbf16>
    tpu.vector_store %arg9[%607, %c128_156], %606 {strides = array<i32>} : memref<128x256xbf16, #tpu.memory_space<vmem>>, vector<16x128xbf16>,
    %c8_i32 = arith.constant 8 : i32
    %c0_157 = arith.constant 0 : index
    %c0_158 = arith.constant 0 : index
    %609 = vector.load %arg9[%c0_157, %c0_158] : memref<128x256xbf16, #tpu.memory_space<vmem>>, vector<128x256xbf16>
    %c0_159 = arith.constant 0 : index
    %c0_160 = arith.constant 0 : index
    %610 = vector.load %arg5[%c0_159, %c0_160] : memref<256x128xbf16, #tpu.memory_space<vmem>>, vector<256x128xbf16>
    %cst_161 = arith.constant dense<0.000000e+00> : vector<128x128xf32>
    %611 = tpu.matmul %609, %610, %cst_161 {dimension_numbers = #tpu.dot_dimension_numbers<[1], [0], [0], [1], [0, 0, 1, 1], [], []>} : vector<128x256xbf16>, vector<256x128xbf16>, vector<128x128xf32> -> vector<128x128xf32>
    %c0_162 = arith.constant 0 : index
    %c0_163 = arith.constant 0 : index
    %612 = vector.load %arg6[%c0_162, %c0_163] : memref<1x128xf32, #tpu.memory_space<vmem>>, vector<1x128xf32>
    %613 = vector.broadcast %612 : vector<1x128xf32> to vector<128x128xf32>
    %614 = arith.addf %611, %613 : vector<128x128xf32>
    %c0_164 = arith.constant 0 : index
    %c0_165 = arith.constant 0 : index
    %615 = vector.load %arg7[%c0_164, %c0_165] : memref<128x128xf32, #tpu.memory_space<vmem>>, vector<128x128xf32>
    tpu.vector_store %arg7[%c0_164, %c0_165], %614 {strides = array<i32>} : memref<128x128xf32, #tpu.memory_space<vmem>>, vector<128x128xf32>,
    return
  }
}

</mosaic_0001>

<bundles_post_ra>
// kernel: _bilstm_call.1
= control target key start
LH: loop header
LB: loop body
LE: loop exit
PB: predicated region body
PF: predicated region fallthrough
CT: control target
= control target key end

     0   :  { %12 = vsyncpa [#allocation5], 0  ;;  %s11296_s0 = inlined_call_operand.vmem [shape: bf16[128,128], index: 0, kind: input, shape index: {}]   ;;  %s11297_s1 = inlined_call_operand.hbm [shape: bf16[128,1024], index: 1, kind: input, shape index: {}]   ;;  %s11298_s2 = inlined_call_operand.vmem [shape: f32[1,1024], index: 2, kind: input, shape index: {}]   ;;  %s11299_s3 = inlined_call_operand.hbm [shape: bf16[128,512], index: 3, kind: input, shape index: {}]   ;;  %s11300_s4 = inlined_call_operand.hbm [shape: bf16[128,512], index: 4, kind: input, shape index: {}]   ;;  %s11301_s5 = inlined_call_operand.hbm [shape: bf16[256,128], index: 5, kind: input, shape index: {}]   ;;  %s11302_s6 = inlined_call_operand.vmem [shape: f32[1,128], index: 6, kind: input, shape index: {}]   ;;  %s11303_s7 = inlined_call_operand.vmem [shape: f32[128,128], index: 7, kind: output, shape index: {}]  }
   0x1   :  { %13 = vsyncpa [#allocation7], 0 }
   0x2   :  { %14 = vsyncpa [#allocation10], 0  ;;  %s9711_s24 = smov [#allocation6]  }
   0x3   :  { %s36_s25 = sshll.u32 %s9711_s24, 4  ;;  %s37_s25 = int_to_ptr.vmem [resolvable:$true] %s36_s25 }
   0x4   :  { %s9633_s26 = scalar_lea.vmem %s37_s25, 4096  ;;  %p9638_p1 = scmp.lt.s32.totalorder %s37_s25, %s37_s25 }
   0x5   :  { %p9634_p0 = scmp.ne.s32.totalorder %s37_s25, %s9633_s26  ;;  %p9639_p2 = scmp.lt.s32.totalorder %s9633_s26, %s9633_s26 }
   0x7   :  { %p9640_p3 = por %p9639_p2, %p9638_p1 }
   0x9   :  { %p9641_p4 = pnand %p9640_p3, %p9634_p0 }
   0xb   :  { %9644 = shalt.err (!%p9641_p4)
}
   0xc   :  { %s9712_s27 = smov 256   ;;  %s9713_s28 = smov 16  }
   0xd   :  { %42 = dma.hbm_to_vmem [thread:$0]  %s11299_s3, 4096, %s37_s25, [#allocation7], %s9712_s27, %s9712_s27, %s9713_s28  }
   0xe   :  { %s9714_s8 = smov [#allocation4]  }
   0xf   :  { %s22_s9 = sshll.u32 %s9714_s8, 4  ;;  %s23_s9 = int_to_ptr.vmem [resolvable:$true] %s22_s9 }
  0x10   :  { %s9653_s10 = scalar_lea.vmem %s23_s9, 8192  ;;  %p9658_p6 = scmp.lt.s32.totalorder %s23_s9, %s23_s9 }
  0x11   :  { %p9654_p5 = scmp.ne.s32.totalorder %s23_s9, %s9653_s10  ;;  %p9659_p7 = scmp.lt.s32.totalorder %s9653_s10, %s9653_s10 }
  0x13   :  { %p9660_p8 = por %p9659_p7, %p9658_p6 }
  0x15   :  { %p9661_p9 = pnand %p9660_p8, %p9654_p5 }
  0x17   :  { %9664 = shalt.err (!%p9661_p9)
}
  0x18   :  { %s9715_s11 = smov 512   ;;  %s9716_s12 = smov 32  }
  0x19   :  { %28 = dma.hbm_to_vmem [thread:$0]  %s11297_s1, 8192, %s23_s9, [#allocation5], %s9715_s11, %s9715_s11, %s9716_s12  }
  0x1a   :  { %s9717_s15 = smov [#allocation8]   ;;  %s9718_s17 = smov [#allocation9]  }
  0x1b   :  { %s48_s16 = sshll.u32 %s9717_s15, 4  ;;  %s60_s3 = sshll.u32 %s9718_s17, 4  ;;  %s49_s16 = int_to_ptr.vmem [resolvable:$true] %s48_s16  ;;  %s61_s3 = int_to_ptr.vmem [resolvable:$true] %s60_s3 }
  0x1c   :  { %s9673_s18 = scalar_lea.vmem %s49_s16, 4096  ;;  %p9678_p11 = scmp.lt.s32.totalorder %s49_s16, %s49_s16 }
  0x1d   :  { %p9674_p10 = scmp.ne.s32.totalorder %s49_s16, %s9673_s18  ;;  %p9679_p12 = scmp.lt.s32.totalorder %s9673_s18, %s9673_s18 }
  0x1f   :  { %p9680_p13 = por %p9679_p12, %p9678_p11 }
  0x21   :  { %p9681_p0 = pnand %p9680_p13, %p9674_p10 }
  0x23   :  { %9684 = shalt.err (!%p9681_p0)
}
  0x24   :  { %54 = dma.hbm_to_vmem [thread:$0]  %s11300_s4, 4096, %s49_s16, [#allocation7], %s9712_s27, %s9712_s27, %s9713_s28  }
  0x25   :  { %s9693_s1 = scalar_lea.vmem %s61_s3, 2048  ;;  %p9698_p2 = scmp.lt.s32.totalorder %s61_s3, %s61_s3 }
  0x26   :  { %p9694_p1 = scmp.ne.s32.totalorder %s61_s3, %s9693_s1  ;;  %p9699_p3 = scmp.lt.s32.totalorder %s9693_s1, %s9693_s1 }
  0x28   :  { %p9700_p4 = por %p9699_p3, %p9698_p2 }
  0x2a   :  { %p9701_p5 = pnand %p9700_p4, %p9694_p1 }
  0x2c   :  { %9704 = shalt.err (!%p9701_p5)
}
  0x2d   :  { %s9719_s21 = smov 64   ;;  %s9720_s22 = smov 4  }
  0x2e   :  { %66 = dma.hbm_to_vmem [thread:$0]  %s11301_s5, 2048, %s61_s3, [#allocation10], %s9719_s21, %s9719_s21, %s9720_s22  }
  0x2f   :  { %9705 = dma.done.wait [#allocation5], 8192  }
  0x30   :  { %9706 = vsyncadd [#allocation5], 4294959104 }
  0x31   :  { %9707 = dma.done.wait [#allocation7], 8192  }
  0x32   :  { %9708 = vsyncadd [#allocation7], 4294959104 }
  0x33   :  { %9709 = dma.done.wait [#allocation10], 2048  }
  0x34   :  { %9710 = vsyncadd [#allocation10], 4294965248  ;;  %v11304_v0 = vmov 0   ;;  %v154_v1 = vld [vmem:[#allocation4 + $0x1c0] sm:$0xff]  ;;  %v155_v32 = vld [vmem:[#allocation4 + $0x1c8] sm:$0xff] }
  0x35   :  { %604 = vmatprep.mubr.bf16.mxu0 %v11304_v0  ;;  %644 = vmatprep.mubr.bf16.mxu1 %v11304_v0  ;;  %v158_v2 = vld [vmem:[#allocation4 + $0x1e0] sm:$0xff]  ;;  %v159_v33 = vld [vmem:[#allocation4 + $0x1e8] sm:$0xff]  ;;  %v156_v34 = vld [vmem:[#allocation4 + $0x1d0] sm:$0xff] }
  0x36   :  { %v146_v3 = vld [vmem:[#allocation4 + $0x180] sm:$0xff]  ;;  %v7646_v4 = vcombine.high %v154_v1, %v158_v2  ;;  %v7645_v5 = vcombine.low %v154_v1, %v158_v2  ;;  %v160_v35 = vld [vmem:[#allocation4 + $0x1f0] sm:$0xff]  ;;  %v7648_v37 = vcombine.high %v155_v32, %v159_v33  ;;  %v147_v39 = vld [vmem:[#allocation4 + $0x188] sm:$0xff]  ;;  %v7647_v45 = vcombine.low %v155_v32, %v159_v33 }
  0x37   :  { %v150_v6 = vld [vmem:[#allocation4 + $0x1a0] sm:$0xff]  ;;  %v7650_v38 = vcombine.high %v156_v34, %v160_v35  ;;  %v151_v40 = vld [vmem:[#allocation4 + $0x1a8] sm:$0xff]  ;;  %v148_v41 = vld [vmem:[#allocation4 + $0x190] sm:$0xff]  ;;  %v7649_v46 = vcombine.low %v156_v34, %v160_v35 }
  0x38   :  { %v7638_v7 = vcombine.high %v146_v3, %v150_v6  ;;  %v138_v8 = vld [vmem:[#allocation4 + $0x140] sm:$0xff]  ;;  %572 = vmatprep.subr.bf16.mxu0 %v7646_v4  ;;  %8550 = vmatprep.subr.bf16.mxu1 %v7646_v4  ;;  %v7637_v10 = vcombine.low %v146_v3, %v150_v6  ;;  %v152_v42 = vld [vmem:[#allocation4 + $0x1b0] sm:$0xff]  ;;  %v7640_v47 = vcombine.high %v147_v39, %v151_v40  ;;  %v139_v49 = vld [vmem:[#allocation4 + $0x148] sm:$0xff] }
  0x39   :  { %v142_v9 = vld [vmem:[#allocation4 + $0x160] sm:$0xff]  ;;  %573 = vmatpush1.bf16.msra.mxu0 %v7645_v5  ;;  %8558 = vmatpush1.bf16.msra.mxu1 %v7645_v5  ;;  %v7642_v48 = vcombine.high %v148_v41, %v152_v42  ;;  %v143_v50 = vld [vmem:[#allocation4 + $0x168] sm:$0xff]  ;;  %v140_v51 = vld [vmem:[#allocation4 + $0x150] sm:$0xff]  ;;  %v7639_v53 = vcombine.low %v147_v39, %v151_v40  ;;  %v7641_v54 = vcombine.low %v148_v41, %v152_v42 }
  0x3a   :  { %574 = vmatprep.subr.bf16.mxu0 %v7638_v7  ;;  %8551 = vmatprep.subr.bf16.mxu1 %v7638_v7  ;;  %v7630_v11 = vcombine.high %v138_v8, %v142_v9  ;;  %v130_v12 = vld [vmem:[#allocation4 + $0x100] sm:$0xff]  ;;  %v7629_v14 = vcombine.low %v138_v8, %v142_v9  ;;  %v144_v52 = vld [vmem:[#allocation4 + $0x170] sm:$0xff]  ;;  %v131_v55 = vld [vmem:[#allocation4 + $0x108] sm:$0xff]  ;;  %v7632_v56 = vcombine.high %v139_v49, %v143_v50 }
  0x3b   :  { %v134_v13 = vld [vmem:[#allocation4 + $0x120] sm:$0xff]  ;;  %v7634_v57 = vcombine.high %v140_v51, %v144_v52  ;;  %v135_v58 = vld [vmem:[#allocation4 + $0x128] sm:$0xff]  ;;  %v132_v59 = vld [vmem:[#allocation4 + $0x110] sm:$0xff]  ;;  %v7631_v63 = vcombine.low %v139_v49, %v143_v50  ;;  %v7633_v1 = vcombine.low %v140_v51, %v144_v52 }
  0x3c   :  { %v7622_v15 = vcombine.high %v130_v12, %v134_v13  ;;  %v122_v16 = vld [vmem:[#allocation4 + $0xc0] sm:$0xff]  ;;  %v7621_v18 = vcombine.low %v130_v12, %v134_v13  ;;  %v136_v60 = vld [vmem:[#allocation4 + $0x130] sm:$0xff]  ;;  %v9799_v61 = vld [vmem:[%s11296_s0 + $0x8] sm:$0xff]   ;;  %v7624_v3 = vcombine.high %v131_v55, %v135_v58  ;;  %v7623_v8 = vcombine.low %v131_v55, %v135_v58 }
  0x3d   :  { %575 = vmatpush1.bf16.msra.mxu0 %v7637_v10  ;;  %8559 = vmatpush1.bf16.msra.mxu1 %v7637_v10  ;;  %v126_v17 = vld [vmem:[#allocation4 + $0xe0] sm:$0xff]  ;;  %v9804_v62 = vld [vmem:[%s11296_s0 + $0x28] sm:$0xff]   ;;  %v7626_v4 = vcombine.high %v132_v59, %v136_v60  ;;  %v124_v6 = vld [vmem:[#allocation4 + $0xd0] sm:$0xff]  ;;  %v7625_v9 = vcombine.low %v132_v59, %v136_v60 }
  0x3e   :  { %576 = vmatprep.subr.bf16.mxu0 %v7630_v11  ;;  %8552 = vmatprep.subr.bf16.mxu1 %v7630_v11  ;;  %v7614_v19 = vcombine.high %v122_v16, %v126_v17  ;;  %v114_v20 = vld [vmem:[#allocation4 + $0x80] sm:$0xff]  ;;  %v7613_v22 = vcombine.low %v122_v16, %v126_v17  ;;  %v123_v2 = vld [vmem:[#allocation4 + $0xc8] sm:$0xff]  ;;  %v128_v7 = vld [vmem:[#allocation4 + $0xf0] sm:$0xff] }
  0x3f   :  { %v118_v21 = vld [vmem:[#allocation4 + $0xa0] sm:$0xff]  ;;  %v127_v5 = vld [vmem:[#allocation4 + $0xe8] sm:$0xff]  ;;  %v7618_v12 = vcombine.high %v124_v6, %v128_v7  ;;  %v9813_v16 = vld [vmem:[%s11296_s0 + $0x10] sm:$0xff]  }
  0x40   :  { %v7606_v23 = vcombine.high %v114_v20, %v118_v21  ;;  %v106_v24 = vld [vmem:[#allocation4 + $0x40] sm:$0xff]  ;;  %v7605_v26 = vcombine.low %v114_v20, %v118_v21  ;;  %v115_v10 = vld [vmem:[#allocation4 + $0x88] sm:$0xff]  ;;  %v7616_v11 = vcombine.high %v123_v2, %v127_v5  ;;  %v9818_v17 = vld [vmem:[%s11296_s0 + $0x30] sm:$0xff]  }
  0x41   :  { %577 = vmatpush1.bf16.msra.mxu0 %v7629_v14  ;;  %8560 = vmatpush1.bf16.msra.mxu1 %v7629_v14  ;;  %v110_v25 = vld [vmem:[#allocation4 + $0x60] sm:$0xff]  ;;  %v119_v13 = vld [vmem:[#allocation4 + $0xa8] sm:$0xff]  ;;  %v116_v14 = vld [vmem:[#allocation4 + $0x90] sm:$0xff] }
  0x42   :  { %578 = vmatprep.subr.bf16.mxu0 %v7622_v15  ;;  %8553 = vmatprep.subr.bf16.mxu1 %v7622_v15  ;;  %v7598_v27 = vcombine.high %v106_v24, %v110_v25  ;;  %v98_v28 = vld [vmem:[#allocation4] sm:$0xff]  ;;  %v7597_v30 = vcombine.low %v106_v24, %v110_v25  ;;  %v120_v15 = vld [vmem:[#allocation4 + $0xb0] sm:$0xff]  ;;  %v107_v20 = vld [vmem:[#allocation4 + $0x48] sm:$0xff]  ;;  %v7608_v21 = vcombine.high %v115_v10, %v119_v13 }
  0x43   :  { %v102_v29 = vld [vmem:[#allocation4 + $0x20] sm:$0xff]  ;;  %v108_v24 = vld [vmem:[#allocation4 + $0x50] sm:$0xff]  ;;  %v9827_v34 = vld [vmem:[%s11296_s0 + $0x18] sm:$0xff]  }
  0x44   :  { %v7590_v31 = vcombine.high %v98_v28, %v102_v29  ;;  %v7589_v36 = vcombine.low %v98_v28, %v102_v29  ;;  %v9785_v43 = vld [vmem:[%s11296_s0] sm:$0xff]   ;;  %v112_v25 = vld [vmem:[#allocation4 + $0x70] sm:$0xff]  ;;  %v99_v28 = vld [vmem:[#allocation4 + $0x8] sm:$0xff] }
  0x45   :  { %579 = vmatpush1.bf16.msra.mxu0 %v7621_v18  ;;  %8561 = vmatpush1.bf16.msra.mxu1 %v7621_v18  ;;  %v9790_v44 = vld [vmem:[%s11296_s0 + $0x20] sm:$0xff]   ;;  %v7615_v18 = vcombine.low %v123_v2, %v127_v5  ;;  %v100_v32 = vld [vmem:[#allocation4 + $0x10] sm:$0xff]  ;;  %v9832_v35 = vld [vmem:[%s11296_s0 + $0x38] sm:$0xff]  }
  0x46   :  { %580 = vmatprep.subr.bf16.mxu0 %v7614_v19  ;;  %8554 = vmatprep.subr.bf16.mxu1 %v7614_v19  ;;  %v7617_v19 = vcombine.low %v124_v6, %v128_v7  ;;  %v104_v33 = vld [vmem:[#allocation4 + $0x30] sm:$0xff]  ;;  %v157_v40 = vld [vmem:[#allocation4 + $0x1d8] sm:$0xff] }
  0x47   :  { %v7594_v39 = vcombine.high %v100_v32, %v104_v33  ;;  %v161_v41 = vld [vmem:[#allocation4 + $0x1f8] sm:$0xff]  ;;  %v8590_v55 = vld [vmem:[#allocation6 + $0xc4] ss:$16 sps:$4 sm:$0xff]   ;;  %v8594_v7 = vld [vmem:[#allocation6 + $0x80] ss:$16 sps:$4 sm:$0xff]  }
  0x48   :  { %v153_v49 = vld [vmem:[#allocation4 + $0x1b8] sm:$0xff]  ;;  %v7651_v50 = vcombine.low %v157_v40, %v161_v41  ;;  %v8596_v5 = vld [vmem:[#allocation6 + $0x84] ss:$16 sps:$4 sm:$0xff]  }
  0x49   :  { %581 = vmatpush1.bf16.msra.mxu0 %v7613_v22  ;;  %8562 = vmatpush1.bf16.msra.mxu1 %v7613_v22  ;;  %v7610_v22 = vcombine.high %v116_v14, %v120_v15  ;;  %v141_v51 = vld [vmem:[#allocation4 + $0x158] sm:$0xff] }
  0x4a   :  { %582 = vmatprep.subr.bf16.mxu0 %v7606_v23  ;;  %8555 = vmatprep.subr.bf16.mxu1 %v7606_v23  ;;  %v111_v23 = vld [vmem:[#allocation4 + $0x68] sm:$0xff]  ;;  %v145_v52 = vld [vmem:[#allocation4 + $0x178] sm:$0xff] }
  0x4b   :  { %v7600_v29 = vcombine.high %v107_v20, %v111_v23  ;;  %v7636_v58 = vcombine.high %v141_v51, %v145_v52  ;;  %v133_v59 = vld [vmem:[#allocation4 + $0x118] sm:$0xff]  ;;  %v7635_v2 = vcombine.low %v141_v51, %v145_v52  ;;  %v8630_v51 = vld [vmem:[#allocation8 + $0x60] ss:$16 sps:$4 sm:$0xff]  }
  0x4c   :  { %v137_v60 = vld [vmem:[#allocation4 + $0x138] sm:$0xff] }
  0x4d   :  { %583 = vmatpush1.bf16.msra.mxu0 %v7605_v26  ;;  %8563 = vmatpush1.bf16.msra.mxu1 %v7605_v26  ;;  %v7607_v26 = vcombine.low %v115_v10, %v119_v13  ;;  %v7628_v6 = vcombine.high %v133_v59, %v137_v60  ;;  %v121_v10 = vld [vmem:[#allocation4 + $0xb8] sm:$0xff]  ;;  %v8599_v13 = vld [vmem:[#allocation6 + $0x64] ss:$16 sps:$4 sm:$0xff]  }
  0x4e   :  { %584 = vmatprep.subr.bf16.mxu0 %v7598_v27  ;;  %8556 = vmatprep.subr.bf16.mxu1 %v7598_v27  ;;  %v7609_v27 = vcombine.low %v116_v14, %v120_v15  ;;  %v109_v15 = vld [vmem:[#allocation4 + $0x58] sm:$0xff] }
  0x4f   :  { %v8650_v52 = vld [vmem:[#allocation6 + $0x4c] ss:$16 sps:$4 sm:$0xff]  }
  0x51   :  { %585 = vmatpush1.bf16.msra.mxu0 %v7597_v30  ;;  %8564 = vmatpush1.bf16.msra.mxu1 %v7597_v30  ;;  %v7602_v30 = vcombine.high %v108_v24, %v112_v25 }
  0x52   :  { %586 = vmatprep.subr.bf16.mxu0 %v7590_v31  ;;  %8557 = vmatprep.subr.bf16.mxu1 %v7590_v31  ;;  %v103_v31 = vld [vmem:[#allocation4 + $0x28] sm:$0xff] }
  0x53   :  { %v7591_v42 = vcombine.low %v99_v28, %v103_v31 }
  0x55   :  { %587 = vmatpush1.bf16.msra.mxu0 %v7589_v36  ;;  %8565 = vmatpush1.bf16.msra.mxu1 %v7589_v36  ;;  %v7599_v36 = vcombine.low %v107_v20, %v111_v23  ;;  %v101_v23 = vld [vmem:[#allocation4 + $0x18] sm:$0xff] }
  0x56   :  { %685 = vmatprep.subr.bf16.mxu1 %v7648_v37  ;;  %798 = vmatprep.subr.bf16.mxu0 %v7650_v38  ;;  %v7601_v37 = vcombine.low %v108_v24, %v112_v25  ;;  %v7592_v38 = vcombine.high %v99_v28, %v103_v31  ;;  %v105_v24 = vld [vmem:[#allocation4 + $0x38] sm:$0xff]  ;;  %v8606_v31 = vld [vmem:[#allocation6] ss:$16 sps:$4 sm:$0xff]  }
  0x58   :  { %605 = vmatmul.mubr.bf16.vlgmr.msra.gmra.mxu0 %v9785_v43  ;;  %645 = vmatmul.mubr.bf16.vlgmr.msra.gmra.mxu1 %v9790_v44 }
  0x59   :  { %686 = vmatpush1.bf16.msra.mxu1 %v7647_v45  ;;  %799 = vmatpush1.bf16.msra.mxu0 %v7649_v46  ;;  %v7593_v45 = vcombine.low %v100_v32, %v104_v33  ;;  %v7652_v46 = vcombine.high %v157_v40, %v161_v41  ;;  %v8611_v32 = vld [vmem:[#allocation6 + $0xec] ss:$16 sps:$4 sm:$0xff]   ;;  %v7595_v33 = vcombine.low %v101_v23, %v105_v24  ;;  %v8623_v41 = vld [vmem:[#allocation8 + $0xa4] ss:$16 sps:$4 sm:$0xff]  }
  0x5a   :  { %687 = vmatprep.subr.bf16.mxu1 %v7640_v47  ;;  %800 = vmatprep.subr.bf16.mxu0 %v7642_v48  ;;  %v8587_v47 = vld [vmem:[#allocation6 + $0xe4] ss:$16 sps:$4 sm:$0xff]   ;;  %v149_v48 = vld [vmem:[#allocation4 + $0x198] sm:$0xff] }
  0x5b   :  { %614 = vmatprep.mubr.bf16.mxu0 %v11304_v0  ;;  %654 = vmatprep.mubr.bf16.mxu1 %v11304_v0  ;;  %v8626_v40 = vld [vmem:[#allocation6 + $0xac] ss:$16 sps:$4 sm:$0xff]  }
  0x5d   :  { %688 = vmatpush1.bf16.msra.mxu1 %v7639_v53  ;;  %801 = vmatpush1.bf16.msra.mxu0 %v7641_v54  ;;  %v8585_v53 = vld [vmem:[#allocation6 + $0xe0] ss:$16 sps:$4 sm:$0xff]   ;;  %v7644_v54 = vcombine.high %v149_v48, %v153_v49 }
  0x5e   :  { %689 = vmatprep.subr.bf16.mxu1 %v7632_v56  ;;  %802 = vmatprep.subr.bf16.mxu0 %v7634_v57  ;;  %v7643_v56 = vcombine.low %v149_v48, %v153_v49  ;;  %v8588_v57 = vld [vmem:[#allocation6 + $0xc0] ss:$16 sps:$4 sm:$0xff]   ;;  %v8644_v48 = vld [vmem:[#allocation6 + $0x6c] ss:$16 sps:$4 sm:$0xff]   ;;  %v8632_v49 = vld [vmem:[#allocation8 + $0x64] ss:$16 sps:$4 sm:$0xff]  }
  0x60   :  { %615 = vmatmul.mubr.bf16.gmra.mxu0 %v9799_v61  ;;  %655 = vmatmul.mubr.bf16.gmra.mxu1 %v9804_v62 }
  0x61   :  { %690 = vmatpush1.bf16.msra.mxu1 %v7631_v63  ;;  %803 = vmatpush1.bf16.msra.mxu0 %v7633_v1  ;;  %v8591_v63 = vld [vmem:[#allocation6 + $0xa0] ss:$16 sps:$4 sm:$0xff]   ;;  %v8593_v1 = vld [vmem:[#allocation6 + $0xa4] ss:$16 sps:$4 sm:$0xff]  }
  0x62   :  { %691 = vmatprep.subr.bf16.mxu1 %v7624_v3  ;;  %804 = vmatprep.subr.bf16.mxu0 %v7626_v4  ;;  %v125_v3 = vld [vmem:[#allocation4 + $0xd8] sm:$0xff] }
  0x63   :  { %624 = vmatprep.mubr.bf16.mxu0 %v11304_v0  ;;  %664 = vmatprep.mubr.bf16.mxu1 %v11304_v0  ;;  %v129_v4 = vld [vmem:[#allocation4 + $0xf8] sm:$0xff] }
  0x64   :  { %v7619_v14 = vcombine.low %v125_v3, %v129_v4 }
  0x65   :  { %692 = vmatpush1.bf16.msra.mxu1 %v7623_v8  ;;  %805 = vmatpush1.bf16.msra.mxu0 %v7625_v9  ;;  %v7627_v8 = vcombine.low %v133_v59, %v137_v60  ;;  %v117_v9 = vld [vmem:[#allocation4 + $0x98] sm:$0xff]  ;;  %v8647_v60 = vld [vmem:[#allocation8 + $0x4] ss:$16 sps:$4 sm:$0xff]  }
  0x66   :  { %693 = vmatprep.subr.bf16.mxu1 %v7616_v11  ;;  %806 = vmatprep.subr.bf16.mxu0 %v7618_v12  ;;  %v7620_v11 = vcombine.high %v125_v3, %v129_v4  ;;  %v8597_v12 = vld [vmem:[#allocation6 + $0x60] ss:$16 sps:$4 sm:$0xff]   ;;  %v7612_v20 = vcombine.high %v117_v9, %v121_v10  ;;  %v8656_v59 = vld [vmem:[#allocation6 + $0xc] ss:$16 sps:$4 sm:$0xff]  }
  0x67   :  { %v9619_v3 = vld [vmem:[%s11296_s0 + $0x30] sm:$0xff]   ;;  %v9620_v4 = vld [vmem:[%s11296_s0 + $0x38] sm:$0xff]  }
  0x68   :  { %625 = vmatmul.mubr.bf16.gmra.mxu0 %v9813_v16  ;;  %665 = vmatmul.mubr.bf16.gmra.mxu1 %v9818_v17 }
  0x69   :  { %694 = vmatpush1.bf16.msra.mxu1 %v7615_v18  ;;  %807 = vmatpush1.bf16.msra.mxu0 %v7617_v19  ;;  %v113_v18 = vld [vmem:[#allocation4 + $0x78] sm:$0xff]  ;;  %v8602_v19 = vld [vmem:[#allocation6 + $0x44] ss:$16 sps:$4 sm:$0xff]  }
  0x6a   :  { %695 = vmatprep.subr.bf16.mxu1 %v7608_v21  ;;  %808 = vmatprep.subr.bf16.mxu0 %v7610_v22  ;;  %v8600_v21 = vld [vmem:[#allocation6 + $0x40] ss:$16 sps:$4 sm:$0xff]   ;;  %v7611_v22 = vcombine.low %v117_v9, %v121_v10  ;;  %v7604_v25 = vcombine.high %v109_v15, %v113_v18  ;;  %v7603_v28 = vcombine.low %v109_v15, %v113_v18  ;;  %v8663_v9 = vld [vmem:[#allocation8 + $0xa8] ss:$16 sps:$4 sm:$0xff]   ;;  %v8668_v10 = vld [vmem:[#allocation8 + $0x8c] ss:$16 sps:$4 sm:$0xff]   ;;  %v164_v18 = vlaneseq }
  0x6b   :  { %634 = vmatprep.mubr.bf16.mxu0 %v11304_v0  ;;  %674 = vmatprep.mubr.bf16.mxu1 %v11304_v0  ;;  %v8672_v15 = vld [vmem:[#allocation8 + $0x48] ss:$16 sps:$4 sm:$0xff]  }
  0x6d   :  { %696 = vmatpush1.bf16.msra.mxu1 %v7607_v26  ;;  %809 = vmatpush1.bf16.msra.mxu0 %v7609_v27  ;;  %v8603_v26 = vld [vmem:[#allocation6 + $0x20] ss:$16 sps:$4 sm:$0xff]   ;;  %v8605_v27 = vld [vmem:[#allocation6 + $0x24] ss:$16 sps:$4 sm:$0xff]  }
  0x6e   :  { %697 = vmatprep.subr.bf16.mxu1 %v7600_v29  ;;  %810 = vmatprep.subr.bf16.mxu0 %v7602_v30  ;;  %v8608_v29 = vld [vmem:[#allocation6 + $0x4] ss:$16 sps:$4 sm:$0xff]   ;;  %v7596_v30 = vcombine.high %v101_v23, %v105_v24  ;;  %v8678_v23 = vld [vmem:[#allocation8 + $0x8] ss:$16 sps:$4 sm:$0xff]  }
  0x70   :  { %635 = vmatmul.mubr.bf16.gmra.mxu0 %v9827_v34  ;;  %675 = vmatmul.mubr.bf16.gmra.mxu1 %v9832_v35 }
  0x71   :  { %698 = vmatpush1.bf16.msra.mxu1 %v7599_v36  ;;  %811 = vmatpush1.bf16.msra.mxu0 %v7601_v37  ;;  %v8614_v36 = vld [vmem:[#allocation8 + $0xe4] ss:$16 sps:$4 sm:$0xff]   ;;  %v8617_v37 = vld [vmem:[#allocation6 + $0xcc] ss:$16 sps:$4 sm:$0xff]  }
  0x72   :  { %699 = vmatprep.subr.bf16.mxu1 %v7592_v38  ;;  %812 = vmatprep.subr.bf16.mxu0 %v7594_v39  ;;  %v8620_v38 = vld [vmem:[#allocation8 + $0xc4] ss:$16 sps:$4 sm:$0xff]   ;;  %v8615_v39 = vld [vmem:[#allocation6 + $0xc8] ss:$16 sps:$4 sm:$0xff]  }
  0x73   :  { %717 = vmatprep.mubr.bf16.mxu1 %v11304_v0  ;;  %830 = vmatprep.mubr.bf16.mxu0 %v11304_v0 }
  0x75   :  { %700 = vmatpush1.bf16.msra.mxu1 %v7591_v42  ;;  %813 = vmatpush1.bf16.msra.mxu0 %v7593_v45  ;;  %v8621_v42 = vld [vmem:[#allocation8 + $0xa0] ss:$16 sps:$4 sm:$0xff]   ;;  %v8635_v45 = vld [vmem:[#allocation6 + $0x8c] ss:$16 sps:$4 sm:$0xff]  }
  0x76   :  { %911 = vmatprep.subr.bf16.mxu1 %v7652_v46  ;;  %1679 = vmatprep.subr.bf16.mxu0 %v8587_v47  ;;  %v8629_v46 = vld [vmem:[#allocation8 + $0x84] ss:$16 sps:$4 sm:$0xff]   ;;  %v8627_v47 = vld [vmem:[#allocation8 + $0x80] ss:$16 sps:$4 sm:$0xff]  }
  0x78   :  { %718 = vmatmul.mubr.bf16.vlgmr.msra.gmra.mxu1 %v9785_v43  ;;  %831 = vmatmul.mubr.bf16.vlgmr.msra.gmra.mxu0 %v9785_v43 }
  0x79   :  { %912 = vmatpush1.bf16.msra.mxu1 %v7651_v50  ;;  %727 = vmatprep.mubr.bf16.mxu1 %v11304_v0  ;;  %v8642_v50 = vld [vmem:[#allocation6 + $0x68] ss:$16 sps:$4 sm:$0xff]  }
  0x7a   :  { %840 = vmatprep.mubr.bf16.mxu0 %v11304_v0  ;;  %913 = vmatprep.subr.bf16.mxu1 %v7644_v54  ;;  %v8648_v54 = vld [vmem:[#allocation6 + $0x48] ss:$16 sps:$4 sm:$0xff]  }
  0x7b   :  { %1680 = vmatpush1.bf16.msra.mxu0 %v8585_v53  ;;  %v8638_v53 = vld [vmem:[#allocation8 + $0x44] ss:$16 sps:$4 sm:$0xff]  }
  0x7c   :  { %1681 = vmatprep.subr.bf16.mxu0 %v8590_v55  ;;  %v8653_v55 = vld [vmem:[#allocation6 + $0x2c] ss:$16 sps:$4 sm:$0xff]  }
  0x7d   :  { %914 = vmatpush1.bf16.msra.mxu1 %v7643_v56  ;;  %v8641_v56 = vld [vmem:[#allocation8 + $0x24] ss:$16 sps:$4 sm:$0xff]  }
  0x7e   :  { %915 = vmatprep.subr.bf16.mxu1 %v7636_v58  ;;  %v8639_v58 = vld [vmem:[#allocation8 + $0x20] ss:$16 sps:$4 sm:$0xff]  }
  0x7f   :  { %1682 = vmatpush1.bf16.msra.mxu0 %v8588_v57  ;;  %v8651_v57 = vld [vmem:[#allocation6 + $0x28] ss:$16 sps:$4 sm:$0xff]  }
  0x80   :  { %728 = vmatmul.mubr.bf16.gmra.mxu1 %v9799_v61  ;;  %841 = vmatmul.mubr.bf16.gmra.mxu0 %v9799_v61 }
  0x81   :  { %737 = vmatprep.mubr.bf16.mxu1 %v11304_v0  ;;  %850 = vmatprep.mubr.bf16.mxu0 %v11304_v0 }
  0x82   :  { %916 = vmatpush1.bf16.msra.mxu1 %v7635_v2  ;;  %1683 = vmatprep.subr.bf16.mxu0 %v8593_v1  ;;  %v8659_v1 = vld [vmem:[#allocation8 + $0xec] ss:$16 sps:$4 sm:$0xff]   ;;  %v9617_v2 = vld [vmem:[%s11296_s0 + $0x20] sm:$0xff]  }
  0x83   :  { %917 = vmatprep.subr.bf16.mxu1 %v7628_v6  ;;  %1684 = vmatpush1.bf16.msra.mxu0 %v8591_v63  ;;  %v8654_v63 = vld [vmem:[#allocation6 + $0x8] ss:$16 sps:$4 sm:$0xff]   ;;  %v8662_v6 = vld [vmem:[#allocation8 + $0xcc] ss:$16 sps:$4 sm:$0xff]  }
  0x84   :  { %1685 = vmatprep.subr.bf16.mxu0 %v8596_v5  ;;  %v8657_v5 = vld [vmem:[#allocation8 + $0xe8] ss:$16 sps:$4 sm:$0xff]  }
  0x86   :  { %918 = vmatpush1.bf16.msra.mxu1 %v7627_v8  ;;  %v8665_v8 = vld [vmem:[#allocation8 + $0xac] ss:$16 sps:$4 sm:$0xff]  }
  0x87   :  { %919 = vmatprep.subr.bf16.mxu1 %v7620_v11  ;;  %1686 = vmatpush1.bf16.msra.mxu0 %v8594_v7  ;;  %v8660_v7 = vld [vmem:[#allocation8 + $0xc8] ss:$16 sps:$4 sm:$0xff]  }
  0x88   :  { %738 = vmatmul.mubr.bf16.gmra.mxu1 %v9813_v16  ;;  %851 = vmatmul.mubr.bf16.gmra.mxu0 %v9813_v16  ;;  %v8666_v11 = vld [vmem:[#allocation8 + $0x88] ss:$16 sps:$4 sm:$0xff]  }
  0x89   :  { %747 = vmatprep.mubr.bf16.mxu1 %v11304_v0  ;;  %860 = vmatprep.mubr.bf16.mxu0 %v11304_v0 }
  0x8a   :  { %920 = vmatpush1.bf16.msra.mxu1 %v7619_v14  ;;  %1687 = vmatprep.subr.bf16.mxu0 %v8599_v13  ;;  %v8669_v13 = vld [vmem:[#allocation8 + $0x68] ss:$16 sps:$4 sm:$0xff]   ;;  %v8674_v14 = vld [vmem:[#allocation8 + $0x4c] ss:$16 sps:$4 sm:$0xff]  }
  0x8b   :  { %921 = vmatprep.subr.bf16.mxu1 %v7612_v20  ;;  %1688 = vmatpush1.bf16.msra.mxu0 %v8597_v12  ;;  %v8671_v12 = vld [vmem:[#allocation8 + $0x6c] ss:$16 sps:$4 sm:$0xff]   ;;  %v8675_v20 = vld [vmem:[#allocation8 + $0x28] ss:$16 sps:$4 sm:$0xff]  }
  0x8c   :  { %1689 = vmatprep.subr.bf16.mxu0 %v8602_v19  ;;  %v8677_v19 = vld [vmem:[#allocation8 + $0x2c] ss:$16 sps:$4 sm:$0xff]  }
  0x8e   :  { %922 = vmatpush1.bf16.msra.mxu1 %v7611_v22  ;;  %v8680_v22 = vld [vmem:[#allocation8 + $0xc] ss:$16 sps:$4 sm:$0xff]  }
  0x8f   :  { %923 = vmatprep.subr.bf16.mxu1 %v7604_v25  ;;  %1690 = vmatpush1.bf16.msra.mxu0 %v8600_v21  ;;  %v9900_v21 = vshrl.u32 %v164_v18, 7  ;;  %v9906_v25 = vld [vmem:[%s11298_s2] sm:$0xff] }
  0x90   :  { %748 = vmatmul.mubr.bf16.gmra.mxu1 %v9827_v34  ;;  %861 = vmatmul.mubr.bf16.gmra.mxu0 %v9827_v34 }
  0x91   :  { %757 = vmatprep.mubr.bf16.mxu1 %v11304_v0  ;;  %870 = vmatprep.mubr.bf16.mxu0 %v11304_v0  ;;  %v166_v24 = vsub.s32 0, %v9900_v21 }
  0x92   :  { %924 = vmatpush1.bf16.msra.mxu1 %v7603_v28  ;;  %1691 = vmatprep.subr.bf16.mxu0 %v8605_v27 }
  0x93   :  { %925 = vmatprep.subr.bf16.mxu1 %v7596_v30  ;;  %1692 = vmatpush1.bf16.msra.mxu0 %v8603_v26  ;;  %v170_v26 = vsub.s32 1, %v9900_v21  ;;  %v9910_v27 = vrot.slane %v9906_v25, %v166_v24  ;;  %v182_v24 = vsub.s32 4, %v9900_v21 }
  0x94   :  { %1693 = vmatprep.subr.bf16.mxu0 %v8608_v29 }
  0x95   :  { %v9913_v28 = vrot.slane %v9906_v25, %v170_v26 }
  0x96   :  { %926 = vmatpush1.bf16.msra.mxu1 %v7595_v33 }
  0x97   :  { %1694 = vmatpush1.bf16.msra.mxu0 %v8606_v31  ;;  %1722 = vmatprep.subr.bf16.mxu1 %v8611_v32 }
  0x98   :  { %758 = vmatmul.mubr.bf16.gmra.mxu1 %v9790_v44  ;;  %871 = vmatmul.mubr.bf16.gmra.mxu0 %v9790_v44  ;;  %v8609_v44 = vld [vmem:[#allocation6 + $0xe8] ss:$16 sps:$4 sm:$0xff]  }
  0x99   :  { %767 = vmatprep.mubr.bf16.mxu1 %v11304_v0  ;;  %880 = vmatprep.mubr.bf16.mxu0 %v11304_v0 }
  0x9a   :  { %2041 = vmatprep.subr.bf16.mxu0 %v8614_v36 }
  0xa0   :  { %768 = vmatmul.mubr.bf16.gmra.mxu1 %v9804_v62  ;;  %881 = vmatmul.mubr.bf16.gmra.mxu0 %v9804_v62  ;;  %v8612_v62 = vld [vmem:[#allocation8 + $0xe0] ss:$16 sps:$4 sm:$0xff]  }
  0xa1   :  { %777 = vmatprep.mubr.bf16.mxu1 %v11304_v0  ;;  %890 = vmatprep.mubr.bf16.mxu0 %v11304_v0 }
  0xa8   :  { %778 = vmatmul.mubr.bf16.gmra.mxu1 %v9818_v17  ;;  %891 = vmatmul.mubr.bf16.gmra.mxu0 %v9818_v17  ;;  %v8618_v17 = vld [vmem:[#allocation8 + $0xc0] ss:$16 sps:$4 sm:$0xff]  }
  0xa9   :  { %787 = vmatprep.mubr.bf16.mxu1 %v11304_v0  ;;  %900 = vmatprep.mubr.bf16.mxu0 %v11304_v0 }
  0xb0   :  { %788 = vmatmul.mubr.bf16.gmra.mxu1 %v9832_v35  ;;  %901 = vmatmul.mubr.bf16.gmra.mxu0 %v9832_v35  ;;  %v8624_v35 = vld [vmem:[#allocation6 + $0xa8] ss:$16 sps:$4 sm:$0xff]  }
  0xb1   :  { %943 = vmatprep.mubr.bf16.mxu1 %v11304_v0  ;;  %1711 = vmatprep.mubr.bf16.mxu0 %v11304_v0 }
  0xb8   :  { %944 = vmatmul.mubr.bf16.vlgmr.msra.gmra.mxu1 %v9785_v43  ;;  %1712 = vmatmul.mubr.bf16.vlgmr.msra.gmra.mxu0 %v11304_v0  ;;  %v8633_v43 = vld [vmem:[#allocation6 + $0x88] ss:$16 sps:$4 sm:$0xff]  }
  0xb9   :  { %1723 = vmatpush1.bf16.msra.mxu1 %v8609_v44  ;;  %953 = vmatprep.mubr.bf16.mxu1 %v11304_v0 }
  0xba   :  { %1724 = vmatprep.subr.bf16.mxu1 %v8617_v37  ;;  %2042 = vmatpush1.bf16.msra.mxu0 %v8612_v62 }
  0xbb   :  { %2043 = vmatprep.subr.bf16.mxu0 %v8620_v38  ;;  %2073 = vmatprep.mubr.bf16.mxu0 %v11304_v0 }
  0xbd   :  { %1725 = vmatpush1.bf16.msra.mxu1 %v8615_v39 }
  0xbe   :  { %2044 = vmatpush1.bf16.msra.mxu0 %v8618_v17  ;;  %1726 = vmatprep.subr.bf16.mxu1 %v8626_v40 }
  0xbf   :  { %2045 = vmatprep.subr.bf16.mxu0 %v8623_v41 }
  0xc0   :  { %954 = vmatmul.mubr.bf16.gmra.mxu1 %v9799_v61  ;;  %v8636_v61 = vld [vmem:[#allocation8 + $0x40] ss:$16 sps:$4 sm:$0xff]  }
  0xc1   :  { %963 = vmatprep.mubr.bf16.mxu1 %v11304_v0  ;;  %1727 = vmatpush1.bf16.msra.mxu1 %v8624_v35 }
  0xc2   :  { %2046 = vmatpush1.bf16.msra.mxu0 %v8621_v42  ;;  %1728 = vmatprep.subr.bf16.mxu1 %v8635_v45 }
  0xc3   :  { %2047 = vmatprep.subr.bf16.mxu0 %v8629_v46 }
  0xc5   :  { %1729 = vmatpush1.bf16.msra.mxu1 %v8633_v43 }
  0xc6   :  { %2048 = vmatpush1.bf16.msra.mxu0 %v8627_v47  ;;  %1730 = vmatprep.subr.bf16.mxu1 %v8644_v48 }
  0xc7   :  { %2049 = vmatprep.subr.bf16.mxu0 %v8632_v49 }
  0xc8   :  { %964 = vmatmul.mubr.bf16.gmra.mxu1 %v9813_v16  ;;  %v8645_v16 = vld [vmem:[#allocation8] ss:$16 sps:$4 sm:$0xff]  }
  0xc9   :  { %973 = vmatprep.mubr.bf16.mxu1 %v11304_v0  ;;  %1731 = vmatpush1.bf16.msra.mxu1 %v8642_v50 }
  0xca   :  { %2050 = vmatpush1.bf16.msra.mxu0 %v8630_v51  ;;  %1732 = vmatprep.subr.bf16.mxu1 %v8650_v52 }
  0xcb   :  { %2051 = vmatprep.subr.bf16.mxu0 %v8638_v53 }
  0xcd   :  { %1733 = vmatpush1.bf16.msra.mxu1 %v8648_v54 }
  0xce   :  { %2052 = vmatpush1.bf16.msra.mxu0 %v8636_v61  ;;  %1734 = vmatprep.subr.bf16.mxu1 %v8653_v55 }
  0xcf   :  { %2053 = vmatprep.subr.bf16.mxu0 %v8641_v56 }
  0xd0   :  { %974 = vmatmul.mubr.bf16.gmra.mxu1 %v9827_v34  ;;  %v9618_v34 = vld [vmem:[%s11296_s0 + $0x28] sm:$0xff]  }
  0xd1   :  { %983 = vmatprep.mubr.bf16.mxu1 %v11304_v0  ;;  %1735 = vmatpush1.bf16.msra.mxu1 %v8651_v57 }
  0xd2   :  { %2054 = vmatpush1.bf16.msra.mxu0 %v8639_v58  ;;  %1736 = vmatprep.subr.bf16.mxu1 %v8656_v59 }
  0xd3   :  { %2055 = vmatprep.subr.bf16.mxu0 %v8647_v60 }
  0xd5   :  { %1737 = vmatpush1.bf16.msra.mxu1 %v8654_v63 }
  0xd6   :  { %2056 = vmatpush1.bf16.msra.mxu0 %v8645_v16  ;;  %2084 = vmatprep.subr.bf16.mxu1 %v8659_v1 }
  0xd8   :  { %984 = vmatmul.mubr.bf16.gmra.mxu1 %v9617_v2 }
  0xd9   :  { %993 = vmatprep.mubr.bf16.mxu1 %v11304_v0  ;;  %2074 = vmatmul.mubr.bf16.vlgmr.msra.gmra.mxu0 %v11304_v0 }
  0xda   :  { %2435 = vmatprep.mubr.bf16.mxu0 %v11304_v0 }
  0xe0   :  { %994 = vmatmul.mubr.bf16.gmra.mxu1 %v9618_v34 }
  0xe1   :  { %1003 = vmatprep.mubr.bf16.mxu1 %v11304_v0 }
  0xe8   :  { %1004 = vmatmul.mubr.bf16.gmra.mxu1 %v9619_v3 }
  0xe9   :  { %1013 = vmatprep.mubr.bf16.mxu1 %v11304_v0 }
  0xf0   :  { %1014 = vmatmul.mubr.bf16.gmra.mxu1 %v9620_v4 }
  0xf1   :  { %1754 = vmatprep.mubr.bf16.mxu1 %v11304_v0 }
  0xf8   :  { %1755 = vmatmul.mubr.bf16.vlgmr.msra.gmra.mxu1 %v11304_v0 }
  0xf9   :  { %2085 = vmatpush1.bf16.msra.mxu1 %v8657_v5  ;;  %2116 = vmatprep.mubr.bf16.mxu1 %v11304_v0 }
  0xfa   :  { %2086 = vmatprep.subr.bf16.mxu1 %v8662_v6 }
  0xfd   :  { %2087 = vmatpush1.bf16.msra.mxu1 %v8660_v7 }
  0xfe   :  { %2088 = vmatprep.subr.bf16.mxu1 %v8665_v8 }
 0x101   :  { %2089 = vmatpush1.bf16.msra.mxu1 %v8663_v9 }
 0x102   :  { %2090 = vmatprep.subr.bf16.mxu1 %v8668_v10 }
 0x105   :  { %2091 = vmatpush1.bf16.msra.mxu1 %v8666_v11 }
 0x106   :  { %2092 = vmatprep.subr.bf16.mxu1 %v8671_v12 }
 0x109   :  { %2093 = vmatpush1.bf16.msra.mxu1 %v8669_v13 }
 0x10a   :  { %2094 = vmatprep.subr.bf16.mxu1 %v8674_v14 }
 0x10d   :  { %2095 = vmatpush1.bf16.msra.mxu1 %v8672_v15 }
 0x10e   :  { %2096 = vmatprep.subr.bf16.mxu1 %v8677_v19 }
 0x111   :  { %2097 = vmatpush1.bf16.msra.mxu1 %v8675_v20 }
 0x112   :  { %2098 = vmatprep.subr.bf16.mxu1 %v8680_v22 }
 0x115   :  { %2099 = vmatpush1.bf16.msra.mxu1 %v8678_v23 }
 0x118   :  { %2117 = vmatmul.mubr.bf16.vlgmr.msra.gmra.mxu1 %v11304_v0  ;;  %v606_v29 = vpop.f32.mrf.mxu0  ;;  %v646_v30 = vpop.f32.mrf.mxu1 }
 0x119   :  { %v607_v31 = vadd.f32 %v606_v29, %v9910_v27  ;;  %v647_v32 = vadd.f32 %v646_v30, %v9910_v27  ;;  %2478 = vmatprep.mubr.bf16.mxu1 %v11304_v0 }
 0x11a   :  { %v608_v33 = vpop.f32.mrf.mxu0  ;;  %v648_v36 = vpop.f32.mrf.mxu1 }
 0x11b   :  { %v609_v44 = vadd.f32 %v608_v33, %v9913_v28  ;;  %v649_v62 = vadd.f32 %v648_v36, %v9913_v28  ;;  %v174_v36 = vsub.s32 2, %v9900_v21 }
 0x11c   :  { %v9921_v37 = vpop.f32.mrf.mxu0  ;;  %v650_v38 = vpop.f32.mrf.mxu1 }
 0x11d   :  { %v9923_v39 = vpack.c.bf16 %v609_v44, %v607_v31  ;;  %v9925_v17 = vpack.c.bf16 %v649_v62, %v647_v32  ;;  %v651_v40 = vadd.f32 %v650_v38, %v9910_v27  ;;  %v178_v38 = vsub.s32 3, %v9900_v21 }
 0x11e   :  { %v9928_v41 = vpop.f32.mrf.mxu0  ;;  %v652_v35 = vpop.f32.mrf.mxu1 }
 0x11f   :  { %11398 = vst [vmem:[#allocation14_spill] sm:$0xff] %v9925_v17  ;;  %v653_v42 = vadd.f32 %v652_v35, %v9913_v28 }
 0x120   :  { %v616_v45 = vpop.f32.mrf.mxu0  ;;  %v656_v46 = vpop.f32.mrf.mxu1 }
 0x121   :  { %v9931_v43 = vpack.c.bf16 %v653_v42, %v651_v40  ;;  %v617_v47 = vadd.f32 %v616_v45, %v9910_v27  ;;  %v657_v48 = vadd.f32 %v656_v46, %v9910_v27  ;;  %v186_v40 = vsub.s32 5, %v9900_v21 }
 0x122   :  { %v618_v49 = vpop.f32.mrf.mxu0  ;;  %v658_v50 = vpop.f32.mrf.mxu1  ;;  %v9974_v45 = vrot.slane %v9906_v25, %v182_v24 }
 0x123   :  { %11399 = vst [vmem:[#allocation15_spill] sm:$0xff] %v9931_v43  ;;  %v619_v51 = vadd.f32 %v618_v49, %v9913_v28  ;;  %v659_v52 = vadd.f32 %v658_v50, %v9913_v28 }
 0x124   :  { %v620_v53 = vpop.f32.mrf.mxu0  ;;  %v660_v54 = vpop.f32.mrf.mxu1 }
 0x125   :  { %v9937_v61 = vpack.c.bf16 %v619_v51, %v617_v47  ;;  %v9939_v55 = vpack.c.bf16 %v659_v52, %v657_v48  ;;  %v621_v56 = vadd.f32 %v620_v53, %v9910_v27  ;;  %v661_v57 = vadd.f32 %v660_v54, %v9910_v27 }
 0x126   :  { %v622_v58 = vpop.f32.mrf.mxu0  ;;  %v662_v59 = vpop.f32.mrf.mxu1  ;;  %v9983_v52 = vrot.slane %v9906_v25, %v174_v36  ;;  %v8683_v36 = vld [vmem:[#allocation6 + $0xe4] ss:$16 sps:$4 sm:$0xff]  }
 0x127   :  { %11400 = vst [vmem:[#allocation16_spill] sm:$0xff] %v9937_v61  ;;  %11401 = vst [vmem:[#allocation17_spill] sm:$0xff] %v9939_v55  ;;  %v623_v60 = vadd.f32 %v622_v58, %v9913_v28  ;;  %v663_v63 = vadd.f32 %v662_v59, %v9913_v28  ;;  %2403 = vmatprep.subr.bf16.mxu0 %v8683_v36  ;;  %v10051_v36 = vld [vmem:[#allocation6 + $0xa8] ss:$16 sps:$4 sm:$0xff]  }
 0x128   :  { %v626_v16 = vpop.f32.mrf.mxu0  ;;  %v666_v1 = vpop.f32.mrf.mxu1 }
 0x129   :  { %v9945_v2 = vpack.c.bf16 %v623_v60, %v621_v56  ;;  %v9947_v34 = vpack.c.bf16 %v663_v63, %v661_v57  ;;  %v627_v3 = vadd.f32 %v626_v16, %v9910_v27  ;;  %v667_v4 = vadd.f32 %v666_v1, %v9910_v27 }
 0x12a   :  { %v628_v5 = vpop.f32.mrf.mxu0  ;;  %v668_v6 = vpop.f32.mrf.mxu1  ;;  %v9988_v56 = vrot.slane %v9906_v25, %v178_v38  ;;  %v9991_v57 = vrot.slane %v9906_v25, %v186_v40  ;;  %v8681_v40 = vld [vmem:[#allocation6 + $0xe0] ss:$16 sps:$4 sm:$0xff]  }
 0x12b   :  { %11402 = vst [vmem:[#allocation18_spill] sm:$0xff] %v9945_v2  ;;  %11403 = vst [vmem:[#allocation19_spill] sm:$0xff] %v9947_v34  ;;  %v629_v7 = vadd.f32 %v628_v5, %v9913_v28  ;;  %v669_v8 = vadd.f32 %v668_v6, %v9913_v28  ;;  %2404 = vmatpush1.bf16.msra.mxu0 %v8681_v40 }
 0x12c   :  { %v630_v9 = vpop.f32.mrf.mxu0  ;;  %v670_v10 = vpop.f32.mrf.mxu1 }
 0x12d   :  { %v9953_v11 = vpack.c.bf16 %v629_v7, %v627_v3  ;;  %v9955_v12 = vpack.c.bf16 %v669_v8, %v667_v4  ;;  %v631_v13 = vadd.f32 %v630_v9, %v9910_v27  ;;  %v671_v14 = vadd.f32 %v670_v10, %v9910_v27 }
 0x12e   :  { %v632_v15 = vpop.f32.mrf.mxu0  ;;  %v672_v18 = vpop.f32.mrf.mxu1 }
 0x12f   :  { %11404 = vst [vmem:[#allocation20_spill] sm:$0xff] %v9953_v11  ;;  %11405 = vst [vmem:[#allocation21_spill] sm:$0xff] %v9955_v12  ;;  %v633_v19 = vadd.f32 %v632_v15, %v9913_v28  ;;  %v673_v20 = vadd.f32 %v672_v18, %v9913_v28 }
 0x130   :  { %v636_v22 = vpop.f32.mrf.mxu0  ;;  %v676_v23 = vpop.f32.mrf.mxu1 }
 0x131   :  { %v9962_v26 = vpack.c.bf16 %v633_v19, %v631_v13  ;;  %v9964_v29 = vpack.c.bf16 %v673_v20, %v671_v14  ;;  %v637_v30 = vadd.f32 %v636_v22, %v9910_v27  ;;  %v677_v31 = vadd.f32 %v676_v23, %v9910_v27 }
 0x132   :  { %v638_v32 = vpop.f32.mrf.mxu0  ;;  %v678_v33 = vpop.f32.mrf.mxu1 }
 0x133   :  { %11406 = vst [vmem:[#allocation22_spill] sm:$0xff] %v9962_v26  ;;  %11407 = vst [vmem:[#allocation23_spill] sm:$0xff] %v9964_v29  ;;  %v639_v44 = vadd.f32 %v638_v32, %v9913_v28  ;;  %v679_v62 = vadd.f32 %v678_v33, %v9913_v28 }
 0x134   :  { %v640_v35 = vpop.f32.mrf.mxu0  ;;  %v680_v42 = vpop.f32.mrf.mxu1 }
 0x135   :  { %v9976_v46 = vpack.c.bf16 %v639_v44, %v637_v30  ;;  %v9978_v47 = vpack.c.bf16 %v679_v62, %v677_v31  ;;  %v641_v48 = vadd.f32 %v640_v35, %v9910_v27  ;;  %v681_v49 = vadd.f32 %v680_v42, %v9910_v27  ;;  %v8686_v44 = vld [vmem:[#allocation6 + $0xec] ss:$16 sps:$4 sm:$0xff]   ;;  %v8684_v35 = vld [vmem:[#allocation6 + $0xe8] ss:$16 sps:$4 sm:$0xff]  }
 0x136   :  { %v642_v50 = vpop.f32.mrf.mxu0  ;;  %v682_v51 = vpop.f32.mrf.mxu1  ;;  %2446 = vmatprep.subr.bf16.mxu1 %v8686_v44 }
 0x137   :  { %11408 = vst [vmem:[#allocation24_spill] sm:$0xff] %v9976_v46  ;;  %11409 = vst [vmem:[#allocation25_spill] sm:$0xff] %v9978_v47  ;;  %v643_v53 = vadd.f32 %v642_v50, %v9913_v28  ;;  %v683_v54 = vadd.f32 %v682_v51, %v9913_v28  ;;  %2447 = vmatpush1.bf16.msra.mxu1 %v8684_v35 }
 0x138   :  { %v719_v58 = vpop.f32.mrf.mxu1  ;;  %v832_v59 = vpop.f32.mrf.mxu0 }
 0x139   :  { %v9993_v60 = vpack.c.bf16 %v643_v53, %v641_v48  ;;  %v9995_v63 = vpack.c.bf16 %v683_v54, %v681_v49  ;;  %v833_v16 = vadd.f32 %v832_v59, %v9974_v45  ;;  %v720_v4 = vadd.f32 %v719_v58, %v9983_v52  ;;  %v10025_v59 = vld [vmem:[#allocation6 + $0xc4] ss:$16 sps:$4 sm:$0xff]  }
 0x13a   :  { %v721_v1 = vpop.f32.mrf.mxu1  ;;  %v834_v3 = vpop.f32.mrf.mxu0  ;;  %2405 = vmatprep.subr.bf16.mxu0 %v10025_v59 }
 0x13b   :  { %11410 = vst [vmem:[#allocation26_spill] sm:$0xff] %v9993_v60  ;;  %11411 = vst [vmem:[#allocation27_spill] sm:$0xff] %v9995_v63  ;;  %v722_v5 = vadd.f32 %v721_v1, %v9988_v56  ;;  %v835_v6 = vadd.f32 %v834_v3, %v9991_v57 }
 0x13c   :  { %v10001_v7 = vpop.f32.mrf.mxu1  ;;  %v836_v8 = vpop.f32.mrf.mxu0 }
 0x13d   :  { %v10003_v9 = vpack.c.bf16 %v722_v5, %v720_v4  ;;  %v10005_v10 = vpack.c.bf16 %v835_v6, %v833_v16  ;;  %v837_v13 = vadd.f32 %v836_v8, %v9974_v45  ;;  %v10027_v16 = vld [vmem:[#allocation6 + $0xcc] ss:$16 sps:$4 sm:$0xff]   ;;  %v10029_v4 = vld [vmem:[#allocation6 + $0xc0] ss:$16 sps:$4 sm:$0xff]   ;;  %v10031_v5 = vld [vmem:[#allocation6 + $0xc8] ss:$16 sps:$4 sm:$0xff]  }
 0x13e   :  { %v10008_v14 = vpop.f32.mrf.mxu1  ;;  %v838_v15 = vpop.f32.mrf.mxu0  ;;  %2448 = vmatprep.subr.bf16.mxu1 %v10027_v16  ;;  %2406 = vmatpush1.bf16.msra.mxu0 %v10029_v4 }
 0x13f   :  { %11412 = vst [vmem:[#allocation28_spill] sm:$0xff] %v10005_v10  ;;  %v839_v18 = vadd.f32 %v838_v15, %v9991_v57  ;;  %2449 = vmatpush1.bf16.msra.mxu1 %v10031_v5 }
 0x140   :  { %v729_v19 = vpop.f32.mrf.mxu1  ;;  %v842_v20 = vpop.f32.mrf.mxu0 }
 0x141   :  { %v10011_v22 = vpack.c.bf16 %v839_v18, %v837_v13  ;;  %v730_v23 = vadd.f32 %v729_v19, %v9983_v52  ;;  %v843_v24 = vadd.f32 %v842_v20, %v9974_v45 }
 0x142   :  { %v731_v30 = vpop.f32.mrf.mxu1  ;;  %v844_v31 = vpop.f32.mrf.mxu0 }
 0x143   :  { %11413 = vst [vmem:[#allocation29_spill] sm:$0xff] %v10011_v22  ;;  %v732_v32 = vadd.f32 %v731_v30, %v9988_v56  ;;  %v845_v33 = vadd.f32 %v844_v31, %v9991_v57  ;;  %v10047_v30 = vld [vmem:[#allocation6 + $0xac] ss:$16 sps:$4 sm:$0xff]  }
 0x144   :  { %v733_v62 = vpop.f32.mrf.mxu1  ;;  %v846_v38 = vpop.f32.mrf.mxu0  ;;  %2450 = vmatprep.subr.bf16.mxu1 %v10047_v30 }
 0x145   :  { %v10017_v42 = vpack.c.bf16 %v732_v32, %v730_v23  ;;  %v10019_v48 = vpack.c.bf16 %v845_v33, %v843_v24  ;;  %v734_v49 = vadd.f32 %v733_v62, %v9983_v52  ;;  %v847_v50 = vadd.f32 %v846_v38, %v9974_v45  ;;  %v10045_v24 = vld [vmem:[#allocation6 + $0xa4] ss:$16 sps:$4 sm:$0xff]   ;;  %v10049_v33 = vld [vmem:[#allocation6 + $0xa0] ss:$16 sps:$4 sm:$0xff]   ;;  %2451 = vmatpush1.bf16.msra.mxu1 %v10051_v36 }
 0x146   :  { %v735_v51 = vpop.f32.mrf.mxu1  ;;  %v848_v53 = vpop.f32.mrf.mxu0  ;;  %2407 = vmatprep.subr.bf16.mxu0 %v10045_v24 }
 0x147   :  { %11414 = vst [vmem:[#allocation30_spill] sm:$0xff] %v10017_v42  ;;  %11415 = vst [vmem:[#allocation31_spill] sm:$0xff] %v10019_v48  ;;  %v736_v54 = vadd.f32 %v735_v51, %v9988_v56  ;;  %v849_v58 = vadd.f32 %v848_v53, %v9991_v57  ;;  %2408 = vmatpush1.bf16.msra.mxu0 %v10049_v33  ;;  %v10065_v53 = vld [vmem:[#allocation6 + $0x84] ss:$16 sps:$4 sm:$0xff]  }
 0x148   :  { %v739_v1 = vpop.f32.mrf.mxu1  ;;  %v852_v3 = vpop.f32.mrf.mxu0  ;;  %2409 = vmatprep.subr.bf16.mxu0 %v10065_v53 }
 0x149   :  { %v10033_v6 = vpack.c.bf16 %v736_v54, %v734_v49  ;;  %v10035_v8 = vpack.c.bf16 %v849_v58, %v847_v50  ;;  %v740_v13 = vadd.f32 %v739_v1, %v9983_v52  ;;  %v853_v15 = vadd.f32 %v852_v3, %v9974_v45  ;;  %v10067_v54 = vld [vmem:[#allocation6 + $0x8c] ss:$16 sps:$4 sm:$0xff]   ;;  %v10069_v3 = vld [vmem:[#allocation6 + $0x80] ss:$16 sps:$4 sm:$0xff]  }
 0x14a   :  { %v741_v18 = vpop.f32.mrf.mxu1  ;;  %v854_v19 = vpop.f32.mrf.mxu0  ;;  %2452 = vmatprep.subr.bf16.mxu1 %v10067_v54 }
 0x14b   :  { %11416 = vst [vmem:[#allocation32_spill] sm:$0xff] %v10033_v6  ;;  %11417 = vst [vmem:[#allocation33_spill] sm:$0xff] %v10035_v8  ;;  %v742_v20 = vadd.f32 %v741_v18, %v9988_v56  ;;  %v855_v23 = vadd.f32 %v854_v19, %v9991_v57  ;;  %2410 = vmatpush1.bf16.msra.mxu0 %v10069_v3 }
 0x14c   :  { %v743_v31 = vpop.f32.mrf.mxu1  ;;  %v856_v32 = vpop.f32.mrf.mxu0 }
 0x14d   :  { %v10053_v44 = vpack.c.bf16 %v742_v20, %v740_v13  ;;  %v10055_v62 = vpack.c.bf16 %v855_v23, %v853_v15  ;;  %v744_v38 = vadd.f32 %v743_v31, %v9983_v52  ;;  %v857_v40 = vadd.f32 %v856_v32, %v9974_v45  ;;  %v10071_v13 = vld [vmem:[#allocation6 + $0x88] ss:$16 sps:$4 sm:$0xff]  }
 0x14e   :  { %v745_v35 = vpop.f32.mrf.mxu1  ;;  %v858_v49 = vpop.f32.mrf.mxu0  ;;  %2453 = vmatpush1.bf16.msra.mxu1 %v10071_v13 }
 0x14f   :  { %11418 = vst [vmem:[#allocation34_spill] sm:$0xff] %v10053_v44  ;;  %11419 = vst [vmem:[#allocation35_spill] sm:$0xff] %v10055_v62  ;;  %v746_v50 = vadd.f32 %v745_v35, %v9988_v56  ;;  %v859_v51 = vadd.f32 %v858_v49, %v9991_v57  ;;  %v10089_v49 = vld [vmem:[#allocation6 + $0x68] ss:$16 sps:$4 sm:$0xff]  }
 0x150   :  { %v749_v58 = vpop.f32.mrf.mxu1  ;;  %v862_v1 = vpop.f32.mrf.mxu0 }
 0x151   :  { %v10073_v15 = vpack.c.bf16 %v746_v50, %v744_v38  ;;  %v10075_v18 = vpack.c.bf16 %v859_v51, %v857_v40  ;;  %v750_v19 = vadd.f32 %v749_v58, %v9983_v52  ;;  %v863_v20 = vadd.f32 %v862_v1, %v9974_v45  ;;  %v10085_v38 = vld [vmem:[#allocation6 + $0x60] ss:$16 sps:$4 sm:$0xff]   ;;  %v10087_v40 = vld [vmem:[#allocation6 + $0x64] ss:$16 sps:$4 sm:$0xff]   ;;  %v10091_v58 = vld [vmem:[#allocation6 + $0x6c] ss:$16 sps:$4 sm:$0xff]  }
 0x152   :  { %v751_v23 = vpop.f32.mrf.mxu1  ;;  %v864_v31 = vpop.f32.mrf.mxu0  ;;  %2411 = vmatprep.subr.bf16.mxu0 %v10087_v40  ;;  %2454 = vmatprep.subr.bf16.mxu1 %v10091_v58 }
 0x153   :  { %11420 = vst [vmem:[#allocation36_spill] sm:$0xff] %v10073_v15  ;;  %11421 = vst [vmem:[#allocation37_spill] sm:$0xff] %v10075_v18  ;;  %v752_v32 = vadd.f32 %v751_v23, %v9988_v56  ;;  %v865_v35 = vadd.f32 %v864_v31, %v9991_v57  ;;  %2412 = vmatpush1.bf16.msra.mxu0 %v10085_v38  ;;  %2455 = vmatpush1.bf16.msra.mxu1 %v10089_v49 }
 0x154   :  { %v753_v50 = vpop.f32.mrf.mxu1  ;;  %v866_v51 = vpop.f32.mrf.mxu0 }
 0x155   :  { %v10093_v1 = vpack.c.bf16 %v752_v32, %v750_v19  ;;  %v10095_v0 = vpack.c.bf16 %v865_v35, %v863_v20  ;;  %v754_v23 = vadd.f32 %v753_v50, %v9983_v52  ;;  %v867_v31 = vadd.f32 %v866_v51, %v9974_v45  ;;  %v10105_v19 = vld [vmem:[#allocation6 + $0x44] ss:$16 sps:$4 sm:$0xff]   ;;  %v10107_v20 = vld [vmem:[#allocation6 + $0x4c] ss:$16 sps:$4 sm:$0xff]   ;;  %v10109_v50 = vld [vmem:[#allocation6 + $0x40] ss:$16 sps:$4 sm:$0xff]  }
 0x156   :  { %v755_v22 = vpop.f32.mrf.mxu1  ;;  %v868_v10 = vpop.f32.mrf.mxu0  ;;  %v10111_v51 = vld [vmem:[#allocation6 + $0x48] ss:$16 sps:$4 sm:$0xff]   ;;  %2413 = vmatprep.subr.bf16.mxu0 %v10105_v19  ;;  %2456 = vmatprep.subr.bf16.mxu1 %v10107_v20 }
 0x157   :  { %11422 = vst [vmem:[#allocation38_spill] sm:$0xff] %v10093_v1  ;;  %11423 = vst [vmem:[#allocation39_spill] sm:$0xff] %v10095_v0  ;;  %v756_v63 = vadd.f32 %v755_v22, %v9988_v56  ;;  %v869_v47 = vadd.f32 %v868_v10, %v9991_v57  ;;  %2414 = vmatpush1.bf16.msra.mxu0 %v10109_v50  ;;  %2457 = vmatpush1.bf16.msra.mxu1 %v10111_v51 }
 0x158   :  { %v759_v32 = vpop.f32.mrf.mxu1  ;;  %v872_v35 = vpop.f32.mrf.mxu0 }
 0x159   :  { %v10113_v8 = vpack.c.bf16 %v756_v63, %v754_v23  ;;  %v10115_v48 = vpack.c.bf16 %v869_v47, %v867_v31  ;;  %v760_v22 = vadd.f32 %v759_v32, %v9983_v52  ;;  %v873_v10 = vadd.f32 %v872_v35, %v9974_v45  ;;  %v10125_v23 = vld [vmem:[#allocation6 + $0x24] ss:$16 sps:$4 sm:$0xff]   ;;  %v10127_v31 = vld [vmem:[#allocation6 + $0x2c] ss:$16 sps:$4 sm:$0xff]  }
 0x15a   :  { %v761_v29 = vpop.f32.mrf.mxu1  ;;  %v874_v12 = vpop.f32.mrf.mxu0  ;;  %2415 = vmatprep.subr.bf16.mxu0 %v10125_v23  ;;  %2458 = vmatprep.subr.bf16.mxu1 %v10127_v31 }
 0x15b   :  { %11424 = vst [vmem:[#allocation40_spill] sm:$0xff] %v10113_v8  ;;  %11425 = vst [vmem:[#allocation41_spill] sm:$0xff] %v10115_v48  ;;  %v762_v18 = vadd.f32 %v761_v29, %v9988_v56  ;;  %v875_v62 = vadd.f32 %v874_v12, %v9991_v57  ;;  %v10135_v48 = vld [vmem:[#allocation6 + $0x20] ss:$16 sps:$4 sm:$0xff]   ;;  %v10137_v29 = vld [vmem:[#allocation6 + $0x28] ss:$16 sps:$4 sm:$0xff]  }
 0x15c   :  { %v763_v47 = vpop.f32.mrf.mxu1  ;;  %v876_v63 = vpop.f32.mrf.mxu0  ;;  %2416 = vmatpush1.bf16.msra.mxu0 %v10135_v48  ;;  %2459 = vmatpush1.bf16.msra.mxu1 %v10137_v29 }
 0x15d   :  { %v10129_v32 = vpack.c.bf16 %v762_v18, %v760_v22  ;;  %v10131_v35 = vpack.c.bf16 %v875_v62, %v873_v10  ;;  %v764_v34 = vadd.f32 %v763_v47, %v9983_v52  ;;  %v877_v55 = vadd.f32 %v876_v63, %v9974_v45  ;;  %v10145_v10 = vld [vmem:[#allocation6 + $0x4] ss:$16 sps:$4 sm:$0xff]   ;;  %v10147_v47 = vld [vmem:[#allocation6 + $0xc] ss:$16 sps:$4 sm:$0xff]  }
 0x15e   :  { %v765_v12 = vpop.f32.mrf.mxu1  ;;  %v878_v0 = vpop.f32.mrf.mxu0  ;;  %2417 = vmatprep.subr.bf16.mxu0 %v10145_v10  ;;  %2460 = vmatprep.subr.bf16.mxu1 %v10147_v47 }
 0x15f   :  { %11426 = vst [vmem:[#allocation42_spill] sm:$0xff] %v10129_v32  ;;  %11427 = vst [vmem:[#allocation43_spill] sm:$0xff] %v10131_v35  ;;  %v766_v43 = vadd.f32 %v765_v12, %v9988_v56  ;;  %v879_v18 = vadd.f32 %v878_v0, %v9991_v57  ;;  %v10155_v35 = vld [vmem:[#allocation6] ss:$16 sps:$4 sm:$0xff]   ;;  %v10157_v0 = vld [vmem:[#allocation6 + $0x8] ss:$16 sps:$4 sm:$0xff]  }
 0x160   :  { %v769_v62 = vpop.f32.mrf.mxu1  ;;  %v882_v22 = vpop.f32.mrf.mxu0  ;;  %11430 = vst [vmem:[#allocation46_spill] sm:$0xff] %v10157_v0  ;;  %2418 = vmatpush1.bf16.msra.mxu0 %v10155_v35  ;;  %2461 = vmatpush1.bf16.msra.mxu1 %v10157_v0 }
 0x161   :  { %v10149_v63 = vpack.c.bf16 %v766_v43, %v764_v34  ;;  %v10151_v32 = vpack.c.bf16 %v879_v18, %v877_v55  ;;  %v770_v17 = vadd.f32 %v769_v62, %v9983_v52  ;;  %v883_v12 = vadd.f32 %v882_v22, %v9974_v45  ;;  %v10165_v18 = vld [vmem:[#allocation8 + $0xe4] ss:$16 sps:$4 sm:$0xff]   ;;  %v10167_v62 = vld [vmem:[#allocation8 + $0xec] ss:$16 sps:$4 sm:$0xff]  }
 0x162   :  { %v771_v8 = vpop.f32.mrf.mxu1  ;;  %v884_v1 = vpop.f32.mrf.mxu0  ;;  %11431 = vst [vmem:[#allocation47_spill] sm:$0xff] %v10165_v18  ;;  %11432 = vst [vmem:[#allocation48_spill] sm:$0xff] %v10167_v62  ;;  %2765 = vmatprep.subr.bf16.mxu0 %v10165_v18  ;;  %2808 = vmatprep.subr.bf16.mxu1 %v10167_v62 }
 0x163   :  { %11428 = vst [vmem:[#allocation44_spill] sm:$0xff] %v10149_v63  ;;  %11429 = vst [vmem:[#allocation45_spill] sm:$0xff] %v10151_v32  ;;  %v772_v60 = vadd.f32 %v771_v8, %v9988_v56  ;;  %v885_v43 = vadd.f32 %v884_v1, %v9991_v57 }
 0x164   :  { %v773_v55 = vpop.f32.mrf.mxu1  ;;  %v886_v34 = vpop.f32.mrf.mxu0 }
 0x165   :  { %v10169_v22 = vpack.c.bf16 %v772_v60, %v770_v17  ;;  %v10171_v63 = vpack.c.bf16 %v885_v43, %v883_v12  ;;  %v774_v32 = vadd.f32 %v773_v55, %v9983_v52  ;;  %v887_v8 = vadd.f32 %v886_v34, %v9974_v45 }
 0x166   :  { %v775_v46 = vpop.f32.mrf.mxu1  ;;  %v888_v1 = vpop.f32.mrf.mxu0 }
 0x167   :  { %11433 = vst [vmem:[#allocation49_spill] sm:$0xff] %v10169_v22  ;;  %11434 = vst [vmem:[#allocation50_spill] sm:$0xff] %v10171_v63  ;;  %v776_v15 = vadd.f32 %v775_v46, %v9988_v56  ;;  %v889_v44 = vadd.f32 %v888_v1, %v9991_v57 }
 0x168   :  { %v779_v26 = vpop.f32.mrf.mxu1  ;;  %v892_v11 = vpop.f32.mrf.mxu0 }
 0x169   :  { %v10179_v17 = vpack.c.bf16 %v776_v15, %v774_v32  ;;  %v10181_v60 = vpack.c.bf16 %v889_v44, %v887_v8  ;;  %v780_v12 = vadd.f32 %v779_v26, %v9983_v52  ;;  %v893_v43 = vadd.f32 %v892_v11, %v9974_v45 }
 0x16a   :  { %v781_v55 = vpop.f32.mrf.mxu1  ;;  %v894_v34 = vpop.f32.mrf.mxu0 }
 0x16b   :  { %11435 = vst [vmem:[#allocation51_spill] sm:$0xff] %v10179_v17  ;;  %11436 = vst [vmem:[#allocation52_spill] sm:$0xff] %v10181_v60  ;;  %v782_v22 = vadd.f32 %v781_v55, %v9988_v56  ;;  %v895_v63 = vadd.f32 %v894_v34, %v9991_v57 }
 0x16c   :  { %v783_v6 = vpop.f32.mrf.mxu1  ;;  %v896_v46 = vpop.f32.mrf.mxu0 }
 0x16d   :  { %v10187_v42 = vpack.c.bf16 %v782_v22, %v780_v12  ;;  %v10189_v1 = vpack.c.bf16 %v895_v63, %v893_v43  ;;  %v784_v15 = vadd.f32 %v783_v6, %v9983_v52  ;;  %v897_v44 = vadd.f32 %v896_v46, %v9974_v45 }
 0x16e   :  { %v785_v32 = vpop.f32.mrf.mxu1  ;;  %v898_v26 = vpop.f32.mrf.mxu0  ;;  %v190_v63 = vsub.s32 6, %v9900_v21  ;;  %v194_v43 = vsub.s32 7, %v9900_v21 }
 0x16f   :  { %11437 = vst [vmem:[#allocation53_spill] sm:$0xff] %v10187_v42  ;;  %11438 = vst [vmem:[#allocation54_spill] sm:$0xff] %v10189_v1  ;;  %v786_v11 = vadd.f32 %v785_v32, %v9988_v56  ;;  %v899_v8 = vadd.f32 %v898_v26, %v9991_v57 }
 0x170   :  { %v789_v17 = vpop.f32.mrf.mxu1  ;;  %v10207_v26 = vrot.slane %v9906_v25, %v190_v63 }
 0x171   :  { %v10195_v55 = vpack.c.bf16 %v786_v11, %v784_v15  ;;  %v10197_v34 = vpack.c.bf16 %v899_v8, %v897_v44  ;;  %v790_v22 = vadd.f32 %v789_v17, %v9983_v52  ;;  %v10211_v17 = vrot.slane %v9906_v25, %v194_v43 }
 0x172   :  { %v791_v12 = vpop.f32.mrf.mxu1 }
 0x173   :  { %11439 = vst [vmem:[#allocation55_spill] sm:$0xff] %v10195_v55  ;;  %11440 = vst [vmem:[#allocation56_spill] sm:$0xff] %v10197_v34  ;;  %v792_v6 = vadd.f32 %v791_v12, %v9988_v56 }
 0x174   :  { %v793_v46 = vpop.f32.mrf.mxu1 }
 0x175   :  { %v10203_v42 = vpack.c.bf16 %v792_v6, %v790_v22  ;;  %v794_v32 = vadd.f32 %v793_v46, %v9983_v52 }
 0x176   :  { %v795_v15 = vpop.f32.mrf.mxu1 }
 0x177   :  { %11441 = vst [vmem:[#allocation57_spill] sm:$0xff] %v10203_v42  ;;  %v796_v44 = vadd.f32 %v795_v15, %v9988_v56 }
 0x178   :  { %v945_v11 = vpop.f32.mrf.mxu1 }
 0x179   :  { %v10213_v8 = vpack.c.bf16 %v796_v44, %v794_v32  ;;  %v946_v12 = vadd.f32 %v945_v11, %v10207_v26  ;;  %v10224_v32 = vpop.f32.mrf.mxu0 }
 0x17a   :  { %v947_v21 = vpop.f32.mrf.mxu1 }
 0x17b   :  { %11442 = vst [vmem:[#allocation58_spill] sm:$0xff] %v10213_v8  ;;  %v948_v22 = vadd.f32 %v947_v21, %v10211_v17 }
 0x17c   :  { %v949_v6 = vpop.f32.mrf.mxu1 }
 0x17d   :  { %v10217_v42 = vpack.c.bf16 %v948_v22, %v946_v12  ;;  %v950_v63 = vadd.f32 %v949_v6, %v10207_v26  ;;  %v10230_v6 = vpop.f32.mrf.mxu0 }
 0x17e   :  { %v951_v46 = vpop.f32.mrf.mxu1 }
 0x17f   :  { %11443 = vst [vmem:[#allocation59_spill] sm:$0xff] %v10217_v42  ;;  %v952_v55 = vadd.f32 %v951_v46, %v10211_v17 }
 0x180   :  { %v955_v15 = vpop.f32.mrf.mxu1 }
 0x181   :  { %v10221_v60 = vpack.c.bf16 %v952_v55, %v950_v63  ;;  %v956_v25 = vadd.f32 %v955_v15, %v10207_v26 }
 0x182   :  { %v957_v43 = vpop.f32.mrf.mxu1 }
 0x183   :  { %11444 = vst [vmem:[#allocation60_spill] sm:$0xff] %v10221_v60  ;;  %v958_v44 = vadd.f32 %v957_v43, %v10211_v17  ;;  %v10236_v60 = vpop.f32.mrf.mxu0 }
 0x184   :  { %v959_v11 = vpop.f32.mrf.mxu1 }
 0x185   :  { %v10227_v21 = vpack.c.bf16 %v958_v44, %v956_v25  ;;  %v960_v12 = vadd.f32 %v959_v11, %v10207_v26 }
 0x186   :  { %v961_v22 = vpop.f32.mrf.mxu1 }
 0x187   :  { %11445 = vst [vmem:[#allocation61_spill] sm:$0xff] %v10227_v21  ;;  %v962_v46 = vadd.f32 %v961_v22, %v10211_v17  ;;  %v10242_v21 = vpop.f32.mrf.mxu0 }
 0x188   :  { %v965_v42 = vpop.f32.mrf.mxu1 }
 0x189   :  { %v10233_v55 = vpack.c.bf16 %v962_v46, %v960_v12  ;;  %v966_v63 = vadd.f32 %v965_v42, %v10207_v26 }
 0x18a   :  { %v967_v15 = vpop.f32.mrf.mxu1 }
 0x18b   :  { %11446 = vst [vmem:[#allocation62_spill] sm:$0xff] %v10233_v55  ;;  %v968_v43 = vadd.f32 %v967_v15, %v10211_v17  ;;  %v1713_v55 = vpop.f32.mrf.mxu0 }
 0x18c   :  { %v969_v8 = vpop.f32.mrf.mxu1 }
 0x18d   :  { %v10239_v25 = vpack.c.bf16 %v968_v43, %v966_v63  ;;  %v970_v44 = vadd.f32 %v969_v8, %v10207_v26  ;;  %v611_v43 = vadd.f32 %v9921_v37, %v9910_v27  ;;  %v1479_v27 = vunpack.c.l.bf16 %v9923_v39 }
 0x18e   :  { %v971_v11 = vpop.f32.mrf.mxu1 }
 0x18f   :  { %11447 = vst [vmem:[#allocation63_spill] sm:$0xff] %v10239_v25  ;;  %v972_v22 = vadd.f32 %v971_v11, %v10211_v17  ;;  %v613_v11 = vadd.f32 %v9928_v41, %v9913_v28 }
 0x190   :  { %v975_v34 = vpop.f32.mrf.mxu1 }
 0x191   :  { %v10245_v12 = vpack.c.bf16 %v972_v22, %v970_v44  ;;  %v976_v42 = vadd.f32 %v975_v34, %v10207_v26  ;;  %v1715_v44 = vpop.f32.mrf.mxu0 }
 0x192   :  { %v977_v46 = vpop.f32.mrf.mxu1 }
 0x193   :  { %11448 = vst [vmem:[#allocation64_spill] sm:$0xff] %v10245_v12  ;;  %v978_v1 = vadd.f32 %v977_v46, %v10211_v17 }
 0x194   :  { %v979_v15 = vpop.f32.mrf.mxu1 }
 0x195   :  { %v10249_v2 = vpack.c.bf16 %v978_v1, %v976_v42  ;;  %v980_v63 = vadd.f32 %v979_v15, %v10207_v26  ;;  %v8394_v1 = vpack.c.bf16 %v613_v11, %v611_v43  ;;  %v1480_v42 = vunpack.c.h.bf16 %v9923_v39  ;;  %v1717_v15 = vpop.f32.mrf.mxu0 }
 0x196   :  { %v981_v8 = vpop.f32.mrf.mxu1 }
 0x197   :  { %11449 = vst [vmem:[#allocation65_spill] sm:$0xff] %v10249_v2  ;;  %v982_v22 = vadd.f32 %v981_v8, %v10211_v17  ;;  %v1766_v61 = vadd.f32 %v1715_v44, %v1480_v42  ;;  %v1765_v8 = vadd.f32 %v1713_v55, %v1479_v27  ;;  %v1484_v43 = vunpack.c.h.bf16 %v8394_v1 }
 0x198   :  { %v985_v34 = vpop.f32.mrf.mxu1 }
 0x199   :  { %v10257_v12 = vpack.c.bf16 %v982_v22, %v980_v63  ;;  %v986_v46 = vadd.f32 %v985_v34, %v10207_v26  ;;  %v1483_v22 = vunpack.c.l.bf16 %v8394_v1  ;;  %v7751_v62 = vmul.f32 -1.442695, %v1766_v61 }
 0x19a   :  { %v987_v25 = vpop.f32.mrf.mxu1 }
 0x19b   :  { %11450 = vst [vmem:[#allocation66_spill] sm:$0xff] %v10257_v12  ;;  %v988_v2 = vadd.f32 %v987_v25, %v10211_v17  ;;  %v1719_v12 = vpop.f32.mrf.mxu0  ;;  %v1769_v18 = vadd.f32 %v1717_v15, %v1483_v22  ;;  %v7749_v25 = vmul.f32 -1.442695, %v1765_v8  ;;  %9105 = vpow2.f32 %v7751_v62 }
 0x19c   :  { %v989_v37 = vpop.f32.mrf.mxu1  ;;  %v1770_v44 = vadd.f32 %v1719_v12, %v1484_v43 }
 0x19d   :  { %v10263_v28 = vpack.c.bf16 %v988_v2, %v986_v46  ;;  %v990_v41 = vadd.f32 %v989_v37, %v10207_v26  ;;  %v7750_v55 = vmul.f32 -1.442695, %v1769_v18  ;;  %9107 = vpow2.f32 %v7749_v25 }
 0x19e   :  { %v991_v63 = vpop.f32.mrf.mxu1  ;;  %v7752_v1 = vmul.f32 -1.442695, %v1770_v44  ;;  %v903_v25 = vadd.f32 %v10224_v32, %v9974_v45  ;;  %v905_v44 = vadd.f32 %v10230_v6, %v9991_v57  ;;  %v724_v6 = vadd.f32 %v10001_v7, %v9983_v52 }
 0x19f   :  { %11451 = vst [vmem:[#allocation67_spill] sm:$0xff] %v10263_v28  ;;  %v992_v34 = vadd.f32 %v991_v63, %v10211_v17  ;;  %9109 = vpow2.f32 %v7750_v55 }
 0x1a0   :  { %v995_v11 = vpop.f32.mrf.mxu1  ;;  %9111 = vpow2.f32 %v7752_v1  ;;  %v2075_v1 = vpop.f32.mrf.mxu0 }
 0x1a1   :  { %v10267_v0 = vpack.c.bf16 %v992_v34, %v990_v41  ;;  %v996_v39 = vadd.f32 %v995_v11, %v10207_v26 }
 0x1a2   :  { %v997_v2 = vpop.f32.mrf.mxu1 }
 0x1a3   :  { %11452 = vst [vmem:[#allocation68_spill] sm:$0xff] %v10267_v0  ;;  %v998_v46 = vadd.f32 %v997_v2, %v10211_v17 }
 0x1a4   :  { %v999_v42 = vpop.f32.mrf.mxu1 }
 0x1a5   :  { %v10271_v27 = vpack.c.bf16 %v998_v46, %v996_v39  ;;  %v1000_v37 = vadd.f32 %v999_v42, %v10207_v26 }
 0x1a6   :  { %v1001_v61 = vpop.f32.mrf.mxu1 }
 0x1a7   :  { %11453 = vst [vmem:[#allocation69_spill] sm:$0xff] %v10271_v27  ;;  %v1002_v15 = vadd.f32 %v1001_v61, %v10211_v17  ;;  %v907_v61 = vadd.f32 %v10236_v60, %v9974_v45 }
 0x1a8   :  { %v1005_v41 = vpop.f32.mrf.mxu1  ;;  %v9106_v46 = vpop.eup %9105 }
 0x1a9   :  { %v10275_v63 = vpack.c.bf16 %v1002_v15, %v1000_v37  ;;  %v1006_v12 = vadd.f32 %v1005_v41, %v10207_v26  ;;  %v726_v37 = vadd.f32 %v10008_v14, %v9988_v56  ;;  %v909_v15 = vadd.f32 %v10242_v21, %v9991_v57  ;;  %v2077_v14 = vpop.f32.mrf.mxu0 }
 0x1aa   :  { %v1007_v8 = vpop.f32.mrf.mxu1  ;;  %v9108_v55 = vpop.eup %9107  ;;  %v8448_v41 = vpack.c.bf16 %v905_v44, %v903_v25  ;;  %v1482_v57 = vunpack.c.h.bf16 %v10003_v9 }
 0x1ab   :  { %11454 = vst [vmem:[#allocation70_spill] sm:$0xff] %v10275_v63  ;;  %v1008_v62 = vadd.f32 %v1007_v8, %v10211_v17  ;;  %v8395_v56 = vpack.c.bf16 %v726_v37, %v724_v6  ;;  %v8452_v45 = vpack.c.bf16 %v909_v15, %v907_v61  ;;  %v2079_v44 = vpop.f32.mrf.mxu0 }
 0x1ac   :  { %v1009_v18 = vpop.f32.mrf.mxu1  ;;  %v9110_v8 = vpop.eup %9109  ;;  %v1841_v7 = vunpack.c.l.bf16 %v8448_v41 }
 0x1ad   :  { %v10279_v22 = vpack.c.bf16 %v1008_v62, %v1006_v12  ;;  %v1010_v34 = vadd.f32 %v1009_v18, %v10207_v26  ;;  %v1791_v12 = vadd.f32 1.0, %v9106_v46  ;;  %v1779_v62 = vadd.f32 1.0, %v9108_v55 }
 0x1ae   :  { %v1011_v43 = vpop.f32.mrf.mxu1  ;;  %v1780_v21 = vadd.f32 1.0, %v9110_v8  ;;  %v1485_v55 = vunpack.c.l.bf16 %v8395_v56  ;;  %v1845_v37 = vunpack.c.l.bf16 %v8452_v45  ;;  %v1486_v28 = vunpack.c.h.bf16 %v8395_v56 }
 0x1af   :  { %v1012_v11 = vadd.f32 %v1011_v43, %v10211_v17  ;;  %v1481_v43 = vunpack.c.l.bf16 %v10003_v9  ;;  %9113 = vrcp.f32 %v1791_v12  ;;  %v2127_v9 = vadd.f32 %v2075_v1, %v1841_v7 }
 0x1b0   :  { %v10283_v39 = vpop.f32.mrf.mxu1  ;;  %9115 = vrcp.f32 %v1779_v62  ;;  %v1846_v12 = vunpack.c.h.bf16 %v8452_v45 }
 0x1b1   :  { %v10289_v2 = vpack.c.bf16 %v1012_v11, %v1010_v34  ;;  %v9112_v34 = vpop.eup %9111  ;;  %v1842_v11 = vunpack.c.h.bf16 %v8448_v41  ;;  %v2131_v41 = vadd.f32 %v2079_v44, %v1845_v37 }
 0x1b2   :  { %v10291_v42 = vpop.f32.mrf.mxu1  ;;  %v1792_v52 = vadd.f32 1.0, %v9112_v34 }
 0x1b3   :  { %v2128_v61 = vadd.f32 %v2077_v14, %v1842_v11 }
 0x1b4   :  { %v10299_v32 = vpop.f32.mrf.mxu1 }
 0x1b5   :  { %v7791_v34 = vmul.f32 -1.442695, %v2128_v61 }
 0x1b6   :  { %v10303_v18 = vpop.f32.mrf.mxu1 }
 0x1b8   :  { %v1756_v60 = vpop.f32.mrf.mxu1 }
 0x1b9   :  { %v1767_v0 = vadd.f32 %v1756_v60, %v1481_v43  ;;  %v2081_v43 = vpop.f32.mrf.mxu0  ;;  %v7789_v60 = vmul.f32 -1.442695, %v2127_v9  ;;  %v1016_v9 = vadd.f32 %v10283_v39, %v10207_v26 }
 0x1ba   :  { %v1758_v25 = vpop.f32.mrf.mxu1 }
 0x1bb   :  { %9117 = vtanh.f32 %v1767_v0  ;;  %v1768_v46 = vadd.f32 %v1758_v25, %v1482_v57  ;;  %v2132_v57 = vadd.f32 %v2081_v43, %v1846_v12  ;;  %v7790_v25 = vmul.f32 -1.442695, %v2131_v41 }
 0x1bc   :  { %v1760_v6 = vpop.f32.mrf.mxu1  ;;  %9119 = vrcp.f32 %v1780_v21  ;;  %v9114_v56 = vpop.eup %9113  ;;  %v1022_v41 = vadd.f32 %v10303_v18, %v10211_v17 }
 0x1bd   :  { %v7753_v15 = vmul.f32 -1.442695, %v1768_v46  ;;  %v1771_v63 = vadd.f32 %v1760_v6, %v1485_v55  ;;  %9121 = vrcp.f32 %v1792_v52  ;;  %v7792_v14 = vmul.f32 -1.442695, %v2132_v57  ;;  %v9116_v21 = vpop.eup %9115 }
 0x1be   :  { %v1762_v8 = vpop.f32.mrf.mxu1  ;;  %v1811_v1 = vmul.f32 0.0, %v9114_v56  ;;  %v1018_v6 = vadd.f32 %v10291_v42, %v10211_v17  ;;  %v1020_v42 = vadd.f32 %v10299_v32, %v10207_v26 }
 0x1bf   :  { %9123 = vpow2.f32 %v7753_v15  ;;  %v1772_v62 = vadd.f32 %v1762_v8, %v1486_v28 }
 0x1c0   :  { %9125 = vtanh.f32 %v1771_v63 }
 0x1c1   :  { %v7754_v0 = vmul.f32 -1.442695, %v1772_v62  ;;  %v8449_v62 = vpack.c.bf16 %v1018_v6, %v1016_v9 }
 0x1c3   :  { %9127 = vpow2.f32 %v7754_v0  ;;  %v1843_v56 = vunpack.c.l.bf16 %v8449_v62 }
 0x1c4   :  { %9129 = vpow2.f32 %v7791_v34 }
 0x1c5   :  { %9131 = vpow2.f32 %v7789_v60 }
 0x1c6   :  { %9133 = vpow2.f32 %v7790_v25  ;;  %v8453_v25 = vpack.c.bf16 %v1022_v41, %v1020_v42  ;;  %v10327_v42 = vld [vmem:[#allocation8 + $0xcc] ss:$16 sps:$4 sm:$0xff]  }
 0x1c7   :  { %9135 = vpow2.f32 %v7792_v14 }
 0x1c8   :  { %v9118_v11 = vpop.eup %9117  ;;  %v1847_v18 = vunpack.c.l.bf16 %v8453_v25 }
 0x1c9   :  { %v1813_v45 = vmul.f32 %v9118_v11, %v9116_v21  ;;  %v9120_v52 = vpop.eup %9119  ;;  %v1844_v11 = vunpack.c.h.bf16 %v8449_v62  ;;  %v10323_v62 = vld [vmem:[#allocation8 + $0xe8] ss:$16 sps:$4 sm:$0xff]  }
 0x1ca   :  { %v9122_v28 = vpop.eup %9121 }
 0x1cb   :  { %v10307_v7 = vadd.f32 %v1813_v45, %v1811_v1  ;;  %v1812_v55 = vmul.f32 0.0, %v9122_v28 }
 0x1cc   :  { %v9124_v63 = vpop.eup %9123 }
 0x1cd   :  { %v9126_v44 = vpop.eup %9125  ;;  %v1805_v46 = vadd.f32 1.0, %v9124_v63  ;;  %9137 = vtanh.f32 %v10307_v7 }
 0x1ce   :  { %v1814_v37 = vmul.f32 %v9126_v44, %v9120_v52  ;;  %v1848_v44 = vunpack.c.h.bf16 %v8453_v25  ;;  %v10333_v25 = vld [vmem:[#allocation8 + $0xc8] ss:$16 sps:$4 sm:$0xff]  }
 0x1cf   :  { %9139 = vrcp.f32 %v1805_v46 }
 0x1d0   :  { %v9128_v61 = vpop.eup %9127  ;;  %v10312_v15 = vadd.f32 %v1814_v37, %v1812_v55 }
 0x1d1   :  { %v1806_v12 = vadd.f32 1.0, %v9128_v61  ;;  %v9130_v8 = vpop.eup %9129 }
 0x1d2   :  { %9141 = vtanh.f32 %v10312_v15  ;;  %v9132_v43 = vpop.eup %9131  ;;  %v2153_v0 = vadd.f32 1.0, %v9130_v8 }
 0x1d3   :  { %9143 = vrcp.f32 %v1806_v12  ;;  %v9134_v34 = vpop.eup %9133  ;;  %v2141_v60 = vadd.f32 1.0, %v9132_v43  ;;  %v10321_v43 = vld [vmem:[#allocation8 + $0xe0] ss:$16 sps:$4 sm:$0xff]  }
 0x1d4   :  { %v9136_v57 = vpop.eup %9135  ;;  %v2142_v39 = vadd.f32 1.0, %v9134_v34  ;;  %9145 = vrcp.f32 %v2153_v0  ;;  %v10325_v0 = vld [vmem:[#allocation8 + $0xc4] ss:$16 sps:$4 sm:$0xff]  }
 0x1d5   :  { %9147 = vrcp.f32 %v2141_v60  ;;  %v2154_v1 = vadd.f32 1.0, %v9136_v57  ;;  %v10331_v57 = vld [vmem:[#allocation8 + $0xc0] ss:$16 sps:$4 sm:$0xff]  }
 0x1d8   :  { %v2118_v14 = vpop.f32.mrf.mxu1 }
 0x1d9   :  { %v2129_v21 = vadd.f32 %v2118_v14, %v1843_v56  ;;  %v10339_v14 = vld [vmem:[#allocation8 + $0xac] ss:$16 sps:$4 sm:$0xff]  }
 0x1da   :  { %v2120_v45 = vpop.f32.mrf.mxu1  ;;  %v9138_v52 = vpop.eup %9137 }
 0x1db   :  { %9149 = vtanh.f32 %v2129_v21  ;;  %v2130_v17 = vadd.f32 %v2120_v45, %v1844_v11  ;;  %v11455_v11 = vmov 0  }
 0x1dc   :  { %v9140_v28 = vpop.eup %9139  ;;  %9151 = vrcp.f32 %v2142_v39  ;;  %v2122_v63 = vpop.f32.mrf.mxu1  ;;  %v10337_v39 = vld [vmem:[#allocation8 + $0xa4] ss:$16 sps:$4 sm:$0xff]  }
 0x1dd   :  { %v7793_v26 = vmul.f32 -1.442695, %v2130_v17  ;;  %v2133_v32 = vadd.f32 %v2122_v63, %v1847_v18  ;;  %v1819_v46 = vmul.f32 %v9140_v28, %v9138_v52  ;;  %9153 = vrcp.f32 %v2154_v1  ;;  %v10345_v17 = vld [vmem:[#allocation8 + $0xa0] ss:$16 sps:$4 sm:$0xff]   ;;  %v10347_v18 = vld [vmem:[#allocation8 + $0xa8] ss:$16 sps:$4 sm:$0xff]  }
 0x1de   :  { %v2124_v55 = vpop.f32.mrf.mxu1 }
 0x1df   :  { %v9142_v37 = vpop.eup %9141  ;;  %9155 = vpow2.f32 %v7793_v26  ;;  %v2134_v6 = vadd.f32 %v2124_v55, %v1848_v44  ;;  %v8454_v61 = vpack.c.bf16 %v1819_v46, %v1819_v46  ;;  %v10353_v26 = vld [vmem:[#allocation8 + $0x84] ss:$16 sps:$4 sm:$0xff]  }
 0x1e0   :  { %v9144_v9 = vpop.eup %9143  ;;  %9157 = vtanh.f32 %v2133_v32  ;;  %v10355_v32 = vld [vmem:[#allocation8 + $0x8c] ss:$16 sps:$4 sm:$0xff]  }
 0x1e1   :  { %v7794_v12 = vmul.f32 -1.442695, %v2134_v6  ;;  %v1820_v8 = vmul.f32 %v9144_v9, %v9142_v37  ;;  %1832 = vst [vmem:[#allocation3] sm:$0xf] %v8454_v61  ;;  %v9146_v60 = vpop.eup %9145  ;;  %v10360_v61 = vld [vmem:[#allocation8 + $0x80] ss:$16 sps:$4 sm:$0xff]  }
 0x1e2   :  { %v9148_v56 = vpop.eup %9147  ;;  %v2173_v45 = vmul.f32 0.0, %v9146_v60  ;;  %v10362_v9 = vld [vmem:[#allocation8 + $0x88] ss:$16 sps:$4 sm:$0xff]  }
 0x1e3   :  { %9159 = vpow2.f32 %v7794_v12  ;;  %v1821_v41 = vpack.c.bf16 %v1820_v8, %v1819_v46  ;;  %v8455_v34 = vpack.c.bf16 %v1820_v8, %v1820_v8  ;;  %v10366_v12 = vld [vmem:[#allocation8 + $0x64] ss:$16 sps:$4 sm:$0xff]   ;;  %v10368_v8 = vld [vmem:[#allocation8 + $0x6c] ss:$16 sps:$4 sm:$0xff]  }
 0x1e5   :  { %1833 = vst [vmem:[#allocation3 + $0x8] sm:$0xf] %v8455_v34  ;;  %2436 = vmatmul.mubr.bf16.vlgmr.msra.gmra.mxu0 %v1821_v41  ;;  %2479 = vmatmul.mubr.bf16.vlgmr.msra.gmra.mxu1 %v1821_v41 }
 0x1e6   :  { %2766 = vmatpush1.bf16.msra.mxu0 %v10321_v43  ;;  %2809 = vmatpush1.bf16.msra.mxu1 %v10323_v62 }
 0x1e7   :  { %2767 = vmatprep.subr.bf16.mxu0 %v10325_v0  ;;  %2810 = vmatprep.subr.bf16.mxu1 %v10327_v42 }
 0x1e8   :  { %v9150_v21 = vpop.eup %9149  ;;  %2797 = vmatprep.mubr.bf16.mxu0 %v11455_v11  ;;  %2840 = vmatprep.mubr.bf16.mxu1 %v11455_v11 }
 0x1e9   :  { %v9152_v1 = vpop.eup %9151  ;;  %v2175_v52 = vmul.f32 %v9150_v21, %v9148_v56  ;;  %v10375_v56 = vld [vmem:[#allocation8 + $0x60] ss:$16 sps:$4 sm:$0xff]   ;;  %v10377_v21 = vld [vmem:[#allocation8 + $0x68] ss:$16 sps:$4 sm:$0xff]  }
 0x1ea   :  { %2768 = vmatpush1.bf16.msra.mxu0 %v10331_v57  ;;  %2811 = vmatpush1.bf16.msra.mxu1 %v10333_v25  ;;  %v9154_v28 = vpop.eup %9153  ;;  %11456 = vst [vmem:[#allocation71_spill] sm:$0xff] %v10377_v21 }
 0x1eb   :  { %v10349_v63 = vadd.f32 %v2175_v52, %v2173_v45  ;;  %2769 = vmatprep.subr.bf16.mxu0 %v10337_v39  ;;  %2812 = vmatprep.subr.bf16.mxu1 %v10339_v14  ;;  %v2174_v37 = vmul.f32 0.0, %v9154_v28  ;;  %v10383_v45 = vld [vmem:[#allocation8 + $0x4c] ss:$16 sps:$4 sm:$0xff]   ;;  %v10387_v52 = vld [vmem:[#allocation8 + $0x40] ss:$16 sps:$4 sm:$0xff]  }
 0x1ec   :  { %v9156_v44 = vpop.eup %9155  ;;  %11458 = vst [vmem:[#allocation73_spill] sm:$0xff] %v10383_v45  ;;  %11459 = vst [vmem:[#allocation74_spill] sm:$0xff] %v10387_v52  ;;  %v10389_v28 = vld [vmem:[#allocation8 + $0x48] ss:$16 sps:$4 sm:$0xff]  }
 0x1ed   :  { %v9158_v46 = vpop.eup %9157  ;;  %v2167_v55 = vadd.f32 1.0, %v9156_v44  ;;  %9161 = vtanh.f32 %v10349_v63  ;;  %11460 = vst [vmem:[#allocation75_spill] sm:$0xff] %v10389_v28  ;;  %v10393_v44 = vld [vmem:[#allocation8 + $0x24] ss:$16 sps:$4 sm:$0xff]  }
 0x1ee   :  { %v2176_v6 = vmul.f32 %v9158_v46, %v9152_v1  ;;  %2770 = vmatpush1.bf16.msra.mxu0 %v10345_v17  ;;  %2813 = vmatpush1.bf16.msra.mxu1 %v10347_v18  ;;  %v10381_v1 = vld [vmem:[#allocation8 + $0x44] ss:$16 sps:$4 sm:$0xff]   ;;  %11461 = vst [vmem:[#allocation76_spill] sm:$0xff] %v10393_v44  ;;  %v10395_v46 = vld [vmem:[#allocation8 + $0x2c] ss:$16 sps:$4 sm:$0xff]  }
 0x1ef   :  { %9163 = vrcp.f32 %v2167_v55  ;;  %2771 = vmatprep.subr.bf16.mxu0 %v10353_v26  ;;  %2814 = vmatprep.subr.bf16.mxu1 %v10355_v32  ;;  %11457 = vst [vmem:[#allocation72_spill] sm:$0xff] %v10381_v1  ;;  %11462 = vst [vmem:[#allocation77_spill] sm:$0xff] %v10395_v46  ;;  %v10399_v55 = vld [vmem:[#allocation8 + $0x20] ss:$16 sps:$4 sm:$0xff]  }
 0x1f0   :  { %v9160_v41 = vpop.eup %9159  ;;  %v10370_v34 = vadd.f32 %v2176_v6, %v2174_v37  ;;  %11463 = vst [vmem:[#allocation78_spill] sm:$0xff] %v10399_v55  ;;  %v10401_v37 = vld [vmem:[#allocation8 + $0x28] ss:$16 sps:$4 sm:$0xff]  }
 0x1f1   :  { %v2168_v60 = vadd.f32 1.0, %v9160_v41  ;;  %11464 = vst [vmem:[#allocation79_spill] sm:$0xff] %v10401_v37  ;;  %v10405_v41 = vld [vmem:[#allocation8 + $0x4] ss:$16 sps:$4 sm:$0xff]  }
 0x1f2   :  { %9165 = vtanh.f32 %v10370_v34  ;;  %2772 = vmatpush1.bf16.msra.mxu0 %v10360_v61  ;;  %2815 = vmatpush1.bf16.msra.mxu1 %v10362_v9  ;;  %11465 = vst [vmem:[#allocation80_spill] sm:$0xff] %v10405_v41 }
 0x1f3   :  { %9167 = vrcp.f32 %v2168_v60  ;;  %2773 = vmatprep.subr.bf16.mxu0 %v10366_v12  ;;  %2816 = vmatprep.subr.bf16.mxu1 %v10368_v8  ;;  %v10407_v60 = vld [vmem:[#allocation8 + $0xc] ss:$16 sps:$4 sm:$0xff]  }
 0x1f4   :  { %11466 = vst [vmem:[#allocation81_spill] sm:$0xff] %v10407_v60 }
 0x1f6   :  { %2774 = vmatpush1.bf16.msra.mxu0 %v10375_v56  ;;  %2817 = vmatpush1.bf16.msra.mxu1 %v10377_v21 }
 0x1f7   :  { %2775 = vmatprep.subr.bf16.mxu0 %v10381_v1  ;;  %2818 = vmatprep.subr.bf16.mxu1 %v10383_v45 }
 0x1fa   :  { %2776 = vmatpush1.bf16.msra.mxu0 %v10387_v52  ;;  %2819 = vmatpush1.bf16.msra.mxu1 %v10389_v28  ;;  %v9162_v6 = vpop.eup %9161  ;;  %v10411_v28 = vld [vmem:[#allocation8] ss:$16 sps:$4 sm:$0xff]   ;;  %v10413_v52 = vld [vmem:[#allocation8 + $0x8] ss:$16 sps:$4 sm:$0xff]  }
 0x1fb   :  { %2777 = vmatprep.subr.bf16.mxu0 %v10393_v44  ;;  %2820 = vmatprep.subr.bf16.mxu1 %v10395_v46 }
 0x1fc   :  { %v9164_v27 = vpop.eup %9163 }
 0x1fd   :  { %v2181_v45 = vmul.f32 %v9164_v27, %v9162_v6 }
 0x1fe   :  { %2778 = vmatpush1.bf16.msra.mxu0 %v10399_v55  ;;  %2821 = vmatpush1.bf16.msra.mxu1 %v10401_v37  ;;  %v9621_v37 = vld [vmem:[#allocation6 + $0xe4] ss:$16 sps:$4 sm:$0xff]   ;;  %v9622_v55 = vld [vmem:[#allocation6 + $0xec] ss:$16 sps:$4 sm:$0xff]  }
 0x1ff   :  { %v9166_v1 = vpop.eup %9165  ;;  %2779 = vmatprep.subr.bf16.mxu0 %v10405_v41  ;;  %2822 = vmatprep.subr.bf16.mxu1 %v10407_v60  ;;  %v8456_v46 = vpack.c.bf16 %v2181_v45, %v2181_v45  ;;  %v9623_v41 = vld [vmem:[#allocation6 + $0xe0] ss:$16 sps:$4 sm:$0xff]   ;;  %v9624_v60 = vld [vmem:[#allocation6 + $0xe8] ss:$16 sps:$4 sm:$0xff]  }
 0x200   :  { %v9168_v44 = vpop.eup %9167 }
 0x201   :  { %v2182_v21 = vmul.f32 %v9168_v44, %v9166_v1  ;;  %2194 = vst [vmem:[#allocation3 + $0x74] sm:$0xf] %v8456_v46 }
 0x202   :  { %2780 = vmatpush1.bf16.msra.mxu0 %v10411_v28  ;;  %2823 = vmatpush1.bf16.msra.mxu1 %v10413_v52 }
 0x203   :  { %v2183_v27 = vpack.c.bf16 %v2182_v21, %v2181_v45  ;;  %v8457_v6 = vpack.c.bf16 %v2182_v21, %v2182_v21  ;;  %3127 = vmatprep.subr.bf16.mxu0 %v9621_v37  ;;  %3170 = vmatprep.subr.bf16.mxu1 %v9622_v55  ;;  %v11473_v45 = vld [vmem:[#allocation32_spill] sm:$0xff] }
 0x204   :  { %v2210_v44 = vunpack.c.h.bf16 %v11473_v45  ;;  %v2209_v37 = vunpack.c.l.bf16 %v11473_v45 }
 0x205   :  { %2195 = vst [vmem:[#allocation3 + $0x7c] sm:$0xf] %v8457_v6  ;;  %2798 = vmatmul.mubr.bf16.vlgmr.msra.gmra.mxu0 %v2183_v27  ;;  %2841 = vmatmul.mubr.bf16.vlgmr.msra.gmra.mxu1 %v2183_v27 }
 0x206   :  { %3128 = vmatpush1.bf16.msra.mxu0 %v9623_v41  ;;  %3171 = vmatpush1.bf16.msra.mxu1 %v9624_v60 }
 0x207   :  { %3129 = vmatprep.subr.bf16.mxu0 %v10025_v59  ;;  %3172 = vmatprep.subr.bf16.mxu1 %v10027_v16  ;;  %v11467_v59 = vld [vmem:[#allocation46_spill] sm:$0xff]  ;;  %v11468_v16 = vld [vmem:[#allocation47_spill] sm:$0xff] }
 0x208   :  { %3159 = vmatprep.mubr.bf16.mxu0 %v11455_v11  ;;  %3202 = vmatprep.mubr.bf16.mxu1 %v11455_v11 }
 0x20a   :  { %3130 = vmatpush1.bf16.msra.mxu0 %v10029_v4  ;;  %3173 = vmatpush1.bf16.msra.mxu1 %v10031_v5  ;;  %v11469_v4 = vld [vmem:[#allocation48_spill] sm:$0xff] }
 0x20b   :  { %3131 = vmatprep.subr.bf16.mxu0 %v10045_v24  ;;  %3174 = vmatprep.subr.bf16.mxu1 %v10047_v30  ;;  %v11470_v5 = vld [vmem:[#allocation16_spill] sm:$0xff] }
 0x20c   :  { %v2203_v24 = vunpack.c.l.bf16 %v11470_v5 }
 0x20e   :  { %3132 = vmatpush1.bf16.msra.mxu0 %v10049_v33  ;;  %3175 = vmatpush1.bf16.msra.mxu1 %v10051_v36 }
 0x20f   :  { %3133 = vmatprep.subr.bf16.mxu0 %v10065_v53  ;;  %3176 = vmatprep.subr.bf16.mxu1 %v10067_v54 }
 0x212   :  { %3134 = vmatpush1.bf16.msra.mxu0 %v10069_v3  ;;  %3177 = vmatpush1.bf16.msra.mxu1 %v10071_v13  ;;  %v11471_v13 = vld [vmem:[#allocation18_spill] sm:$0xff] }
 0x213   :  { %3135 = vmatprep.subr.bf16.mxu0 %v10087_v40  ;;  %3178 = vmatprep.subr.bf16.mxu1 %v10091_v58 }
 0x216   :  { %3136 = vmatpush1.bf16.msra.mxu0 %v10085_v38  ;;  %3179 = vmatpush1.bf16.msra.mxu1 %v10089_v49  ;;  %v2207_v38 = vunpack.c.l.bf16 %v11471_v13 }
 0x217   :  { %3137 = vmatprep.subr.bf16.mxu0 %v10105_v19  ;;  %3180 = vmatprep.subr.bf16.mxu1 %v10107_v20  ;;  %v2208_v20 = vunpack.c.h.bf16 %v11471_v13 }
 0x21a   :  { %3138 = vmatpush1.bf16.msra.mxu0 %v10109_v50  ;;  %3181 = vmatpush1.bf16.msra.mxu1 %v10111_v51 }
 0x21b   :  { %3139 = vmatprep.subr.bf16.mxu0 %v10125_v23  ;;  %3182 = vmatprep.subr.bf16.mxu1 %v10127_v31 }
 0x21e   :  { %3140 = vmatpush1.bf16.msra.mxu0 %v10135_v48  ;;  %3183 = vmatpush1.bf16.msra.mxu1 %v10137_v29  ;;  %v2204_v48 = vunpack.c.h.bf16 %v11470_v5  ;;  %v11472_v29 = vld [vmem:[#allocation30_spill] sm:$0xff] }
 0x21f   :  { %3141 = vmatprep.subr.bf16.mxu0 %v10145_v10  ;;  %3184 = vmatprep.subr.bf16.mxu1 %v10147_v47  ;;  %v2206_v10 = vunpack.c.h.bf16 %v11472_v29  ;;  %v2205_v21 = vunpack.c.l.bf16 %v11472_v29 }
 0x222   :  { %3142 = vmatpush1.bf16.msra.mxu0 %v10155_v35  ;;  %3185 = vmatpush1.bf16.msra.mxu1 %v11467_v59 }
 0x223   :  { %3489 = vmatprep.subr.bf16.mxu0 %v11468_v16  ;;  %3532 = vmatprep.subr.bf16.mxu1 %v11469_v4 }
 0x2a5   :  { %v2437_v30 = vpop.f32.mrf.mxu0  ;;  %v2480_v36 = vpop.f32.mrf.mxu1 }
 0x2a6   :  { %v2489_v33 = vadd.f32 %v2437_v30, %v2203_v24  ;;  %v2491_v46 = vadd.f32 %v2480_v36, %v2205_v21  ;;  %v11474_v36 = vld [vmem:[#allocation54_spill] sm:$0xff] }
 0x2a7   :  { %v2439_v53 = vpop.f32.mrf.mxu0  ;;  %v2482_v58 = vpop.f32.mrf.mxu1 }
 0x2a8   :  { %v7829_v54 = vmul.f32 -1.442695, %v2489_v33  ;;  %v2490_v3 = vadd.f32 %v2439_v53, %v2204_v48  ;;  %v2492_v47 = vadd.f32 %v2482_v58, %v2206_v10  ;;  %v2565_v48 = vunpack.c.l.bf16 %v11474_v36 }
 0x2a9   :  { %v2441_v40 = vpop.f32.mrf.mxu0  ;;  %v2484_v31 = vpop.f32.mrf.mxu1 }
 0x2aa   :  { %9169 = vpow2.f32 %v7829_v54  ;;  %v7831_v49 = vmul.f32 -1.442695, %v2490_v3  ;;  %v2493_v19 = vadd.f32 %v2441_v40, %v2207_v38  ;;  %v7833_v55 = vmul.f32 -1.442695, %v2492_v47 }
 0x2ab   :  { %v2443_v50 = vpop.f32.mrf.mxu0  ;;  %v2486_v1 = vpop.f32.mrf.mxu1  ;;  %v2495_v27 = vadd.f32 %v2484_v31, %v2209_v37  ;;  %v2566_v40 = vunpack.c.h.bf16 %v11474_v36  ;;  %v2567_v36 = vunpack.c.l.bf16 %v10279_v22 }
 0x2ac   :  { %9171 = vpow2.f32 %v7831_v49  ;;  %v7830_v51 = vmul.f32 -1.442695, %v2493_v19  ;;  %v2494_v23 = vadd.f32 %v2443_v50, %v2208_v20  ;;  %v2496_v41 = vadd.f32 %v2486_v1, %v2210_v44 }
 0x2ae   :  { %9173 = vpow2.f32 %v7830_v51  ;;  %v7832_v35 = vmul.f32 -1.442695, %v2494_v23  ;;  %v7834_v16 = vmul.f32 -1.442695, %v2496_v41  ;;  %v11475_v23 = vld [vmem:[#allocation56_spill] sm:$0xff] }
 0x2af   :  { %v2569_v31 = vunpack.c.l.bf16 %v11475_v23 }
 0x2b0   :  { %9175 = vpow2.f32 %v7832_v35 }
 0x2b1   :  { %9177 = vtanh.f32 %v2491_v46 }
 0x2b2   :  { %9179 = vpow2.f32 %v7833_v55  ;;  %v2570_v55 = vunpack.c.h.bf16 %v11475_v23 }
 0x2b7   :  { %v9170_v60 = vpop.eup %9169 }
 0x2b8   :  { %v2503_v6 = vadd.f32 1.0, %v9170_v60 }
 0x2b9   :  { %v9172_v59 = vpop.eup %9171 }
 0x2ba   :  { %9181 = vrcp.f32 %v2503_v6  ;;  %v2515_v4 = vadd.f32 1.0, %v9172_v59 }
 0x2bb   :  { %v9174_v5 = vpop.eup %9173  ;;  %9183 = vtanh.f32 %v2495_v27 }
 0x2bc   :  { %9185 = vrcp.f32 %v2515_v4  ;;  %v2504_v24 = vadd.f32 1.0, %v9174_v5  ;;  %v2568_v5 = vunpack.c.h.bf16 %v10279_v22 }
 0x2bd   :  { %v9176_v30 = vpop.eup %9175  ;;  %9187 = vpow2.f32 %v7834_v16 }
 0x2be   :  { %9189 = vrcp.f32 %v2504_v24  ;;  %v2516_v33 = vadd.f32 1.0, %v9176_v30  ;;  %v9178_v53 = vpop.eup %9177 }
 0x2bf   :  { %v9180_v3 = vpop.eup %9179 }
 0x2c0   :  { %9191 = vrcp.f32 %v2516_v33  ;;  %v2529_v46 = vadd.f32 1.0, %v9180_v3  ;;  %v2571_v3 = vunpack.c.l.bf16 %v10289_v2 }
 0x2c5   :  { %v2799_v54 = vpop.f32.mrf.mxu0  ;;  %v2842_v38 = vpop.f32.mrf.mxu1 }
 0x2c6   :  { %v2851_v13 = vadd.f32 %v2799_v54, %v2565_v48 }
 0x2c7   :  { %v9182_v49 = vpop.eup %9181  ;;  %v2801_v58 = vpop.f32.mrf.mxu0 }
 0x2c8   :  { %v9184_v19 = vpop.eup %9183  ;;  %v2537_v20 = vmul.f32 %v9182_v49, %v9178_v53  ;;  %v7869_v50 = vmul.f32 -1.442695, %v2851_v13  ;;  %v2852_v51 = vadd.f32 %v2801_v58, %v2566_v40  ;;  %v2844_v1 = vpop.f32.mrf.mxu1  ;;  %v2572_v53 = vunpack.c.h.bf16 %v10289_v2 }
 0x2c9   :  { %v9186_v35 = vpop.eup %9185  ;;  %v2803_v29 = vpop.f32.mrf.mxu0  ;;  %v2854_v33 = vadd.f32 %v2844_v1, %v2568_v5  ;;  %v11485_v5 = vld [vmem:[#allocation80_spill] sm:$0xff] }
 0x2ca   :  { %v9188_v10 = vpop.eup %9187  ;;  %v2535_v47 = vmul.f32 %v9186_v35, %v10307_v7  ;;  %9193 = vpow2.f32 %v7869_v50  ;;  %v7871_v21 = vmul.f32 -1.442695, %v2852_v51  ;;  %v2855_v45 = vadd.f32 %v2803_v29, %v2569_v31  ;;  %v2846_v7 = vpop.f32.mrf.mxu1 }
 0x2cb   :  { %v9190_v44 = vpop.eup %9189  ;;  %v2805_v37 = vpop.f32.mrf.mxu0  ;;  %v2530_v4 = vadd.f32 1.0, %v9188_v10  ;;  %v7873_v54 = vmul.f32 -1.442695, %v2854_v33  ;;  %v2857_v49 = vadd.f32 %v2846_v7, %v2571_v3  ;;  %v10521_v3 = vld [vmem:[#allocation6 + $0xe0] ss:$16 sps:$4 sm:$0xff]  }
 0x2cc   :  { %v10464_v41 = vadd.f32 %v2537_v20, %v2535_v47  ;;  %v2538_v60 = vmul.f32 %v9190_v44, %v9184_v19  ;;  %9195 = vpow2.f32 %v7871_v21  ;;  %v7870_v27 = vmul.f32 -1.442695, %v2855_v45  ;;  %v2848_v48 = vpop.f32.mrf.mxu1 }
 0x2cd   :  { %v9192_v6 = vpop.eup %9191  ;;  %v2856_v59 = vadd.f32 %v2805_v37, %v2570_v55  ;;  %v2858_v13 = vadd.f32 %v2848_v48, %v2572_v53 }
 0x2ce   :  { %v2536_v16 = vmul.f32 %v9192_v6, %v10312_v15  ;;  %9197 = vpow2.f32 %v7870_v27  ;;  %v2853_v15 = vadd.f32 %v2842_v38, %v2567_v36 }
 0x2cf   :  { %9199 = vrcp.f32 %v2529_v46  ;;  %v7872_v24 = vmul.f32 -1.442695, %v2856_v59  ;;  %v7874_v20 = vmul.f32 -1.442695, %v2858_v13  ;;  %v10523_v13 = vld [vmem:[#allocation6 + $0xe8] ss:$16 sps:$4 sm:$0xff]  }
 0x2d0   :  { %v10468_v30 = vadd.f32 %v2538_v60, %v2536_v16  ;;  %9201 = vtanh.f32 %v10464_v41 }
 0x2d1   :  { %9203 = vpow2.f32 %v7872_v24  ;;  %v11486_v24 = vld [vmem:[#allocation81_spill] sm:$0xff] }
 0x2d2   :  { %9205 = vrcp.f32 %v2530_v4 }
 0x2d3   :  { %9207 = vtanh.f32 %v10468_v30 }
 0x2d4   :  { %9209 = vtanh.f32 %v2853_v15  ;;  %v10517_v15 = vld [vmem:[#allocation6 + $0xe4] ss:$16 sps:$4 sm:$0xff]  }
 0x2d5   :  { %9211 = vpow2.f32 %v7873_v54  ;;  %v10519_v54 = vld [vmem:[#allocation6 + $0xec] ss:$16 sps:$4 sm:$0xff]  }
 0x2d7   :  { %v9194_v40 = vpop.eup %9193 }
 0x2d8   :  { %v2865_v58 = vadd.f32 1.0, %v9194_v40  ;;  %v10533_v40 = vld [vmem:[#allocation6 + $0xc0] ss:$16 sps:$4 sm:$0xff]  }
 0x2d9   :  { %v9196_v19 = vpop.eup %9195 }
 0x2da   :  { %9213 = vrcp.f32 %v2865_v58  ;;  %v2877_v50 = vadd.f32 1.0, %v9196_v19  ;;  %v10541_v58 = vld [vmem:[#allocation6 + $0xa4] ss:$16 sps:$4 sm:$0xff]   ;;  %v10543_v19 = vld [vmem:[#allocation6 + $0xac] ss:$16 sps:$4 sm:$0xff]  }
 0x2db   :  { %v9198_v22 = vpop.eup %9197  ;;  %9215 = vtanh.f32 %v2857_v49  ;;  %v10535_v49 = vld [vmem:[#allocation6 + $0xc8] ss:$16 sps:$4 sm:$0xff]  }
 0x2dc   :  { %v9200_v51 = vpop.eup %9199  ;;  %9217 = vrcp.f32 %v2877_v50  ;;  %v2866_v23 = vadd.f32 1.0, %v9198_v22  ;;  %v10547_v50 = vld [vmem:[#allocation6 + $0xa8] ss:$16 sps:$4 sm:$0xff]   ;;  %v10553_v22 = vld [vmem:[#allocation6 + $0x84] ss:$16 sps:$4 sm:$0xff]  }
 0x2dd   :  { %v9202_v31 = vpop.eup %9201  ;;  %9219 = vpow2.f32 %v7874_v20  ;;  %v10545_v20 = vld [vmem:[#allocation6 + $0xa0] ss:$16 sps:$4 sm:$0xff]  }
 0x2de   :  { %v9204_v38 = vpop.eup %9203  ;;  %9221 = vrcp.f32 %v2866_v23  ;;  %v2543_v2 = vmul.f32 %v9202_v31, %v9200_v51  ;;  %v10555_v51 = vld [vmem:[#allocation6 + $0x8c] ss:$16 sps:$4 sm:$0xff]   ;;  %v10557_v23 = vld [vmem:[#allocation6 + $0x80] ss:$16 sps:$4 sm:$0xff]   ;;  %v10559_v31 = vld [vmem:[#allocation6 + $0x88] ss:$16 sps:$4 sm:$0xff]  }
 0x2df   :  { %v9206_v35 = vpop.eup %9205  ;;  %v2878_v29 = vadd.f32 1.0, %v9204_v38  ;;  %v10565_v38 = vld [vmem:[#allocation6 + $0x64] ss:$16 sps:$4 sm:$0xff]  }
 0x2e0   :  { %v9208_v10 = vpop.eup %9207  ;;  %v8458_v47 = vpack.c.bf16 %v2543_v2, %v2543_v2 }
 0x2e1   :  { %9223 = vrcp.f32 %v2878_v29  ;;  %v2544_v21 = vmul.f32 %v9208_v10, %v9206_v35  ;;  %v9210_v44 = vpop.eup %9209  ;;  %v10569_v35 = vld [vmem:[#allocation6 + $0x60] ss:$16 sps:$4 sm:$0xff]   ;;  %v10571_v29 = vld [vmem:[#allocation6 + $0x68] ss:$16 sps:$4 sm:$0xff]   ;;  %v10577_v10 = vld [vmem:[#allocation6 + $0x44] ss:$16 sps:$4 sm:$0xff]  }
 0x2e2   :  { %2556 = vst [vmem:[#allocation3 + $0x10] sm:$0xf] %v8458_v47  ;;  %v9212_v46 = vpop.eup %9211  ;;  %v10579_v47 = vld [vmem:[#allocation6 + $0x4c] ss:$16 sps:$4 sm:$0xff]  }
 0x2e3   :  { %v2545_v1 = vpack.c.bf16 %v2544_v21, %v2543_v2  ;;  %v8459_v45 = vpack.c.bf16 %v2544_v21, %v2544_v21  ;;  %v2891_v6 = vadd.f32 1.0, %v9212_v46  ;;  %v10567_v2 = vld [vmem:[#allocation6 + $0x6c] ss:$16 sps:$4 sm:$0xff]   ;;  %v10581_v21 = vld [vmem:[#allocation6 + $0x40] ss:$16 sps:$4 sm:$0xff]  }
 0x2e4   :  { %v10593_v46 = vld [vmem:[#allocation6 + $0x20] ss:$16 sps:$4 sm:$0xff]  }
 0x2e5   :  { %2557 = vst [vmem:[#allocation3 + $0x18] sm:$0xf] %v8459_v45  ;;  %3160 = vmatmul.mubr.bf16.vlgmr.msra.gmra.mxu0 %v2545_v1  ;;  %3203 = vmatmul.mubr.bf16.vlgmr.msra.gmra.mxu1 %v2545_v1  ;;  %9225 = vrcp.f32 %v2891_v6  ;;  %v10583_v1 = vld [vmem:[#allocation6 + $0x48] ss:$16 sps:$4 sm:$0xff]   ;;  %v10589_v45 = vld [vmem:[#allocation6 + $0x24] ss:$16 sps:$4 sm:$0xff]  }
 0x2e6   :  { %3490 = vmatpush1.bf16.msra.mxu0 %v10321_v43  ;;  %3533 = vmatpush1.bf16.msra.mxu1 %v10323_v62  ;;  %v10607_v6 = vld [vmem:[#allocation6 + $0x8] ss:$16 sps:$4 sm:$0xff]  }
 0x2e7   :  { %v9214_v55 = vpop.eup %9213  ;;  %3491 = vmatprep.subr.bf16.mxu0 %v10325_v0  ;;  %3534 = vmatprep.subr.bf16.mxu1 %v10327_v42 }
 0x2e8   :  { %v9216_v37 = vpop.eup %9215  ;;  %v2899_v60 = vmul.f32 %v9214_v55, %v9210_v44  ;;  %3521 = vmatprep.mubr.bf16.mxu0 %v11455_v11  ;;  %3564 = vmatprep.mubr.bf16.mxu1 %v11455_v11  ;;  %v10591_v44 = vld [vmem:[#allocation6 + $0x2c] ss:$16 sps:$4 sm:$0xff]   ;;  %v10595_v55 = vld [vmem:[#allocation6 + $0x28] ss:$16 sps:$4 sm:$0xff]  }
 0x2e9   :  { %v9218_v27 = vpop.eup %9217 }
 0x2ea   :  { %v9220_v59 = vpop.eup %9219  ;;  %v2897_v16 = vmul.f32 %v9218_v27, %v10349_v63  ;;  %3492 = vmatpush1.bf16.msra.mxu0 %v10331_v57  ;;  %3535 = vmatpush1.bf16.msra.mxu1 %v10333_v25  ;;  %v11479_v63 = vld [vmem:[#allocation74_spill] sm:$0xff] }
 0x2eb   :  { %v9222_v43 = vpop.eup %9221  ;;  %3493 = vmatprep.subr.bf16.mxu0 %v10337_v39  ;;  %3536 = vmatprep.subr.bf16.mxu1 %v10339_v14  ;;  %v2892_v4 = vadd.f32 1.0, %v9220_v59  ;;  %v11476_v39 = vld [vmem:[#allocation71_spill] sm:$0xff]  ;;  %v11477_v14 = vld [vmem:[#allocation72_spill] sm:$0xff] }
 0x2ec   :  { %v10486_v62 = vadd.f32 %v2899_v60, %v2897_v16  ;;  %v2900_v0 = vmul.f32 %v9222_v43, %v9216_v37  ;;  %v10601_v37 = vld [vmem:[#allocation6 + $0x4] ss:$16 sps:$4 sm:$0xff]   ;;  %v10603_v60 = vld [vmem:[#allocation6 + $0xc] ss:$16 sps:$4 sm:$0xff]   ;;  %v10605_v27 = vld [vmem:[#allocation6] ss:$16 sps:$4 sm:$0xff]  }
 0x2ed   :  { %v10613_v59 = vld [vmem:[#allocation8 + $0xe4] ss:$16 sps:$4 sm:$0xff]   ;;  %v10615_v16 = vld [vmem:[#allocation8 + $0xec] ss:$16 sps:$4 sm:$0xff]  }
 0x2ee   :  { %v9224_v42 = vpop.eup %9223  ;;  %3494 = vmatpush1.bf16.msra.mxu0 %v10345_v17  ;;  %3537 = vmatpush1.bf16.msra.mxu1 %v10347_v18  ;;  %9227 = vtanh.f32 %v10486_v62  ;;  %v11478_v17 = vld [vmem:[#allocation73_spill] sm:$0xff]  ;;  %11487 = vst [vmem:[#allocation46_spill] sm:$0xff] %v10615_v16  ;;  %v11488_v43 = vld [vmem:[#allocation20_spill] sm:$0xff] }
 0x2ef   :  { %v2898_v57 = vmul.f32 %v9224_v42, %v10370_v34  ;;  %3495 = vmatprep.subr.bf16.mxu0 %v10353_v26  ;;  %3538 = vmatprep.subr.bf16.mxu1 %v10355_v32  ;;  %9229 = vrcp.f32 %v2892_v4  ;;  %v11480_v26 = vld [vmem:[#allocation75_spill] sm:$0xff] }
 0x2f0   :  { %v11484_v34 = vld [vmem:[#allocation79_spill] sm:$0xff] }
 0x2f1   :  { %v10494_v25 = vadd.f32 %v2900_v0, %v2898_v57  ;;  %v2927_v0 = vunpack.c.l.bf16 %v11488_v43 }
 0x2f2   :  { %3496 = vmatpush1.bf16.msra.mxu0 %v10360_v61  ;;  %3539 = vmatpush1.bf16.msra.mxu1 %v10362_v9  ;;  %v9226_v18 = vpop.eup %9225  ;;  %v11481_v61 = vld [vmem:[#allocation76_spill] sm:$0xff]  ;;  %v11482_v9 = vld [vmem:[#allocation77_spill] sm:$0xff] }
 0x2f3   :  { %3497 = vmatprep.subr.bf16.mxu0 %v10366_v12  ;;  %3540 = vmatprep.subr.bf16.mxu1 %v10368_v8  ;;  %9231 = vtanh.f32 %v10494_v25  ;;  %v11483_v8 = vld [vmem:[#allocation78_spill] sm:$0xff] }
 0x2f6   :  { %3498 = vmatpush1.bf16.msra.mxu0 %v10375_v56  ;;  %3541 = vmatpush1.bf16.msra.mxu1 %v11476_v39  ;;  %v2928_v39 = vunpack.c.h.bf16 %v11488_v43 }
 0x2f7   :  { %3499 = vmatprep.subr.bf16.mxu0 %v11477_v14  ;;  %3542 = vmatprep.subr.bf16.mxu1 %v11478_v17 }
 0x2fa   :  { %3500 = vmatpush1.bf16.msra.mxu0 %v11479_v63  ;;  %3543 = vmatpush1.bf16.msra.mxu1 %v11480_v26  ;;  %v11489_v63 = vld [vmem:[#allocation22_spill] sm:$0xff] }
 0x2fb   :  { %v9228_v32 = vpop.eup %9227  ;;  %3501 = vmatprep.subr.bf16.mxu0 %v11481_v61  ;;  %3544 = vmatprep.subr.bf16.mxu1 %v11482_v9  ;;  %v2931_v26 = vunpack.c.l.bf16 %v11489_v63 }
 0x2fc   :  { %v2905_v12 = vmul.f32 %v9228_v32, %v9226_v18  ;;  %v9230_v7 = vpop.eup %9229 }
 0x2fe   :  { %3502 = vmatpush1.bf16.msra.mxu0 %v11483_v8  ;;  %3545 = vmatpush1.bf16.msra.mxu1 %v11484_v34  ;;  %v8460_v56 = vpack.c.bf16 %v2905_v12, %v2905_v12  ;;  %v2932_v8 = vunpack.c.h.bf16 %v11489_v63 }
 0x2ff   :  { %3503 = vmatprep.subr.bf16.mxu0 %v11485_v5  ;;  %3546 = vmatprep.subr.bf16.mxu1 %v11486_v24 }
 0x300   :  { %v9232_v33 = vpop.eup %9231  ;;  %2918 = vst [vmem:[#allocation3 + $0x64] sm:$0xf] %v8460_v56 }
 0x301   :  { %v2906_v36 = vmul.f32 %v9232_v33, %v9230_v7  ;;  %v11490_v33 = vld [vmem:[#allocation34_spill] sm:$0xff] }
 0x302   :  { %3504 = vmatpush1.bf16.msra.mxu0 %v10411_v28  ;;  %3547 = vmatpush1.bf16.msra.mxu1 %v10413_v52  ;;  %v10529_v52 = vld [vmem:[#allocation6 + $0xc4] ss:$16 sps:$4 sm:$0xff]   ;;  %v10531_v28 = vld [vmem:[#allocation6 + $0xcc] ss:$16 sps:$4 sm:$0xff]  }
 0x303   :  { %v2907_v48 = vpack.c.bf16 %v2906_v36, %v2905_v12  ;;  %v8461_v53 = vpack.c.bf16 %v2906_v36, %v2906_v36  ;;  %3851 = vmatprep.subr.bf16.mxu0 %v10517_v15  ;;  %3894 = vmatprep.subr.bf16.mxu1 %v10519_v54  ;;  %v2930_v36 = vunpack.c.h.bf16 %v11490_v33 }
 0x305   :  { %2919 = vst [vmem:[#allocation3 + $0x6c] sm:$0xf] %v8461_v53  ;;  %3522 = vmatmul.mubr.bf16.vlgmr.msra.gmra.mxu0 %v2907_v48  ;;  %3565 = vmatmul.mubr.bf16.vlgmr.msra.gmra.mxu1 %v2907_v48  ;;  %v2929_v53 = vunpack.c.l.bf16 %v11490_v33 }
 0x306   :  { %3883 = vmatprep.mubr.bf16.mxu0 %v11455_v11  ;;  %3926 = vmatprep.mubr.bf16.mxu1 %v11455_v11 }
 0x307   :  { %3852 = vmatpush1.bf16.msra.mxu0 %v10521_v3  ;;  %3895 = vmatpush1.bf16.msra.mxu1 %v10523_v13 }
 0x308   :  { %3853 = vmatprep.subr.bf16.mxu0 %v10529_v52  ;;  %3896 = vmatprep.subr.bf16.mxu1 %v10531_v28 }
 0x30b   :  { %3854 = vmatpush1.bf16.msra.mxu0 %v10533_v40  ;;  %3897 = vmatpush1.bf16.msra.mxu1 %v10535_v49 }
 0x30c   :  { %3855 = vmatprep.subr.bf16.mxu0 %v10541_v58  ;;  %3898 = vmatprep.subr.bf16.mxu1 %v10543_v19 }
 0x30f   :  { %3856 = vmatpush1.bf16.msra.mxu0 %v10545_v20  ;;  %3899 = vmatpush1.bf16.msra.mxu1 %v10547_v50 }
 0x310   :  { %3857 = vmatprep.subr.bf16.mxu0 %v10553_v22  ;;  %3900 = vmatprep.subr.bf16.mxu1 %v10555_v51 }
 0x313   :  { %3858 = vmatpush1.bf16.msra.mxu0 %v10557_v23  ;;  %3901 = vmatpush1.bf16.msra.mxu1 %v10559_v31 }
 0x314   :  { %3859 = vmatprep.subr.bf16.mxu0 %v10565_v38  ;;  %3902 = vmatprep.subr.bf16.mxu1 %v10567_v2 }
 0x317   :  { %3860 = vmatpush1.bf16.msra.mxu0 %v10569_v35  ;;  %3903 = vmatpush1.bf16.msra.mxu1 %v10571_v29 }
 0x318   :  { %3861 = vmatprep.subr.bf16.mxu0 %v10577_v10  ;;  %3904 = vmatprep.subr.bf16.mxu1 %v10579_v47 }
 0x31b   :  { %3862 = vmatpush1.bf16.msra.mxu0 %v10581_v21  ;;  %3905 = vmatpush1.bf16.msra.mxu1 %v10583_v1 }
 0x31c   :  { %3863 = vmatprep.subr.bf16.mxu0 %v10589_v45  ;;  %3906 = vmatprep.subr.bf16.mxu1 %v10591_v44 }
 0x31f   :  { %3864 = vmatpush1.bf16.msra.mxu0 %v10593_v46  ;;  %3907 = vmatpush1.bf16.msra.mxu1 %v10595_v55 }
 0x320   :  { %3865 = vmatprep.subr.bf16.mxu0 %v10601_v37  ;;  %3908 = vmatprep.subr.bf16.mxu1 %v10603_v60 }
 0x323   :  { %3866 = vmatpush1.bf16.msra.mxu0 %v10605_v27  ;;  %3909 = vmatpush1.bf16.msra.mxu1 %v10607_v6 }
 0x324   :  { %4213 = vmatprep.subr.bf16.mxu0 %v10613_v59  ;;  %4256 = vmatprep.subr.bf16.mxu1 %v10615_v16 }
 0x3a5   :  { %v3161_v42 = vpop.f32.mrf.mxu0  ;;  %v3204_v57 = vpop.f32.mrf.mxu1 }
 0x3a6   :  { %v3213_v4 = vadd.f32 %v3161_v42, %v2927_v0  ;;  %v11491_v0 = vld [vmem:[#allocation36_spill] sm:$0xff] }
 0x3a7   :  { %v3163_v14 = vpop.f32.mrf.mxu0  ;;  %v3206_v9 = vpop.f32.mrf.mxu1  ;;  %v2934_v42 = vunpack.c.h.bf16 %v11491_v0 }
 0x3a8   :  { %v7909_v17 = vmul.f32 -1.442695, %v3213_v4  ;;  %v3214_v18 = vadd.f32 %v3163_v14, %v2928_v39  ;;  %v3216_v48 = vadd.f32 %v3206_v9, %v2930_v36  ;;  %v3215_v4 = vadd.f32 %v3204_v57, %v2929_v53 }
 0x3a9   :  { %v3165_v32 = vpop.f32.mrf.mxu0  ;;  %v3208_v5 = vpop.f32.mrf.mxu1  ;;  %v2933_v14 = vunpack.c.l.bf16 %v11491_v0 }
 0x3aa   :  { %9233 = vpow2.f32 %v7909_v17  ;;  %v7911_v61 = vmul.f32 -1.442695, %v3214_v18  ;;  %v3217_v12 = vadd.f32 %v3165_v32, %v2931_v26  ;;  %v7913_v39 = vmul.f32 -1.442695, %v3216_v48 }
 0x3ab   :  { %v3167_v34 = vpop.f32.mrf.mxu0  ;;  %v3210_v43 = vpop.f32.mrf.mxu1  ;;  %v3219_v63 = vadd.f32 %v3208_v5, %v2933_v14 }
 0x3ac   :  { %9235 = vpow2.f32 %v7911_v61  ;;  %v7910_v56 = vmul.f32 -1.442695, %v3217_v12  ;;  %v3218_v7 = vadd.f32 %v3167_v34, %v2932_v8  ;;  %v3220_v17 = vadd.f32 %v3210_v43, %v2934_v42 }
 0x3ae   :  { %9237 = vpow2.f32 %v7910_v56  ;;  %v7912_v24 = vmul.f32 -1.442695, %v3218_v7  ;;  %v7914_v61 = vmul.f32 -1.442695, %v3220_v17  ;;  %v11492_v56 = vld [vmem:[#allocation50_spill] sm:$0xff]  ;;  %v11493_v17 = vld [vmem:[#allocation52_spill] sm:$0xff] }
 0x3af   :  { %v3289_v7 = vunpack.c.l.bf16 %v11492_v56  ;;  %v3290_v53 = vunpack.c.h.bf16 %v11492_v56  ;;  %v3294_v56 = vunpack.c.h.bf16 %v11493_v17 }
 0x3b0   :  { %9239 = vpow2.f32 %v7912_v24 }
 0x3b1   :  { %9241 = vtanh.f32 %v3215_v4 }
 0x3b2   :  { %9243 = vpow2.f32 %v7913_v39 }
 0x3b7   :  { %v9234_v18 = vpop.eup %9233 }
 0x3b8   :  { %v3227_v26 = vadd.f32 1.0, %v9234_v18  ;;  %v3293_v18 = vunpack.c.l.bf16 %v11493_v17 }
 0x3b9   :  { %v9236_v32 = vpop.eup %9235 }
 0x3ba   :  { %9245 = vrcp.f32 %v3227_v26  ;;  %v3239_v12 = vadd.f32 1.0, %v9236_v32 }
 0x3bb   :  { %v9238_v9 = vpop.eup %9237  ;;  %9247 = vtanh.f32 %v3219_v63 }
 0x3bc   :  { %9249 = vrcp.f32 %v3239_v12  ;;  %v3228_v8 = vadd.f32 1.0, %v9238_v9 }
 0x3bd   :  { %v9240_v34 = vpop.eup %9239  ;;  %9251 = vpow2.f32 %v7914_v61 }
 0x3be   :  { %9253 = vrcp.f32 %v3228_v8  ;;  %v3240_v57 = vadd.f32 1.0, %v9240_v34  ;;  %v9242_v24 = vpop.eup %9241 }
 0x3bf   :  { %v9244_v33 = vpop.eup %9243 }
 0x3c0   :  { %9255 = vrcp.f32 %v3240_v57  ;;  %v3253_v57 = vadd.f32 1.0, %v9244_v33 }
 0x3c5   :  { %v3523_v5 = vpop.f32.mrf.mxu0  ;;  %v3566_v48 = vpop.f32.mrf.mxu1 }
 0x3c6   :  { %v3575_v36 = vadd.f32 %v3523_v5, %v3289_v7 }
 0x3c7   :  { %v9246_v43 = vpop.eup %9245  ;;  %v3525_v0 = vpop.f32.mrf.mxu0 }
 0x3c8   :  { %v9248_v42 = vpop.eup %9247  ;;  %v3261_v4 = vmul.f32 %v9246_v43, %v9242_v24  ;;  %v7949_v39 = vmul.f32 -1.442695, %v3575_v36  ;;  %v3576_v14 = vadd.f32 %v3525_v0, %v3290_v53  ;;  %v3568_v9 = vpop.f32.mrf.mxu1 }
 0x3c9   :  { %v9250_v63 = vpop.eup %9249  ;;  %v3527_v26 = vpop.f32.mrf.mxu0 }
 0x3ca   :  { %v9252_v32 = vpop.eup %9251  ;;  %v3259_v61 = vmul.f32 %v9250_v63, %v10464_v41  ;;  %9257 = vpow2.f32 %v7949_v39  ;;  %v7951_v12 = vmul.f32 -1.442695, %v3576_v14  ;;  %v3579_v8 = vadd.f32 %v3527_v26, %v3293_v18  ;;  %v3570_v41 = vpop.f32.mrf.mxu1  ;;  %v11494_v39 = vld [vmem:[#allocation69_spill] sm:$0xff]  ;;  %v11495_v63 = vld [vmem:[#allocation70_spill] sm:$0xff] }
 0x3cb   :  { %v9254_v34 = vpop.eup %9253  ;;  %v3529_v7 = vpop.f32.mrf.mxu0  ;;  %v3254_v16 = vadd.f32 1.0, %v9252_v32  ;;  %v3292_v14 = vunpack.c.h.bf16 %v11494_v39  ;;  %v3296_v26 = vunpack.c.h.bf16 %v11495_v63 }
 0x3cc   :  { %v10632_v5 = vadd.f32 %v3261_v4, %v3259_v61  ;;  %v3262_v24 = vmul.f32 %v9254_v34, %v9248_v42  ;;  %9259 = vpow2.f32 %v7951_v12  ;;  %v7950_v36 = vmul.f32 -1.442695, %v3579_v8  ;;  %v3572_v17 = vpop.f32.mrf.mxu1 }
 0x3cd   :  { %v9256_v53 = vpop.eup %9255  ;;  %v3580_v43 = vadd.f32 %v3529_v7, %v3294_v56  ;;  %v3578_v4 = vadd.f32 %v3568_v9, %v3292_v14  ;;  %v3291_v42 = vunpack.c.l.bf16 %v11494_v39  ;;  %v3295_v61 = vunpack.c.l.bf16 %v11495_v63 }
 0x3ce   :  { %v3260_v0 = vmul.f32 %v9256_v53, %v10468_v30  ;;  %9261 = vpow2.f32 %v7950_v36  ;;  %v3582_v12 = vadd.f32 %v3572_v17, %v3296_v26  ;;  %v10647_v26 = vld [vmem:[#allocation8 + $0xc4] ss:$16 sps:$4 sm:$0xff]  }
 0x3cf   :  { %9263 = vrcp.f32 %v3253_v57  ;;  %v7952_v18 = vmul.f32 -1.442695, %v3580_v43  ;;  %v3577_v30 = vadd.f32 %v3566_v48, %v3291_v42  ;;  %v7953_v32 = vmul.f32 -1.442695, %v3578_v4  ;;  %v10643_v4 = vld [vmem:[#allocation8 + $0xe0] ss:$16 sps:$4 sm:$0xff]  }
 0x3d0   :  { %v10636_v33 = vadd.f32 %v3262_v24, %v3260_v0  ;;  %9265 = vtanh.f32 %v10632_v5  ;;  %v3581_v34 = vadd.f32 %v3570_v41, %v3295_v61  ;;  %v7954_v9 = vmul.f32 -1.442695, %v3582_v12  ;;  %v10645_v42 = vld [vmem:[#allocation8 + $0xe8] ss:$16 sps:$4 sm:$0xff]   ;;  %v10653_v12 = vld [vmem:[#allocation8 + $0xc0] ss:$16 sps:$4 sm:$0xff]  }
 0x3d1   :  { %9267 = vpow2.f32 %v7952_v18 }
 0x3d2   :  { %9269 = vrcp.f32 %v3254_v16 }
 0x3d3   :  { %9271 = vtanh.f32 %v10636_v33 }
 0x3d4   :  { %9273 = vtanh.f32 %v3577_v30  ;;  %v10649_v30 = vld [vmem:[#allocation8 + $0xcc] ss:$16 sps:$4 sm:$0xff]  }
 0x3d5   :  { %9275 = vpow2.f32 %v7953_v32 }
 0x3d7   :  { %v9258_v8 = vpop.eup %9257 }
 0x3d8   :  { %v3589_v57 = vadd.f32 1.0, %v9258_v8  ;;  %v10655_v8 = vld [vmem:[#allocation8 + $0xc8] ss:$16 sps:$4 sm:$0xff]  }
 0x3d9   :  { %v9260_v56 = vpop.eup %9259 }
 0x3da   :  { %9277 = vrcp.f32 %v3589_v57  ;;  %v3601_v16 = vadd.f32 1.0, %v9260_v56  ;;  %v10659_v57 = vld [vmem:[#allocation8 + $0xa4] ss:$16 sps:$4 sm:$0xff]   ;;  %v10661_v56 = vld [vmem:[#allocation8 + $0xac] ss:$16 sps:$4 sm:$0xff]  }
 0x3db   :  { %v9262_v7 = vpop.eup %9261  ;;  %9279 = vtanh.f32 %v3581_v34 }
 0x3dc   :  { %v9264_v24 = vpop.eup %9263  ;;  %9281 = vrcp.f32 %v3601_v16  ;;  %v3590_v36 = vadd.f32 1.0, %v9262_v7 }
 0x3dd   :  { %v9266_v53 = vpop.eup %9265  ;;  %9283 = vpow2.f32 %v7954_v9 }
 0x3de   :  { %v9268_v48 = vpop.eup %9267  ;;  %9285 = vrcp.f32 %v3590_v36  ;;  %v3267_v43 = vmul.f32 %v9266_v53, %v9264_v24 }
 0x3df   :  { %v9270_v0 = vpop.eup %9269  ;;  %v3602_v39 = vadd.f32 1.0, %v9268_v48  ;;  %v10668_v48 = vld [vmem:[#allocation8 + $0xa0] ss:$16 sps:$4 sm:$0xff]  }
 0x3e0   :  { %v9272_v41 = vpop.eup %9271  ;;  %v8462_v14 = vpack.c.bf16 %v3267_v43, %v3267_v43 }
 0x3e1   :  { %9287 = vrcp.f32 %v3602_v39  ;;  %v3268_v18 = vmul.f32 %v9272_v41, %v9270_v0  ;;  %v9274_v32 = vpop.eup %9273  ;;  %v10674_v39 = vld [vmem:[#allocation8 + $0x84] ss:$16 sps:$4 sm:$0xff]   ;;  %v10676_v41 = vld [vmem:[#allocation8 + $0x8c] ss:$16 sps:$4 sm:$0xff]  }
 0x3e2   :  { %3280 = vst [vmem:[#allocation3 + $0x20] sm:$0xf] %v8462_v14  ;;  %v9276_v61 = vpop.eup %9275 }
 0x3e3   :  { %v3269_v17 = vpack.c.bf16 %v3268_v18, %v3267_v43  ;;  %v8463_v63 = vpack.c.bf16 %v3268_v18, %v3268_v18  ;;  %v3615_v24 = vadd.f32 1.0, %v9276_v61  ;;  %v10670_v43 = vld [vmem:[#allocation8 + $0xa8] ss:$16 sps:$4 sm:$0xff]  }
 0x3e5   :  { %3281 = vst [vmem:[#allocation3 + $0x28] sm:$0xf] %v8463_v63  ;;  %3884 = vmatmul.mubr.bf16.vlgmr.msra.gmra.mxu0 %v3269_v17  ;;  %3927 = vmatmul.mubr.bf16.vlgmr.msra.gmra.mxu1 %v3269_v17  ;;  %9289 = vrcp.f32 %v3615_v24  ;;  %v10682_v63 = vld [vmem:[#allocation8 + $0x80] ss:$16 sps:$4 sm:$0xff]   ;;  %v10700_v24 = vld [vmem:[#allocation8 + $0x68] ss:$16 sps:$4 sm:$0xff]  }
 0x3e6   :  { %4214 = vmatpush1.bf16.msra.mxu0 %v10643_v4  ;;  %4257 = vmatpush1.bf16.msra.mxu1 %v10645_v42  ;;  %11500 = vst [vmem:[#allocation30_spill] sm:$0xff] %v10700_v24 }
 0x3e7   :  { %v9278_v34 = vpop.eup %9277  ;;  %4215 = vmatprep.subr.bf16.mxu0 %v10647_v26  ;;  %4258 = vmatprep.subr.bf16.mxu1 %v10649_v30 }
 0x3e8   :  { %v9280_v9 = vpop.eup %9279  ;;  %v3623_v16 = vmul.f32 %v9278_v34, %v9274_v32  ;;  %4245 = vmatprep.mubr.bf16.mxu0 %v11455_v11  ;;  %4288 = vmatprep.mubr.bf16.mxu1 %v11455_v11  ;;  %v10684_v32 = vld [vmem:[#allocation8 + $0x88] ss:$16 sps:$4 sm:$0xff]   ;;  %v10690_v34 = vld [vmem:[#allocation8 + $0x64] ss:$16 sps:$4 sm:$0xff]  }
 0x3e9   :  { %v9282_v7 = vpop.eup %9281  ;;  %11496 = vst [vmem:[#allocation47_spill] sm:$0xff] %v10684_v32  ;;  %11497 = vst [vmem:[#allocation48_spill] sm:$0xff] %v10690_v34 }
 0x3ea   :  { %v9284_v36 = vpop.eup %9283  ;;  %v3621_v53 = vmul.f32 %v9282_v7, %v10486_v62  ;;  %4216 = vmatpush1.bf16.msra.mxu0 %v10653_v12  ;;  %4259 = vmatpush1.bf16.msra.mxu1 %v10655_v8  ;;  %v10698_v7 = vld [vmem:[#allocation8 + $0x60] ss:$16 sps:$4 sm:$0xff]  }
 0x3eb   :  { %v9286_v0 = vpop.eup %9285  ;;  %4217 = vmatprep.subr.bf16.mxu0 %v10659_v57  ;;  %4260 = vmatprep.subr.bf16.mxu1 %v10661_v56  ;;  %v3616_v17 = vadd.f32 1.0, %v9284_v36  ;;  %11499 = vst [vmem:[#allocation18_spill] sm:$0xff] %v10698_v7  ;;  %v10706_v36 = vld [vmem:[#allocation8 + $0x4c] ss:$16 sps:$4 sm:$0xff]  }
 0x3ec   :  { %v10678_v14 = vadd.f32 %v3623_v16, %v3621_v53  ;;  %v3624_v62 = vmul.f32 %v9286_v0, %v9280_v9  ;;  %v10692_v9 = vld [vmem:[#allocation8 + $0x6c] ss:$16 sps:$4 sm:$0xff]   ;;  %11502 = vst [vmem:[#allocation54_spill] sm:$0xff] %v10706_v36  ;;  %v10711_v53 = vld [vmem:[#allocation8 + $0x40] ss:$16 sps:$4 sm:$0xff]  }
 0x3ed   :  { %11498 = vst [vmem:[#allocation16_spill] sm:$0xff] %v10692_v9  ;;  %11503 = vst [vmem:[#allocation56_spill] sm:$0xff] %v10711_v53  ;;  %v10713_v0 = vld [vmem:[#allocation8 + $0x48] ss:$16 sps:$4 sm:$0xff]  }
 0x3ee   :  { %v9288_v18 = vpop.eup %9287  ;;  %4218 = vmatpush1.bf16.msra.mxu0 %v10668_v48  ;;  %4261 = vmatpush1.bf16.msra.mxu1 %v10670_v43  ;;  %9291 = vtanh.f32 %v10678_v14  ;;  %11504 = vst [vmem:[#allocation71_spill] sm:$0xff] %v10713_v0 }
 0x3ef   :  { %v3622_v61 = vmul.f32 %v9288_v18, %v10494_v25  ;;  %4219 = vmatprep.subr.bf16.mxu0 %v10674_v39  ;;  %4262 = vmatprep.subr.bf16.mxu1 %v10676_v41  ;;  %9293 = vrcp.f32 %v3616_v17  ;;  %v10704_v25 = vld [vmem:[#allocation8 + $0x44] ss:$16 sps:$4 sm:$0xff]   ;;  %v10719_v18 = vld [vmem:[#allocation8 + $0x2c] ss:$16 sps:$4 sm:$0xff]  }
 0x3f0   :  { %11501 = vst [vmem:[#allocation32_spill] sm:$0xff] %v10704_v25  ;;  %11506 = vst [vmem:[#allocation73_spill] sm:$0xff] %v10719_v18 }
 0x3f1   :  { %v10694_v16 = vadd.f32 %v3624_v62, %v3622_v61  ;;  %v10717_v62 = vld [vmem:[#allocation8 + $0x24] ss:$16 sps:$4 sm:$0xff]   ;;  %v10723_v61 = vld [vmem:[#allocation8 + $0x20] ss:$16 sps:$4 sm:$0xff]  }
 0x3f2   :  { %4220 = vmatpush1.bf16.msra.mxu0 %v10682_v63  ;;  %4263 = vmatpush1.bf16.msra.mxu1 %v10684_v32  ;;  %11505 = vst [vmem:[#allocation72_spill] sm:$0xff] %v10717_v62  ;;  %v9290_v17 = vpop.eup %9289 }
 0x3f3   :  { %4221 = vmatprep.subr.bf16.mxu0 %v10690_v34  ;;  %4264 = vmatprep.subr.bf16.mxu1 %v10692_v9  ;;  %9295 = vtanh.f32 %v10694_v16 }
 0x3f6   :  { %4222 = vmatpush1.bf16.msra.mxu0 %v10698_v7  ;;  %4265 = vmatpush1.bf16.msra.mxu1 %v10700_v24  ;;  %v10725_v24 = vld [vmem:[#allocation8 + $0x28] ss:$16 sps:$4 sm:$0xff]  }
 0x3f7   :  { %4223 = vmatprep.subr.bf16.mxu0 %v10704_v25  ;;  %4266 = vmatprep.subr.bf16.mxu1 %v10706_v36  ;;  %v10729_v25 = vld [vmem:[#allocation8 + $0x4] ss:$16 sps:$4 sm:$0xff]   ;;  %v10731_v36 = vld [vmem:[#allocation8 + $0xc] ss:$16 sps:$4 sm:$0xff]  }
 0x3fa   :  { %4224 = vmatpush1.bf16.msra.mxu0 %v10711_v53  ;;  %4267 = vmatpush1.bf16.msra.mxu1 %v10713_v0  ;;  %v10735_v53 = vld [vmem:[#allocation8] ss:$16 sps:$4 sm:$0xff]   ;;  %v10737_v0 = vld [vmem:[#allocation8 + $0x8] ss:$16 sps:$4 sm:$0xff]  }
 0x3fb   :  { %v9292_v7 = vpop.eup %9291  ;;  %4225 = vmatprep.subr.bf16.mxu0 %v10717_v62  ;;  %4268 = vmatprep.subr.bf16.mxu1 %v10719_v18 }
 0x3fc   :  { %v3629_v9 = vmul.f32 %v9292_v7, %v9290_v17  ;;  %v9294_v32 = vpop.eup %9293 }
 0x3fe   :  { %4226 = vmatpush1.bf16.msra.mxu0 %v10723_v61  ;;  %4269 = vmatpush1.bf16.msra.mxu1 %v10725_v24  ;;  %v8464_v34 = vpack.c.bf16 %v3629_v9, %v3629_v9 }
 0x3ff   :  { %4227 = vmatprep.subr.bf16.mxu0 %v10729_v25  ;;  %4270 = vmatprep.subr.bf16.mxu1 %v10731_v36 }
 0x400   :  { %v9296_v18 = vpop.eup %9295  ;;  %3642 = vst [vmem:[#allocation3 + $0x54] sm:$0xf] %v8464_v34 }
 0x401   :  { %v3630_v62 = vmul.f32 %v9296_v18, %v9294_v32 }
 0x402   :  { %4228 = vmatpush1.bf16.msra.mxu0 %v10735_v53  ;;  %4271 = vmatpush1.bf16.msra.mxu1 %v10737_v0 }
 0x403   :  { %v3631_v7 = vpack.c.bf16 %v3630_v62, %v3629_v9  ;;  %v8465_v17 = vpack.c.bf16 %v3630_v62, %v3630_v62  ;;  %4572 = vmatprep.subr.bf16.mxu0 %v10517_v15  ;;  %4615 = vmatprep.subr.bf16.mxu1 %v10519_v54  ;;  %v11507_v15 = vld [vmem:[#allocation46_spill] sm:$0xff]  ;;  %v11508_v54 = vld [vmem:[#allocation24_spill] sm:$0xff] }
 0x405   :  { %3643 = vst [vmem:[#allocation3 + $0x5c] sm:$0xf] %v8465_v17  ;;  %4246 = vmatmul.mubr.bf16.vlgmr.msra.gmra.mxu0 %v3631_v7  ;;  %4289 = vmatmul.mubr.bf16.vlgmr.msra.gmra.mxu1 %v3631_v7 }
 0x406   :  { %4573 = vmatpush1.bf16.msra.mxu0 %v10521_v3  ;;  %4616 = vmatpush1.bf16.msra.mxu1 %v10523_v13  ;;  %v3651_v3 = vunpack.c.l.bf16 %v11508_v54 }
 0x407   :  { %4574 = vmatprep.subr.bf16.mxu0 %v10529_v52  ;;  %4617 = vmatprep.subr.bf16.mxu1 %v10531_v28 }
 0x408   :  { %4604 = vmatprep.mubr.bf16.mxu0 %v11455_v11  ;;  %4647 = vmatprep.mubr.bf16.mxu1 %v11455_v11 }
 0x40a   :  { %4575 = vmatpush1.bf16.msra.mxu0 %v10533_v40  ;;  %4618 = vmatpush1.bf16.msra.mxu1 %v10535_v49  ;;  %v3652_v40 = vunpack.c.h.bf16 %v11508_v54 }
 0x40b   :  { %4576 = vmatprep.subr.bf16.mxu0 %v10541_v58  ;;  %4619 = vmatprep.subr.bf16.mxu1 %v10543_v19 }
 0x40e   :  { %4577 = vmatpush1.bf16.msra.mxu0 %v10545_v20  ;;  %4620 = vmatpush1.bf16.msra.mxu1 %v10547_v50  ;;  %v11509_v20 = vld [vmem:[#allocation26_spill] sm:$0xff] }
 0x40f   :  { %4578 = vmatprep.subr.bf16.mxu0 %v10553_v22  ;;  %4621 = vmatprep.subr.bf16.mxu1 %v10555_v51  ;;  %v3655_v50 = vunpack.c.l.bf16 %v11509_v20 }
 0x412   :  { %4579 = vmatpush1.bf16.msra.mxu0 %v10557_v23  ;;  %4622 = vmatpush1.bf16.msra.mxu1 %v10559_v31 }
 0x413   :  { %4580 = vmatprep.subr.bf16.mxu0 %v10565_v38  ;;  %4623 = vmatprep.subr.bf16.mxu1 %v10567_v2  ;;  %v3656_v38 = vunpack.c.h.bf16 %v11509_v20 }
 0x416   :  { %4581 = vmatpush1.bf16.msra.mxu0 %v10569_v35  ;;  %4624 = vmatpush1.bf16.msra.mxu1 %v10571_v29 }
 0x417   :  { %4582 = vmatprep.subr.bf16.mxu0 %v10577_v10  ;;  %4625 = vmatprep.subr.bf16.mxu1 %v10579_v47 }
 0x41a   :  { %4583 = vmatpush1.bf16.msra.mxu0 %v10581_v21  ;;  %4626 = vmatpush1.bf16.msra.mxu1 %v10583_v1  ;;  %v11510_v21 = vld [vmem:[#allocation38_spill] sm:$0xff] }
 0x41b   :  { %4584 = vmatprep.subr.bf16.mxu0 %v10589_v45  ;;  %4627 = vmatprep.subr.bf16.mxu1 %v10591_v44  ;;  %v3654_v1 = vunpack.c.h.bf16 %v11510_v21  ;;  %v3653_v44 = vunpack.c.l.bf16 %v11510_v21 }
 0x41e   :  { %4585 = vmatpush1.bf16.msra.mxu0 %v10593_v46  ;;  %4628 = vmatpush1.bf16.msra.mxu1 %v10595_v55  ;;  %v11511_v55 = vld [vmem:[#allocation40_spill] sm:$0xff] }
 0x41f   :  { %4586 = vmatprep.subr.bf16.mxu0 %v10601_v37  ;;  %4629 = vmatprep.subr.bf16.mxu1 %v10603_v60  ;;  %v3658_v37 = vunpack.c.h.bf16 %v11511_v55 }
 0x422   :  { %4587 = vmatpush1.bf16.msra.mxu0 %v10605_v27  ;;  %4630 = vmatpush1.bf16.msra.mxu1 %v10607_v6  ;;  %v3657_v6 = vunpack.c.l.bf16 %v11511_v55 }
 0x423   :  { %4928 = vmatprep.subr.bf16.mxu0 %v10613_v59  ;;  %4971 = vmatprep.subr.bf16.mxu1 %v11507_v15 }
 0x4a5   :  { %v3885_v13 = vpop.f32.mrf.mxu0  ;;  %v3928_v28 = vpop.f32.mrf.mxu1 }
 0x4a6   :  { %v3937_v52 = vadd.f32 %v3885_v13, %v3651_v3  ;;  %v3939_v60 = vadd.f32 %v3928_v28, %v3653_v44  ;;  %v11512_v13 = vld [vmem:[#allocation43_spill] sm:$0xff] }
 0x4a7   :  { %v3887_v49 = vpop.f32.mrf.mxu0  ;;  %v3930_v23 = vpop.f32.mrf.mxu1  ;;  %v4014_v20 = vunpack.c.h.bf16 %v11512_v13 }
 0x4a8   :  { %v7989_v58 = vmul.f32 -1.442695, %v3937_v52  ;;  %v3938_v19 = vadd.f32 %v3887_v49, %v3652_v40  ;;  %v3940_v45 = vadd.f32 %v3930_v23, %v3654_v1  ;;  %v4013_v52 = vunpack.c.l.bf16 %v11512_v13 }
 0x4a9   :  { %v3889_v22 = vpop.f32.mrf.mxu0  ;;  %v3932_v10 = vpop.f32.mrf.mxu1 }
 0x4aa   :  { %9297 = vpow2.f32 %v7989_v58  ;;  %v7991_v51 = vmul.f32 -1.442695, %v3938_v19  ;;  %v3941_v31 = vadd.f32 %v3889_v22, %v3655_v50  ;;  %v7993_v27 = vmul.f32 -1.442695, %v3940_v45 }
 0x4ab   :  { %v3891_v2 = vpop.f32.mrf.mxu0  ;;  %v3934_v46 = vpop.f32.mrf.mxu1  ;;  %v3943_v34 = vadd.f32 %v3932_v10, %v3657_v6 }
 0x4ac   :  { %9299 = vpow2.f32 %v7991_v51  ;;  %v7990_v35 = vmul.f32 -1.442695, %v3941_v31  ;;  %v3942_v29 = vadd.f32 %v3891_v2, %v3656_v38  ;;  %v3944_v59 = vadd.f32 %v3934_v46, %v3658_v37  ;;  %v11513_v2 = vld [vmem:[#allocation45_spill] sm:$0xff] }
 0x4ad   :  { %v4018_v37 = vunpack.c.h.bf16 %v11513_v2 }
 0x4ae   :  { %9301 = vpow2.f32 %v7990_v35  ;;  %v7992_v47 = vmul.f32 -1.442695, %v3942_v29  ;;  %v7994_v18 = vmul.f32 -1.442695, %v3944_v59  ;;  %v4017_v35 = vunpack.c.l.bf16 %v11513_v2 }
 0x4b0   :  { %9303 = vpow2.f32 %v7992_v47 }
 0x4b1   :  { %9305 = vtanh.f32 %v3939_v60 }
 0x4b2   :  { %9307 = vpow2.f32 %v7993_v27 }
 0x4b7   :  { %v9298_v32 = vpop.eup %9297 }
 0x4b8   :  { %v3951_v9 = vadd.f32 1.0, %v9298_v32 }
 0x4b9   :  { %v9300_v62 = vpop.eup %9299 }
 0x4ba   :  { %9309 = vrcp.f32 %v3951_v9  ;;  %v3963_v7 = vadd.f32 1.0, %v9300_v62 }
 0x4bb   :  { %v9302_v17 = vpop.eup %9301  ;;  %9311 = vtanh.f32 %v3943_v34 }
 0x4bc   :  { %9313 = vrcp.f32 %v3963_v7  ;;  %v3952_v15 = vadd.f32 1.0, %v9302_v17 }
 0x4bd   :  { %v9304_v54 = vpop.eup %9303  ;;  %9315 = vpow2.f32 %v7994_v18  ;;  %v11514_v18 = vld [vmem:[#allocation67_spill] sm:$0xff] }
 0x4be   :  { %9317 = vrcp.f32 %v3952_v15  ;;  %v3964_v3 = vadd.f32 1.0, %v9304_v54  ;;  %v9306_v28 = vpop.eup %9305  ;;  %v4016_v7 = vunpack.c.h.bf16 %v11514_v18 }
 0x4bf   :  { %v9308_v49 = vpop.eup %9307 }
 0x4c0   :  { %9319 = vrcp.f32 %v3964_v3  ;;  %v3977_v55 = vadd.f32 1.0, %v9308_v49  ;;  %v4015_v3 = vunpack.c.l.bf16 %v11514_v18 }
 0x4c5   :  { %v4247_v40 = vpop.f32.mrf.mxu0  ;;  %v4290_v19 = vpop.f32.mrf.mxu1 }
 0x4c6   :  { %v4299_v58 = vadd.f32 %v4247_v40, %v4013_v52  ;;  %v11515_v52 = vld [vmem:[#allocation68_spill] sm:$0xff] }
 0x4c7   :  { %v9310_v50 = vpop.eup %9309  ;;  %v4249_v22 = vpop.f32.mrf.mxu0  ;;  %v4019_v49 = vunpack.c.l.bf16 %v11515_v52 }
 0x4c8   :  { %v9312_v51 = vpop.eup %9311  ;;  %v3985_v23 = vmul.f32 %v9310_v50, %v9306_v28  ;;  %v8029_v31 = vmul.f32 -1.442695, %v4299_v58  ;;  %v4300_v38 = vadd.f32 %v4249_v22, %v4014_v20  ;;  %v4292_v45 = vpop.f32.mrf.mxu1  ;;  %v4020_v28 = vunpack.c.h.bf16 %v11515_v52 }
 0x4c9   :  { %v9314_v29 = vpop.eup %9313  ;;  %v4251_v10 = vpop.f32.mrf.mxu0  ;;  %v4302_v54 = vadd.f32 %v4292_v45, %v4016_v7  ;;  %v11523_v7 = vld [vmem:[#allocation56_spill] sm:$0xff] }
 0x4ca   :  { %v9316_v47 = vpop.eup %9315  ;;  %v3983_v21 = vmul.f32 %v9314_v29, %v10632_v5  ;;  %9321 = vpow2.f32 %v8029_v31  ;;  %v8031_v1 = vmul.f32 -1.442695, %v4300_v38  ;;  %v4303_v44 = vadd.f32 %v4251_v10, %v4017_v35  ;;  %v4294_v5 = vpop.f32.mrf.mxu1 }
 0x4cb   :  { %v9318_v46 = vpop.eup %9317  ;;  %v4253_v60 = vpop.f32.mrf.mxu0  ;;  %v3978_v62 = vadd.f32 1.0, %v9316_v47  ;;  %v8033_v40 = vmul.f32 -1.442695, %v4302_v54  ;;  %v4305_v50 = vadd.f32 %v4294_v5, %v4019_v49  ;;  %v11525_v54 = vld [vmem:[#allocation72_spill] sm:$0xff] }
 0x4cc   :  { %v10792_v27 = vadd.f32 %v3985_v23, %v3983_v21  ;;  %v3986_v6 = vmul.f32 %v9318_v46, %v9312_v51  ;;  %9323 = vpow2.f32 %v8031_v1  ;;  %v8030_v59 = vmul.f32 -1.442695, %v4303_v44  ;;  %v4296_v13 = vpop.f32.mrf.mxu1 }
 0x4cd   :  { %v9320_v32 = vpop.eup %9319  ;;  %v4304_v34 = vadd.f32 %v4253_v60, %v4018_v37  ;;  %v4306_v58 = vadd.f32 %v4296_v13, %v4020_v28 }
 0x4ce   :  { %v3984_v9 = vmul.f32 %v9320_v32, %v10636_v33  ;;  %9325 = vpow2.f32 %v8030_v59  ;;  %v4301_v33 = vadd.f32 %v4290_v19, %v4015_v3  ;;  %v11526_v3 = vld [vmem:[#allocation73_spill] sm:$0xff] }
 0x4cf   :  { %9327 = vrcp.f32 %v3977_v55  ;;  %v8032_v17 = vmul.f32 -1.442695, %v4304_v34  ;;  %v8034_v23 = vmul.f32 -1.442695, %v4306_v58 }
 0x4d0   :  { %v10796_v15 = vadd.f32 %v3986_v6, %v3984_v9  ;;  %9329 = vtanh.f32 %v10792_v27 }
 0x4d1   :  { %9331 = vpow2.f32 %v8032_v17 }
 0x4d2   :  { %9333 = vrcp.f32 %v3978_v62 }
 0x4d3   :  { %9335 = vtanh.f32 %v10796_v15 }
 0x4d4   :  { %9337 = vtanh.f32 %v4301_v33 }
 0x4d5   :  { %9339 = vpow2.f32 %v8033_v40 }
 0x4d7   :  { %v9322_v20 = vpop.eup %9321 }
 0x4d8   :  { %v4313_v22 = vadd.f32 1.0, %v9322_v20  ;;  %v10861_v20 = vld [vmem:[#allocation6 + $0xc0] ss:$16 sps:$4 sm:$0xff]  }
 0x4d9   :  { %v9324_v51 = vpop.eup %9323 }
 0x4da   :  { %9341 = vrcp.f32 %v4313_v22  ;;  %v4325_v31 = vadd.f32 1.0, %v9324_v51  ;;  %v10869_v22 = vld [vmem:[#allocation6 + $0xa4] ss:$16 sps:$4 sm:$0xff]   ;;  %v10871_v51 = vld [vmem:[#allocation6 + $0xac] ss:$16 sps:$4 sm:$0xff]  }
 0x4db   :  { %v9326_v38 = vpop.eup %9325  ;;  %9343 = vtanh.f32 %v4305_v50  ;;  %v10863_v50 = vld [vmem:[#allocation6 + $0xc8] ss:$16 sps:$4 sm:$0xff]  }
 0x4dc   :  { %v9328_v2 = vpop.eup %9327  ;;  %9345 = vrcp.f32 %v4325_v31  ;;  %v4314_v35 = vadd.f32 1.0, %v9326_v38  ;;  %v10875_v31 = vld [vmem:[#allocation6 + $0xa8] ss:$16 sps:$4 sm:$0xff]   ;;  %v10881_v38 = vld [vmem:[#allocation6 + $0x84] ss:$16 sps:$4 sm:$0xff]  }
 0x4dd   :  { %v9330_v29 = vpop.eup %9329  ;;  %9347 = vpow2.f32 %v8034_v23  ;;  %v10873_v23 = vld [vmem:[#allocation6 + $0xa0] ss:$16 sps:$4 sm:$0xff]  }
 0x4de   :  { %v9332_v19 = vpop.eup %9331  ;;  %9349 = vrcp.f32 %v4314_v35  ;;  %v3991_v10 = vmul.f32 %v9330_v29, %v9328_v2  ;;  %v10883_v2 = vld [vmem:[#allocation6 + $0x8c] ss:$16 sps:$4 sm:$0xff]   ;;  %v10885_v35 = vld [vmem:[#allocation6 + $0x80] ss:$16 sps:$4 sm:$0xff]   ;;  %v10887_v29 = vld [vmem:[#allocation6 + $0x88] ss:$16 sps:$4 sm:$0xff]  }
 0x4df   :  { %v9334_v47 = vpop.eup %9333  ;;  %v4326_v21 = vadd.f32 1.0, %v9332_v19  ;;  %v10893_v19 = vld [vmem:[#allocation6 + $0x64] ss:$16 sps:$4 sm:$0xff]  }
 0x4e0   :  { %v9336_v1 = vpop.eup %9335  ;;  %v8466_v45 = vpack.c.bf16 %v3991_v10, %v3991_v10 }
 0x4e1   :  { %9351 = vrcp.f32 %v4326_v21  ;;  %v3992_v44 = vmul.f32 %v9336_v1, %v9334_v47  ;;  %v9338_v37 = vpop.eup %9337  ;;  %v10897_v47 = vld [vmem:[#allocation6 + $0x60] ss:$16 sps:$4 sm:$0xff]   ;;  %v10899_v21 = vld [vmem:[#allocation6 + $0x68] ss:$16 sps:$4 sm:$0xff]   ;;  %v10905_v1 = vld [vmem:[#allocation6 + $0x44] ss:$16 sps:$4 sm:$0xff]  }
 0x4e2   :  { %4004 = vst [vmem:[#allocation3 + $0x30] sm:$0xf] %v8466_v45  ;;  %v9340_v60 = vpop.eup %9339  ;;  %v10907_v45 = vld [vmem:[#allocation6 + $0x4c] ss:$16 sps:$4 sm:$0xff]  }
 0x4e3   :  { %v3993_v46 = vpack.c.bf16 %v3992_v44, %v3991_v10  ;;  %v8467_v55 = vpack.c.bf16 %v3992_v44, %v3992_v44  ;;  %v4339_v9 = vadd.f32 1.0, %v9340_v60  ;;  %v10895_v10 = vld [vmem:[#allocation6 + $0x6c] ss:$16 sps:$4 sm:$0xff]   ;;  %v10909_v44 = vld [vmem:[#allocation6 + $0x40] ss:$16 sps:$4 sm:$0xff]  }
 0x4e4   :  { %v10921_v60 = vld [vmem:[#allocation6 + $0x20] ss:$16 sps:$4 sm:$0xff]  }
 0x4e5   :  { %4005 = vst [vmem:[#allocation3 + $0x38] sm:$0xf] %v8467_v55  ;;  %4605 = vmatmul.mubr.bf16.vlgmr.msra.gmra.mxu0 %v3993_v46  ;;  %4648 = vmatmul.mubr.bf16.vlgmr.msra.gmra.mxu1 %v3993_v46  ;;  %9353 = vrcp.f32 %v4339_v9  ;;  %v10911_v46 = vld [vmem:[#allocation6 + $0x48] ss:$16 sps:$4 sm:$0xff]   ;;  %v10917_v55 = vld [vmem:[#allocation6 + $0x24] ss:$16 sps:$4 sm:$0xff]  }
 0x4e6   :  { %4929 = vmatpush1.bf16.msra.mxu0 %v10643_v4  ;;  %4972 = vmatpush1.bf16.msra.mxu1 %v10645_v42  ;;  %v10935_v9 = vld [vmem:[#allocation6 + $0x8] ss:$16 sps:$4 sm:$0xff]  }
 0x4e7   :  { %v9342_v6 = vpop.eup %9341  ;;  %4930 = vmatprep.subr.bf16.mxu0 %v10647_v26  ;;  %4973 = vmatprep.subr.bf16.mxu1 %v10649_v30 }
 0x4e8   :  { %v9344_v59 = vpop.eup %9343  ;;  %v4347_v32 = vmul.f32 %v9342_v6, %v9338_v37  ;;  %4960 = vmatprep.mubr.bf16.mxu0 %v11455_v11  ;;  %5003 = vmatprep.mubr.bf16.mxu1 %v11455_v11  ;;  %v10919_v37 = vld [vmem:[#allocation6 + $0x2c] ss:$16 sps:$4 sm:$0xff]   ;;  %v10923_v6 = vld [vmem:[#allocation6 + $0x28] ss:$16 sps:$4 sm:$0xff]  }
 0x4e9   :  { %v9346_v34 = vpop.eup %9345 }
 0x4ea   :  { %v9348_v62 = vpop.eup %9347  ;;  %v4345_v5 = vmul.f32 %v9346_v34, %v10678_v14  ;;  %4931 = vmatpush1.bf16.msra.mxu0 %v10653_v12  ;;  %4974 = vmatpush1.bf16.msra.mxu1 %v10655_v8  ;;  %v11520_v14 = vld [vmem:[#allocation30_spill] sm:$0xff] }
 0x4eb   :  { %v9350_v4 = vpop.eup %9349  ;;  %4932 = vmatprep.subr.bf16.mxu0 %v10659_v57  ;;  %4975 = vmatprep.subr.bf16.mxu1 %v10661_v56  ;;  %v4340_v18 = vadd.f32 1.0, %v9348_v62  ;;  %v11516_v57 = vld [vmem:[#allocation47_spill] sm:$0xff]  ;;  %v11517_v56 = vld [vmem:[#allocation48_spill] sm:$0xff] }
 0x4ec   :  { %v10814_v42 = vadd.f32 %v4347_v32, %v4345_v5  ;;  %v4348_v26 = vmul.f32 %v9350_v4, %v9344_v59  ;;  %v10929_v59 = vld [vmem:[#allocation6 + $0x4] ss:$16 sps:$4 sm:$0xff]   ;;  %v10931_v32 = vld [vmem:[#allocation6 + $0xc] ss:$16 sps:$4 sm:$0xff]   ;;  %v10933_v34 = vld [vmem:[#allocation6] ss:$16 sps:$4 sm:$0xff]  }
 0x4ed   :  { %v10941_v62 = vld [vmem:[#allocation8 + $0xe4] ss:$16 sps:$4 sm:$0xff]   ;;  %v10943_v5 = vld [vmem:[#allocation8 + $0xec] ss:$16 sps:$4 sm:$0xff]  }
 0x4ee   :  { %v9352_v30 = vpop.eup %9351  ;;  %4933 = vmatpush1.bf16.msra.mxu0 %v10668_v48  ;;  %4976 = vmatpush1.bf16.msra.mxu1 %v10670_v43  ;;  %9355 = vtanh.f32 %v10814_v42  ;;  %v11518_v48 = vld [vmem:[#allocation16_spill] sm:$0xff]  ;;  %v11519_v43 = vld [vmem:[#allocation18_spill] sm:$0xff]  ;;  %11527 = vst [vmem:[#allocation74_spill] sm:$0xff] %v10943_v5 }
 0x4ef   :  { %v4346_v12 = vmul.f32 %v9352_v30, %v10694_v16  ;;  %4934 = vmatprep.subr.bf16.mxu0 %v10674_v39  ;;  %4977 = vmatprep.subr.bf16.mxu1 %v10676_v41  ;;  %9357 = vrcp.f32 %v4340_v18  ;;  %v11521_v39 = vld [vmem:[#allocation32_spill] sm:$0xff]  ;;  %v11522_v41 = vld [vmem:[#allocation54_spill] sm:$0xff] }
 0x4f0   :  { %v11528_v4 = vld [vmem:[#allocation14_spill] sm:$0xff] }
 0x4f1   :  { %v10822_v8 = vadd.f32 %v4348_v26, %v4346_v12  ;;  %v4372_v26 = vunpack.c.l.bf16 %v11528_v4 }
 0x4f2   :  { %4935 = vmatpush1.bf16.msra.mxu0 %v10682_v63  ;;  %4978 = vmatpush1.bf16.msra.mxu1 %v11516_v57  ;;  %v9354_v16 = vpop.eup %9353  ;;  %v11524_v63 = vld [vmem:[#allocation71_spill] sm:$0xff]  ;;  %v4373_v57 = vunpack.c.h.bf16 %v11528_v4 }
 0x4f3   :  { %4936 = vmatprep.subr.bf16.mxu0 %v11517_v56  ;;  %4979 = vmatprep.subr.bf16.mxu1 %v11518_v48  ;;  %9359 = vtanh.f32 %v10822_v8 }
 0x4f6   :  { %4937 = vmatpush1.bf16.msra.mxu0 %v11519_v43  ;;  %4980 = vmatpush1.bf16.msra.mxu1 %v11520_v14  ;;  %v11529_v14 = vld [vmem:[#allocation15_spill] sm:$0xff] }
 0x4f7   :  { %4938 = vmatprep.subr.bf16.mxu0 %v11521_v39  ;;  %4981 = vmatprep.subr.bf16.mxu1 %v11522_v41  ;;  %v4376_v39 = vunpack.c.l.bf16 %v11529_v14 }
 0x4fa   :  { %4939 = vmatpush1.bf16.msra.mxu0 %v11523_v7  ;;  %4982 = vmatpush1.bf16.msra.mxu1 %v11524_v63 }
 0x4fb   :  { %v9356_v17 = vpop.eup %9355  ;;  %4940 = vmatprep.subr.bf16.mxu0 %v11525_v54  ;;  %4983 = vmatprep.subr.bf16.mxu1 %v11526_v3 }
 0x4fc   :  { %v4353_v13 = vmul.f32 %v9356_v17, %v9354_v16  ;;  %v9358_v28 = vpop.eup %9357  ;;  %v4377_v17 = vunpack.c.h.bf16 %v11529_v14 }
 0x4fe   :  { %4941 = vmatpush1.bf16.msra.mxu0 %v10723_v61  ;;  %4984 = vmatpush1.bf16.msra.mxu1 %v10725_v24  ;;  %v8468_v52 = vpack.c.bf16 %v4353_v13, %v4353_v13  ;;  %v10845_v24 = vld [vmem:[#allocation6 + $0xe4] ss:$16 sps:$4 sm:$0xff]   ;;  %v10851_v61 = vld [vmem:[#allocation6 + $0xe8] ss:$16 sps:$4 sm:$0xff]  }
 0x4ff   :  { %4942 = vmatprep.subr.bf16.mxu0 %v10729_v25  ;;  %4985 = vmatprep.subr.bf16.mxu1 %v10731_v36  ;;  %v10847_v25 = vld [vmem:[#allocation6 + $0xec] ss:$16 sps:$4 sm:$0xff]   ;;  %v10849_v36 = vld [vmem:[#allocation6 + $0xe0] ss:$16 sps:$4 sm:$0xff]  }
 0x500   :  { %v9360_v33 = vpop.eup %9359  ;;  %4366 = vst [vmem:[#allocation3 + $0x44] sm:$0xf] %v8468_v52 }
 0x501   :  { %v4354_v40 = vmul.f32 %v9360_v33, %v9358_v28  ;;  %v11530_v33 = vld [vmem:[#allocation42_spill] sm:$0xff] }
 0x502   :  { %4943 = vmatpush1.bf16.msra.mxu0 %v10735_v53  ;;  %4986 = vmatpush1.bf16.msra.mxu1 %v10737_v0  ;;  %v10857_v53 = vld [vmem:[#allocation6 + $0xc4] ss:$16 sps:$4 sm:$0xff]   ;;  %v10859_v0 = vld [vmem:[#allocation6 + $0xcc] ss:$16 sps:$4 sm:$0xff]  }
 0x503   :  { %v4355_v49 = vpack.c.bf16 %v4354_v40, %v4353_v13  ;;  %v8469_v58 = vpack.c.bf16 %v4354_v40, %v4354_v40  ;;  %5284 = vmatprep.subr.bf16.mxu0 %v10845_v24  ;;  %5327 = vmatprep.subr.bf16.mxu1 %v10847_v25  ;;  %v4375_v40 = vunpack.c.h.bf16 %v11530_v33 }
 0x505   :  { %4367 = vst [vmem:[#allocation3 + $0x4c] sm:$0xf] %v8469_v58  ;;  %4961 = vmatmul.mubr.bf16.vlgmr.msra.gmra.mxu0 %v4355_v49  ;;  %5004 = vmatmul.mubr.bf16.vlgmr.msra.gmra.mxu1 %v4355_v49  ;;  %v4374_v58 = vunpack.c.l.bf16 %v11530_v33 }
 0x506   :  { %5316 = vmatprep.mubr.bf16.mxu0 %v11455_v11  ;;  %5359 = vmatprep.mubr.bf16.mxu1 %v11455_v11 }
 0x507   :  { %5285 = vmatpush1.bf16.msra.mxu0 %v10849_v36  ;;  %5328 = vmatpush1.bf16.msra.mxu1 %v10851_v61 }
 0x508   :  { %5286 = vmatprep.subr.bf16.mxu0 %v10857_v53  ;;  %5329 = vmatprep.subr.bf16.mxu1 %v10859_v0 }
 0x50b   :  { %5287 = vmatpush1.bf16.msra.mxu0 %v10861_v20  ;;  %5330 = vmatpush1.bf16.msra.mxu1 %v10863_v50 }
 0x50c   :  { %5288 = vmatprep.subr.bf16.mxu0 %v10869_v22  ;;  %5331 = vmatprep.subr.bf16.mxu1 %v10871_v51 }
 0x50f   :  { %5289 = vmatpush1.bf16.msra.mxu0 %v10873_v23  ;;  %5332 = vmatpush1.bf16.msra.mxu1 %v10875_v31 }
 0x510   :  { %5290 = vmatprep.subr.bf16.mxu0 %v10881_v38  ;;  %5333 = vmatprep.subr.bf16.mxu1 %v10883_v2 }
 0x513   :  { %5291 = vmatpush1.bf16.msra.mxu0 %v10885_v35  ;;  %5334 = vmatpush1.bf16.msra.mxu1 %v10887_v29 }
 0x514   :  { %5292 = vmatprep.subr.bf16.mxu0 %v10893_v19  ;;  %5335 = vmatprep.subr.bf16.mxu1 %v10895_v10 }
 0x517   :  { %5293 = vmatpush1.bf16.msra.mxu0 %v10897_v47  ;;  %5336 = vmatpush1.bf16.msra.mxu1 %v10899_v21 }
 0x518   :  { %5294 = vmatprep.subr.bf16.mxu0 %v10905_v1  ;;  %5337 = vmatprep.subr.bf16.mxu1 %v10907_v45 }
 0x51b   :  { %5295 = vmatpush1.bf16.msra.mxu0 %v10909_v44  ;;  %5338 = vmatpush1.bf16.msra.mxu1 %v10911_v46 }
 0x51c   :  { %5296 = vmatprep.subr.bf16.mxu0 %v10917_v55  ;;  %5339 = vmatprep.subr.bf16.mxu1 %v10919_v37 }
 0x51f   :  { %5297 = vmatpush1.bf16.msra.mxu0 %v10921_v60  ;;  %5340 = vmatpush1.bf16.msra.mxu1 %v10923_v6 }
 0x520   :  { %5298 = vmatprep.subr.bf16.mxu0 %v10929_v59  ;;  %5341 = vmatprep.subr.bf16.mxu1 %v10931_v32 }
 0x523   :  { %5299 = vmatpush1.bf16.msra.mxu0 %v10933_v34  ;;  %5342 = vmatpush1.bf16.msra.mxu1 %v10935_v9 }
 0x524   :  { %5640 = vmatprep.subr.bf16.mxu0 %v10941_v62  ;;  %5683 = vmatprep.subr.bf16.mxu1 %v10943_v5 }
 0x5a5   :  { %v4606_v30 = vpop.f32.mrf.mxu0  ;;  %v4649_v12 = vpop.f32.mrf.mxu1 }
 0x5a6   :  { %v4658_v18 = vadd.f32 %v4606_v30, %v4372_v26  ;;  %v11531_v26 = vld [vmem:[#allocation44_spill] sm:$0xff] }
 0x5a7   :  { %v4608_v56 = vpop.f32.mrf.mxu0  ;;  %v4651_v7 = vpop.f32.mrf.mxu1  ;;  %v4379_v30 = vunpack.c.h.bf16 %v11531_v26 }
 0x5a8   :  { %v8069_v48 = vmul.f32 -1.442695, %v4658_v18  ;;  %v4659_v43 = vadd.f32 %v4608_v56, %v4373_v57  ;;  %v4661_v49 = vadd.f32 %v4651_v7, %v4375_v40  ;;  %v4660_v18 = vadd.f32 %v4649_v12, %v4374_v58 }
 0x5a9   :  { %v4610_v41 = vpop.f32.mrf.mxu0  ;;  %v4653_v52 = vpop.f32.mrf.mxu1  ;;  %v4378_v56 = vunpack.c.l.bf16 %v11531_v26 }
 0x5aa   :  { %9361 = vpow2.f32 %v8069_v48  ;;  %v8071_v16 = vmul.f32 -1.442695, %v4659_v43  ;;  %v4662_v63 = vadd.f32 %v4610_v41, %v4376_v39  ;;  %v8073_v57 = vmul.f32 -1.442695, %v4661_v49 }
 0x5ab   :  { %v4612_v54 = vpop.f32.mrf.mxu0  ;;  %v4655_v4 = vpop.f32.mrf.mxu1  ;;  %v4664_v14 = vadd.f32 %v4653_v52, %v4378_v56 }
 0x5ac   :  { %9363 = vpow2.f32 %v8071_v16  ;;  %v8070_v3 = vmul.f32 -1.442695, %v4662_v63  ;;  %v4663_v13 = vadd.f32 %v4612_v54, %v4377_v17  ;;  %v4665_v48 = vadd.f32 %v4655_v4, %v4379_v30 }
 0x5ae   :  { %9365 = vpow2.f32 %v8070_v3  ;;  %v8072_v28 = vmul.f32 -1.442695, %v4663_v13  ;;  %v8074_v16 = vmul.f32 -1.442695, %v4665_v48  ;;  %v11532_v3 = vld [vmem:[#allocation39_spill] sm:$0xff]  ;;  %v11533_v48 = vld [vmem:[#allocation41_spill] sm:$0xff] }
 0x5af   :  { %v4728_v13 = vunpack.c.l.bf16 %v11532_v3  ;;  %v4729_v58 = vunpack.c.h.bf16 %v11532_v3  ;;  %v4733_v3 = vunpack.c.h.bf16 %v11533_v48 }
 0x5b0   :  { %9367 = vpow2.f32 %v8072_v28 }
 0x5b1   :  { %9369 = vtanh.f32 %v4660_v18 }
 0x5b2   :  { %9371 = vpow2.f32 %v8073_v57 }
 0x5b7   :  { %v9362_v43 = vpop.eup %9361 }
 0x5b8   :  { %v4672_v39 = vadd.f32 1.0, %v9362_v43  ;;  %v4732_v43 = vunpack.c.l.bf16 %v11533_v48 }
 0x5b9   :  { %v9364_v41 = vpop.eup %9363 }
 0x5ba   :  { %9373 = vrcp.f32 %v4672_v39  ;;  %v4684_v63 = vadd.f32 1.0, %v9364_v41 }
 0x5bb   :  { %v9366_v7 = vpop.eup %9365  ;;  %9375 = vtanh.f32 %v4664_v14 }
 0x5bc   :  { %9377 = vrcp.f32 %v4684_v63  ;;  %v4673_v17 = vadd.f32 1.0, %v9366_v7 }
 0x5bd   :  { %v9368_v54 = vpop.eup %9367  ;;  %9379 = vpow2.f32 %v8074_v16 }
 0x5be   :  { %9381 = vrcp.f32 %v4673_v17  ;;  %v4685_v12 = vadd.f32 1.0, %v9368_v54  ;;  %v9370_v28 = vpop.eup %9369 }
 0x5bf   :  { %v9372_v33 = vpop.eup %9371 }
 0x5c0   :  { %9383 = vrcp.f32 %v4685_v12  ;;  %v4698_v12 = vadd.f32 1.0, %v9372_v33 }
 0x5c5   :  { %v4962_v52 = vpop.f32.mrf.mxu0  ;;  %v5005_v49 = vpop.f32.mrf.mxu1 }
 0x5c6   :  { %v5014_v40 = vadd.f32 %v4962_v52, %v4728_v13 }
 0x5c7   :  { %v9374_v4 = vpop.eup %9373  ;;  %v4964_v26 = vpop.f32.mrf.mxu0 }
 0x5c8   :  { %v9376_v30 = vpop.eup %9375  ;;  %v4706_v18 = vmul.f32 %v9374_v4, %v9370_v28  ;;  %v8109_v57 = vmul.f32 -1.442695, %v5014_v40  ;;  %v5015_v56 = vadd.f32 %v4964_v26, %v4729_v58  ;;  %v5007_v7 = vpop.f32.mrf.mxu1 }
 0x5c9   :  { %v9378_v14 = vpop.eup %9377  ;;  %v4966_v39 = vpop.f32.mrf.mxu0 }
 0x5ca   :  { %v9380_v41 = vpop.eup %9379  ;;  %v4704_v16 = vmul.f32 %v9378_v14, %v10792_v27  ;;  %9385 = vpow2.f32 %v8109_v57  ;;  %v8111_v63 = vmul.f32 -1.442695, %v5015_v56  ;;  %v5018_v17 = vadd.f32 %v4966_v39, %v4732_v43  ;;  %v5009_v27 = vpop.f32.mrf.mxu1  ;;  %v11534_v57 = vld [vmem:[#allocation65_spill] sm:$0xff]  ;;  %v11535_v14 = vld [vmem:[#allocation66_spill] sm:$0xff] }
 0x5cb   :  { %v9382_v54 = vpop.eup %9381  ;;  %v4968_v13 = vpop.f32.mrf.mxu0  ;;  %v4699_v5 = vadd.f32 1.0, %v9380_v41  ;;  %v4731_v56 = vunpack.c.h.bf16 %v11534_v57  ;;  %v4735_v39 = vunpack.c.h.bf16 %v11535_v14 }
 0x5cc   :  { %v10960_v52 = vadd.f32 %v4706_v18, %v4704_v16  ;;  %v4707_v28 = vmul.f32 %v9382_v54, %v9376_v30  ;;  %9387 = vpow2.f32 %v8111_v63  ;;  %v8110_v40 = vmul.f32 -1.442695, %v5018_v17  ;;  %v5011_v48 = vpop.f32.mrf.mxu1 }
 0x5cd   :  { %v9384_v58 = vpop.eup %9383  ;;  %v5019_v4 = vadd.f32 %v4968_v13, %v4733_v3  ;;  %v5017_v18 = vadd.f32 %v5007_v7, %v4731_v56  ;;  %v4730_v30 = vunpack.c.l.bf16 %v11534_v57  ;;  %v4734_v16 = vunpack.c.l.bf16 %v11535_v14 }
 0x5ce   :  { %v4705_v26 = vmul.f32 %v9384_v58, %v10796_v15  ;;  %9389 = vpow2.f32 %v8110_v40  ;;  %v5021_v63 = vadd.f32 %v5011_v48, %v4735_v39  ;;  %v10975_v39 = vld [vmem:[#allocation8 + $0xc4] ss:$16 sps:$4 sm:$0xff]  }
 0x5cf   :  { %9391 = vrcp.f32 %v4698_v12  ;;  %v8112_v43 = vmul.f32 -1.442695, %v5019_v4  ;;  %v5016_v15 = vadd.f32 %v5005_v49, %v4730_v30  ;;  %v8113_v41 = vmul.f32 -1.442695, %v5017_v18  ;;  %v10971_v18 = vld [vmem:[#allocation8 + $0xe0] ss:$16 sps:$4 sm:$0xff]  }
 0x5d0   :  { %v10964_v33 = vadd.f32 %v4707_v28, %v4705_v26  ;;  %9393 = vtanh.f32 %v10960_v52  ;;  %v5020_v54 = vadd.f32 %v5009_v27, %v4734_v16  ;;  %v8114_v7 = vmul.f32 -1.442695, %v5021_v63  ;;  %v10973_v30 = vld [vmem:[#allocation8 + $0xe8] ss:$16 sps:$4 sm:$0xff]   ;;  %v10981_v63 = vld [vmem:[#allocation8 + $0xc0] ss:$16 sps:$4 sm:$0xff]  }
 0x5d1   :  { %9395 = vpow2.f32 %v8112_v43 }
 0x5d2   :  { %9397 = vrcp.f32 %v4699_v5 }
 0x5d3   :  { %9399 = vtanh.f32 %v10964_v33 }
 0x5d4   :  { %9401 = vtanh.f32 %v5016_v15  ;;  %v10977_v15 = vld [vmem:[#allocation8 + $0xcc] ss:$16 sps:$4 sm:$0xff]  }
 0x5d5   :  { %9403 = vpow2.f32 %v8113_v41 }
 0x5d7   :  { %v9386_v17 = vpop.eup %9385 }
 0x5d8   :  { %v5028_v12 = vadd.f32 1.0, %v9386_v17  ;;  %v10983_v17 = vld [vmem:[#allocation8 + $0xc8] ss:$16 sps:$4 sm:$0xff]  }
 0x5d9   :  { %v9388_v3 = vpop.eup %9387 }
 0x5da   :  { %9405 = vrcp.f32 %v5028_v12  ;;  %v5040_v5 = vadd.f32 1.0, %v9388_v3  ;;  %v10987_v12 = vld [vmem:[#allocation8 + $0xa4] ss:$16 sps:$4 sm:$0xff]   ;;  %v10989_v3 = vld [vmem:[#allocation8 + $0xac] ss:$16 sps:$4 sm:$0xff]  }
 0x5db   :  { %v9390_v13 = vpop.eup %9389  ;;  %9407 = vtanh.f32 %v5020_v54 }
 0x5dc   :  { %v9392_v28 = vpop.eup %9391  ;;  %9409 = vrcp.f32 %v5040_v5  ;;  %v5029_v40 = vadd.f32 1.0, %v9390_v13 }
 0x5dd   :  { %v9394_v58 = vpop.eup %9393  ;;  %9411 = vpow2.f32 %v8114_v7 }
 0x5de   :  { %v9396_v49 = vpop.eup %9395  ;;  %9413 = vrcp.f32 %v5029_v40  ;;  %v4712_v4 = vmul.f32 %v9394_v58, %v9392_v28 }
 0x5df   :  { %v9398_v26 = vpop.eup %9397  ;;  %v5041_v57 = vadd.f32 1.0, %v9396_v49  ;;  %v10996_v49 = vld [vmem:[#allocation8 + $0xa0] ss:$16 sps:$4 sm:$0xff]  }
 0x5e0   :  { %v9400_v27 = vpop.eup %9399  ;;  %v8470_v56 = vpack.c.bf16 %v4712_v4, %v4712_v4 }
 0x5e1   :  { %9415 = vrcp.f32 %v5041_v57  ;;  %v4713_v43 = vmul.f32 %v9400_v27, %v9398_v26  ;;  %v9402_v41 = vpop.eup %9401  ;;  %v11002_v57 = vld [vmem:[#allocation8 + $0x84] ss:$16 sps:$4 sm:$0xff]   ;;  %v11004_v27 = vld [vmem:[#allocation8 + $0x8c] ss:$16 sps:$4 sm:$0xff]  }
 0x5e2   :  { %4722 = vst [vmem:[#allocation3 + $0x40] sm:$0xf] %v8470_v56  ;;  %v9404_v16 = vpop.eup %9403 }
 0x5e3   :  { %v4714_v48 = vpack.c.bf16 %v4713_v43, %v4712_v4  ;;  %v8471_v14 = vpack.c.bf16 %v4713_v43, %v4713_v43  ;;  %v5054_v28 = vadd.f32 1.0, %v9404_v16  ;;  %v10998_v4 = vld [vmem:[#allocation8 + $0xa8] ss:$16 sps:$4 sm:$0xff]  }
 0x5e5   :  { %4723 = vst [vmem:[#allocation3 + $0x48] sm:$0xf] %v8471_v14  ;;  %5317 = vmatmul.mubr.bf16.vlgmr.msra.gmra.mxu0 %v4714_v48  ;;  %5360 = vmatmul.mubr.bf16.vlgmr.msra.gmra.mxu1 %v4714_v48  ;;  %9417 = vrcp.f32 %v5054_v28  ;;  %v11010_v14 = vld [vmem:[#allocation8 + $0x80] ss:$16 sps:$4 sm:$0xff]   ;;  %v11028_v28 = vld [vmem:[#allocation8 + $0x68] ss:$16 sps:$4 sm:$0xff]  }
 0x5e6   :  { %5641 = vmatpush1.bf16.msra.mxu0 %v10971_v18  ;;  %5684 = vmatpush1.bf16.msra.mxu1 %v10973_v30  ;;  %11540 = vst [vmem:[#allocation79_spill] sm:$0xff] %v11028_v28 }
 0x5e7   :  { %v9406_v54 = vpop.eup %9405  ;;  %5642 = vmatprep.subr.bf16.mxu0 %v10975_v39  ;;  %5685 = vmatprep.subr.bf16.mxu1 %v10977_v15 }
 0x5e8   :  { %v9408_v7 = vpop.eup %9407  ;;  %v5062_v5 = vmul.f32 %v9406_v54, %v9402_v41  ;;  %5672 = vmatprep.mubr.bf16.mxu0 %v11455_v11  ;;  %5715 = vmatprep.mubr.bf16.mxu1 %v11455_v11  ;;  %v11012_v41 = vld [vmem:[#allocation8 + $0x88] ss:$16 sps:$4 sm:$0xff]   ;;  %v11018_v54 = vld [vmem:[#allocation8 + $0x64] ss:$16 sps:$4 sm:$0xff]  }
 0x5e9   :  { %v9410_v13 = vpop.eup %9409  ;;  %11536 = vst [vmem:[#allocation75_spill] sm:$0xff] %v11012_v41  ;;  %11537 = vst [vmem:[#allocation76_spill] sm:$0xff] %v11018_v54 }
 0x5ea   :  { %v9412_v40 = vpop.eup %9411  ;;  %v5060_v58 = vmul.f32 %v9410_v13, %v10814_v42  ;;  %5643 = vmatpush1.bf16.msra.mxu0 %v10981_v63  ;;  %5686 = vmatpush1.bf16.msra.mxu1 %v10983_v17  ;;  %v11026_v13 = vld [vmem:[#allocation8 + $0x60] ss:$16 sps:$4 sm:$0xff]  }
 0x5eb   :  { %v9414_v26 = vpop.eup %9413  ;;  %5644 = vmatprep.subr.bf16.mxu0 %v10987_v12  ;;  %5687 = vmatprep.subr.bf16.mxu1 %v10989_v3  ;;  %v5055_v48 = vadd.f32 1.0, %v9412_v40  ;;  %11539 = vst [vmem:[#allocation78_spill] sm:$0xff] %v11026_v13  ;;  %v11034_v40 = vld [vmem:[#allocation8 + $0x4c] ss:$16 sps:$4 sm:$0xff]  }
 0x5ec   :  { %v11006_v56 = vadd.f32 %v5062_v5, %v5060_v58  ;;  %v5063_v42 = vmul.f32 %v9414_v26, %v9408_v7  ;;  %v11020_v7 = vld [vmem:[#allocation8 + $0x6c] ss:$16 sps:$4 sm:$0xff]   ;;  %11542 = vst [vmem:[#allocation81_spill] sm:$0xff] %v11034_v40  ;;  %v11039_v58 = vld [vmem:[#allocation8 + $0x40] ss:$16 sps:$4 sm:$0xff]  }
 0x5ed   :  { %11538 = vst [vmem:[#allocation77_spill] sm:$0xff] %v11020_v7  ;;  %11543 = vst [vmem:[#allocation20_spill] sm:$0xff] %v11039_v58  ;;  %v11041_v26 = vld [vmem:[#allocation8 + $0x48] ss:$16 sps:$4 sm:$0xff]  }
 0x5ee   :  { %v9416_v43 = vpop.eup %9415  ;;  %5645 = vmatpush1.bf16.msra.mxu0 %v10996_v49  ;;  %5688 = vmatpush1.bf16.msra.mxu1 %v10998_v4  ;;  %9419 = vtanh.f32 %v11006_v56  ;;  %11544 = vst [vmem:[#allocation22_spill] sm:$0xff] %v11041_v26 }
 0x5ef   :  { %v5061_v16 = vmul.f32 %v9416_v43, %v10822_v8  ;;  %5646 = vmatprep.subr.bf16.mxu0 %v11002_v57  ;;  %5689 = vmatprep.subr.bf16.mxu1 %v11004_v27  ;;  %9421 = vrcp.f32 %v5055_v48  ;;  %v11032_v8 = vld [vmem:[#allocation8 + $0x44] ss:$16 sps:$4 sm:$0xff]   ;;  %v11047_v43 = vld [vmem:[#allocation8 + $0x2c] ss:$16 sps:$4 sm:$0xff]  }
 0x5f0   :  { %11541 = vst [vmem:[#allocation80_spill] sm:$0xff] %v11032_v8  ;;  %11546 = vst [vmem:[#allocation36_spill] sm:$0xff] %v11047_v43 }
 0x5f1   :  { %v11022_v5 = vadd.f32 %v5063_v42, %v5061_v16  ;;  %v11045_v42 = vld [vmem:[#allocation8 + $0x24] ss:$16 sps:$4 sm:$0xff]   ;;  %v11051_v16 = vld [vmem:[#allocation8 + $0x20] ss:$16 sps:$4 sm:$0xff]  }
 0x5f2   :  { %5647 = vmatpush1.bf16.msra.mxu0 %v11010_v14  ;;  %5690 = vmatpush1.bf16.msra.mxu1 %v11012_v41  ;;  %11545 = vst [vmem:[#allocation34_spill] sm:$0xff] %v11045_v42  ;;  %v9418_v48 = vpop.eup %9417 }
 0x5f3   :  { %5648 = vmatprep.subr.bf16.mxu0 %v11018_v54  ;;  %5691 = vmatprep.subr.bf16.mxu1 %v11020_v7  ;;  %9423 = vtanh.f32 %v11022_v5 }
 0x5f6   :  { %5649 = vmatpush1.bf16.msra.mxu0 %v11026_v13  ;;  %5692 = vmatpush1.bf16.msra.mxu1 %v11028_v28  ;;  %v11053_v28 = vld [vmem:[#allocation8 + $0x28] ss:$16 sps:$4 sm:$0xff]  }
 0x5f7   :  { %5650 = vmatprep.subr.bf16.mxu0 %v11032_v8  ;;  %5693 = vmatprep.subr.bf16.mxu1 %v11034_v40  ;;  %v11057_v8 = vld [vmem:[#allocation8 + $0x4] ss:$16 sps:$4 sm:$0xff]   ;;  %v11059_v40 = vld [vmem:[#allocation8 + $0xc] ss:$16 sps:$4 sm:$0xff]  }
 0x5fa   :  { %5651 = vmatpush1.bf16.msra.mxu0 %v11039_v58  ;;  %5694 = vmatpush1.bf16.msra.mxu1 %v11041_v26  ;;  %v11063_v58 = vld [vmem:[#allocation8] ss:$16 sps:$4 sm:$0xff]   ;;  %v11065_v26 = vld [vmem:[#allocation8 + $0x8] ss:$16 sps:$4 sm:$0xff]  }
 0x5fb   :  { %v9420_v13 = vpop.eup %9419  ;;  %5652 = vmatprep.subr.bf16.mxu0 %v11045_v42  ;;  %5695 = vmatprep.subr.bf16.mxu1 %v11047_v43 }
 0x5fc   :  { %v5068_v7 = vmul.f32 %v9420_v13, %v9418_v48  ;;  %v9422_v41 = vpop.eup %9421 }
 0x5fe   :  { %5653 = vmatpush1.bf16.msra.mxu0 %v11051_v16  ;;  %5696 = vmatpush1.bf16.msra.mxu1 %v11053_v28  ;;  %v8472_v54 = vpack.c.bf16 %v5068_v7, %v5068_v7 }
 0x5ff   :  { %5654 = vmatprep.subr.bf16.mxu0 %v11057_v8  ;;  %5697 = vmatprep.subr.bf16.mxu1 %v11059_v40 }
 0x600   :  { %v9424_v43 = vpop.eup %9423  ;;  %5078 = vst [vmem:[#allocation3 + $0x34] sm:$0xf] %v8472_v54 }
 0x601   :  { %v5069_v42 = vmul.f32 %v9424_v43, %v9422_v41 }
 0x602   :  { %5655 = vmatpush1.bf16.msra.mxu0 %v11063_v58  ;;  %5698 = vmatpush1.bf16.msra.mxu1 %v11065_v26 }
 0x603   :  { %v5070_v13 = vpack.c.bf16 %v5069_v42, %v5068_v7  ;;  %v8473_v48 = vpack.c.bf16 %v5069_v42, %v5069_v42  ;;  %5996 = vmatprep.subr.bf16.mxu0 %v10845_v24  ;;  %6039 = vmatprep.subr.bf16.mxu1 %v10847_v25  ;;  %v11547_v24 = vld [vmem:[#allocation74_spill] sm:$0xff]  ;;  %v11548_v25 = vld [vmem:[#allocation17_spill] sm:$0xff] }
 0x605   :  { %5079 = vst [vmem:[#allocation3 + $0x3c] sm:$0xf] %v8473_v48  ;;  %5673 = vmatmul.mubr.bf16.vlgmr.msra.gmra.mxu0 %v5070_v13  ;;  %5716 = vmatmul.mubr.bf16.vlgmr.msra.gmra.mxu1 %v5070_v13 }
 0x606   :  { %5997 = vmatpush1.bf16.msra.mxu0 %v10849_v36  ;;  %6040 = vmatpush1.bf16.msra.mxu1 %v10851_v61  ;;  %v5084_v36 = vunpack.c.l.bf16 %v11548_v25 }
 0x607   :  { %5998 = vmatprep.subr.bf16.mxu0 %v10857_v53  ;;  %6041 = vmatprep.subr.bf16.mxu1 %v10859_v0 }
 0x608   :  { %6028 = vmatprep.mubr.bf16.mxu0 %v11455_v11  ;;  %6071 = vmatprep.mubr.bf16.mxu1 %v11455_v11 }
 0x60a   :  { %5999 = vmatpush1.bf16.msra.mxu0 %v10861_v20  ;;  %6042 = vmatpush1.bf16.msra.mxu1 %v10863_v50  ;;  %v5085_v20 = vunpack.c.h.bf16 %v11548_v25 }
 0x60b   :  { %6000 = vmatprep.subr.bf16.mxu0 %v10869_v22  ;;  %6043 = vmatprep.subr.bf16.mxu1 %v10871_v51 }
 0x60e   :  { %6001 = vmatpush1.bf16.msra.mxu0 %v10873_v23  ;;  %6044 = vmatpush1.bf16.msra.mxu1 %v10875_v31  ;;  %v11549_v23 = vld [vmem:[#allocation19_spill] sm:$0xff] }
 0x60f   :  { %6002 = vmatprep.subr.bf16.mxu0 %v10881_v38  ;;  %6045 = vmatprep.subr.bf16.mxu1 %v10883_v2  ;;  %v5088_v31 = vunpack.c.l.bf16 %v11549_v23 }
 0x612   :  { %6003 = vmatpush1.bf16.msra.mxu0 %v10885_v35  ;;  %6046 = vmatpush1.bf16.msra.mxu1 %v10887_v29 }
 0x613   :  { %6004 = vmatprep.subr.bf16.mxu0 %v10893_v19  ;;  %6047 = vmatprep.subr.bf16.mxu1 %v10895_v10  ;;  %v5089_v19 = vunpack.c.h.bf16 %v11549_v23 }
 0x616   :  { %6005 = vmatpush1.bf16.msra.mxu0 %v10897_v47  ;;  %6048 = vmatpush1.bf16.msra.mxu1 %v10899_v21 }
 0x617   :  { %6006 = vmatprep.subr.bf16.mxu0 %v10905_v1  ;;  %6049 = vmatprep.subr.bf16.mxu1 %v10907_v45 }
 0x61a   :  { %6007 = vmatpush1.bf16.msra.mxu0 %v10909_v44  ;;  %6050 = vmatpush1.bf16.msra.mxu1 %v10911_v46  ;;  %v11550_v44 = vld [vmem:[#allocation49_spill] sm:$0xff] }
 0x61b   :  { %6008 = vmatprep.subr.bf16.mxu0 %v10917_v55  ;;  %6051 = vmatprep.subr.bf16.mxu1 %v10919_v37  ;;  %v5087_v46 = vunpack.c.h.bf16 %v11550_v44  ;;  %v5086_v37 = vunpack.c.l.bf16 %v11550_v44 }
 0x61e   :  { %6009 = vmatpush1.bf16.msra.mxu0 %v10921_v60  ;;  %6052 = vmatpush1.bf16.msra.mxu1 %v10923_v6  ;;  %v11551_v6 = vld [vmem:[#allocation51_spill] sm:$0xff] }
 0x61f   :  { %6010 = vmatprep.subr.bf16.mxu0 %v10929_v59  ;;  %6053 = vmatprep.subr.bf16.mxu1 %v10931_v32  ;;  %v5091_v59 = vunpack.c.h.bf16 %v11551_v6 }
 0x622   :  { %6011 = vmatpush1.bf16.msra.mxu0 %v10933_v34  ;;  %6054 = vmatpush1.bf16.msra.mxu1 %v10935_v9  ;;  %v5090_v9 = vunpack.c.l.bf16 %v11551_v6 }
 0x623   :  { %6352 = vmatprep.subr.bf16.mxu0 %v10941_v62  ;;  %6395 = vmatprep.subr.bf16.mxu1 %v11547_v24 }
 0x6a5   :  { %v5318_v61 = vpop.f32.mrf.mxu0  ;;  %v5361_v0 = vpop.f32.mrf.mxu1 }
 0x6a6   :  { %v5370_v53 = vadd.f32 %v5318_v61, %v5084_v36  ;;  %v5372_v32 = vadd.f32 %v5361_v0, %v5086_v37  ;;  %v11552_v61 = vld [vmem:[#allocation35_spill] sm:$0xff] }
 0x6a7   :  { %v5320_v50 = vpop.f32.mrf.mxu0  ;;  %v5363_v35 = vpop.f32.mrf.mxu1  ;;  %v5441_v23 = vunpack.c.h.bf16 %v11552_v61 }
 0x6a8   :  { %v8149_v22 = vmul.f32 -1.442695, %v5370_v53  ;;  %v5371_v51 = vadd.f32 %v5320_v50, %v5085_v20  ;;  %v5373_v55 = vadd.f32 %v5363_v35, %v5087_v46  ;;  %v5440_v53 = vunpack.c.l.bf16 %v11552_v61 }
 0x6a9   :  { %v5322_v38 = vpop.f32.mrf.mxu0  ;;  %v5365_v1 = vpop.f32.mrf.mxu1 }
 0x6aa   :  { %9425 = vpow2.f32 %v8149_v22  ;;  %v8151_v2 = vmul.f32 -1.442695, %v5371_v51  ;;  %v5374_v29 = vadd.f32 %v5322_v38, %v5088_v31  ;;  %v8153_v34 = vmul.f32 -1.442695, %v5373_v55 }
 0x6ab   :  { %v5324_v10 = vpop.f32.mrf.mxu0  ;;  %v5367_v60 = vpop.f32.mrf.mxu1  ;;  %v5376_v54 = vadd.f32 %v5365_v1, %v5090_v9 }
 0x6ac   :  { %9427 = vpow2.f32 %v8151_v2  ;;  %v8150_v47 = vmul.f32 -1.442695, %v5374_v29  ;;  %v5375_v21 = vadd.f32 %v5324_v10, %v5089_v19  ;;  %v5377_v62 = vadd.f32 %v5367_v60, %v5091_v59  ;;  %v11553_v10 = vld [vmem:[#allocation37_spill] sm:$0xff] }
 0x6ad   :  { %v5445_v59 = vunpack.c.h.bf16 %v11553_v10 }
 0x6ae   :  { %9429 = vpow2.f32 %v8150_v47  ;;  %v8152_v45 = vmul.f32 -1.442695, %v5375_v21  ;;  %v8154_v43 = vmul.f32 -1.442695, %v5377_v62  ;;  %v5444_v47 = vunpack.c.l.bf16 %v11553_v10 }
 0x6b0   :  { %9431 = vpow2.f32 %v8152_v45 }
 0x6b1   :  { %9433 = vtanh.f32 %v5372_v32 }
 0x6b2   :  { %9435 = vpow2.f32 %v8153_v34 }
 0x6b7   :  { %v9426_v41 = vpop.eup %9425 }
 0x6b8   :  { %v5384_v7 = vadd.f32 1.0, %v9426_v41 }
 0x6b9   :  { %v9428_v42 = vpop.eup %9427 }
 0x6ba   :  { %9437 = vrcp.f32 %v5384_v7  ;;  %v5396_v13 = vadd.f32 1.0, %v9428_v42 }
 0x6bb   :  { %v9430_v48 = vpop.eup %9429  ;;  %9439 = vtanh.f32 %v5376_v54 }
 0x6bc   :  { %9441 = vrcp.f32 %v5396_v13  ;;  %v5385_v24 = vadd.f32 1.0, %v9430_v48 }
 0x6bd   :  { %v9432_v25 = vpop.eup %9431  ;;  %9443 = vpow2.f32 %v8154_v43  ;;  %v11554_v43 = vld [vmem:[#allocation63_spill] sm:$0xff] }
 0x6be   :  { %9445 = vrcp.f32 %v5385_v24  ;;  %v5397_v36 = vadd.f32 1.0, %v9432_v25  ;;  %v9434_v0 = vpop.eup %9433  ;;  %v5443_v13 = vunpack.c.h.bf16 %v11554_v43 }
 0x6bf   :  { %v9436_v50 = vpop.eup %9435 }
 0x6c0   :  { %9447 = vrcp.f32 %v5397_v36  ;;  %v5410_v6 = vadd.f32 1.0, %v9436_v50  ;;  %v5442_v36 = vunpack.c.l.bf16 %v11554_v43 }
 0x6c5   :  { %v5674_v20 = vpop.f32.mrf.mxu0  ;;  %v5717_v51 = vpop.f32.mrf.mxu1 }
 0x6c6   :  { %v5726_v22 = vadd.f32 %v5674_v20, %v5440_v53  ;;  %v11555_v53 = vld [vmem:[#allocation64_spill] sm:$0xff] }
 0x6c7   :  { %v9438_v31 = vpop.eup %9437  ;;  %v5676_v38 = vpop.f32.mrf.mxu0  ;;  %v5446_v50 = vunpack.c.l.bf16 %v11555_v53 }
 0x6c8   :  { %v9440_v2 = vpop.eup %9439  ;;  %v5418_v35 = vmul.f32 %v9438_v31, %v9434_v0  ;;  %v8189_v29 = vmul.f32 -1.442695, %v5726_v22  ;;  %v5727_v19 = vadd.f32 %v5676_v38, %v5441_v23  ;;  %v5719_v55 = vpop.f32.mrf.mxu1  ;;  %v5447_v0 = vunpack.c.h.bf16 %v11555_v53 }
 0x6c9   :  { %v9442_v21 = vpop.eup %9441  ;;  %v5678_v1 = vpop.f32.mrf.mxu0  ;;  %v5729_v25 = vadd.f32 %v5719_v55, %v5443_v13  ;;  %v11563_v13 = vld [vmem:[#allocation20_spill] sm:$0xff] }
 0x6ca   :  { %v9444_v45 = vpop.eup %9443  ;;  %v5416_v44 = vmul.f32 %v9442_v21, %v10960_v52  ;;  %9449 = vpow2.f32 %v8189_v29  ;;  %v8191_v46 = vmul.f32 -1.442695, %v5727_v19  ;;  %v5730_v37 = vadd.f32 %v5678_v1, %v5444_v47  ;;  %v5721_v52 = vpop.f32.mrf.mxu1 }
 0x6cb   :  { %v9446_v60 = vpop.eup %9445  ;;  %v5680_v32 = vpop.f32.mrf.mxu0  ;;  %v5411_v42 = vadd.f32 1.0, %v9444_v45  ;;  %v8193_v20 = vmul.f32 -1.442695, %v5729_v25  ;;  %v5732_v31 = vadd.f32 %v5721_v52, %v5446_v50  ;;  %v11565_v25 = vld [vmem:[#allocation34_spill] sm:$0xff] }
 0x6cc   :  { %v11120_v34 = vadd.f32 %v5418_v35, %v5416_v44  ;;  %v5419_v9 = vmul.f32 %v9446_v60, %v9440_v2  ;;  %9451 = vpow2.f32 %v8191_v46  ;;  %v8190_v62 = vmul.f32 -1.442695, %v5730_v37  ;;  %v5723_v61 = vpop.f32.mrf.mxu1 }
 0x6cd   :  { %v9448_v41 = vpop.eup %9447  ;;  %v5731_v54 = vadd.f32 %v5680_v32, %v5445_v59  ;;  %v5733_v22 = vadd.f32 %v5723_v61, %v5447_v0 }
 0x6ce   :  { %v5417_v7 = vmul.f32 %v9448_v41, %v10964_v33  ;;  %9453 = vpow2.f32 %v8190_v62  ;;  %v5728_v33 = vadd.f32 %v5717_v51, %v5442_v36  ;;  %v11566_v36 = vld [vmem:[#allocation36_spill] sm:$0xff] }
 0x6cf   :  { %9455 = vrcp.f32 %v5410_v6  ;;  %v8192_v48 = vmul.f32 -1.442695, %v5731_v54  ;;  %v8194_v35 = vmul.f32 -1.442695, %v5733_v22 }
 0x6d0   :  { %v11124_v24 = vadd.f32 %v5419_v9, %v5417_v7  ;;  %9457 = vtanh.f32 %v11120_v34 }
 0x6d1   :  { %9459 = vpow2.f32 %v8192_v48 }
 0x6d2   :  { %9461 = vrcp.f32 %v5411_v42 }
 0x6d3   :  { %9463 = vtanh.f32 %v11124_v24 }
 0x6d4   :  { %9465 = vtanh.f32 %v5728_v33 }
 0x6d5   :  { %9467 = vpow2.f32 %v8193_v20 }
 0x6d7   :  { %v9450_v23 = vpop.eup %9449 }
 0x6d8   :  { %v5740_v38 = vadd.f32 1.0, %v9450_v23  ;;  %v8980_v23 = vld [vmem:[#allocation6 + $0xcc] ss:$16 sps:$4 sm:$0xff]  }
 0x6d9   :  { %v9452_v2 = vpop.eup %9451 }
 0x6da   :  { %9469 = vrcp.f32 %v5740_v38  ;;  %v5752_v29 = vadd.f32 1.0, %v9452_v2  ;;  %v8983_v38 = vld [vmem:[#allocation6 + $0xa4] ss:$16 sps:$4 sm:$0xff]   ;;  %v8986_v2 = vld [vmem:[#allocation6 + $0xac] ss:$16 sps:$4 sm:$0xff]  }
 0x6db   :  { %v9454_v19 = vpop.eup %9453  ;;  %9471 = vtanh.f32 %v5732_v31  ;;  %v8978_v31 = vld [vmem:[#allocation6 + $0xc8] ss:$16 sps:$4 sm:$0xff]  }
 0x6dc   :  { %v9456_v10 = vpop.eup %9455  ;;  %9473 = vrcp.f32 %v5752_v29  ;;  %v5741_v47 = vadd.f32 1.0, %v9454_v19  ;;  %v8984_v29 = vld [vmem:[#allocation6 + $0xa8] ss:$16 sps:$4 sm:$0xff]   ;;  %v8989_v19 = vld [vmem:[#allocation6 + $0x84] ss:$16 sps:$4 sm:$0xff]  }
 0x6dd   :  { %v9458_v21 = vpop.eup %9457  ;;  %9475 = vpow2.f32 %v8194_v35  ;;  %v8981_v35 = vld [vmem:[#allocation6 + $0xa0] ss:$16 sps:$4 sm:$0xff]  }
 0x6de   :  { %v9460_v51 = vpop.eup %9459  ;;  %9477 = vrcp.f32 %v5741_v47  ;;  %v5424_v1 = vmul.f32 %v9458_v21, %v9456_v10  ;;  %v8992_v10 = vld [vmem:[#allocation6 + $0x8c] ss:$16 sps:$4 sm:$0xff]   ;;  %v8987_v47 = vld [vmem:[#allocation6 + $0x80] ss:$16 sps:$4 sm:$0xff]   ;;  %v8990_v21 = vld [vmem:[#allocation6 + $0x88] ss:$16 sps:$4 sm:$0xff]  }
 0x6df   :  { %v9462_v45 = vpop.eup %9461  ;;  %v5753_v44 = vadd.f32 1.0, %v9460_v51  ;;  %v8995_v51 = vld [vmem:[#allocation6 + $0x64] ss:$16 sps:$4 sm:$0xff]  }
 0x6e0   :  { %v9464_v46 = vpop.eup %9463  ;;  %v8474_v55 = vpack.c.bf16 %v5424_v1, %v5424_v1 }
 0x6e1   :  { %9479 = vrcp.f32 %v5753_v44  ;;  %v5425_v37 = vmul.f32 %v9464_v46, %v9462_v45  ;;  %v9466_v59 = vpop.eup %9465  ;;  %v8993_v45 = vld [vmem:[#allocation6 + $0x60] ss:$16 sps:$4 sm:$0xff]   ;;  %v8996_v44 = vld [vmem:[#allocation6 + $0x68] ss:$16 sps:$4 sm:$0xff]   ;;  %v9001_v46 = vld [vmem:[#allocation6 + $0x44] ss:$16 sps:$4 sm:$0xff]  }
 0x6e2   :  { %5434 = vst [vmem:[#allocation3 + $0x50] sm:$0xf] %v8474_v55  ;;  %v9468_v32 = vpop.eup %9467  ;;  %v9004_v55 = vld [vmem:[#allocation6 + $0x4c] ss:$16 sps:$4 sm:$0xff]  }
 0x6e3   :  { %v5426_v60 = vpack.c.bf16 %v5425_v37, %v5424_v1  ;;  %v8475_v6 = vpack.c.bf16 %v5425_v37, %v5425_v37  ;;  %v5766_v7 = vadd.f32 1.0, %v9468_v32  ;;  %v8998_v1 = vld [vmem:[#allocation6 + $0x6c] ss:$16 sps:$4 sm:$0xff]   ;;  %v8999_v37 = vld [vmem:[#allocation6 + $0x40] ss:$16 sps:$4 sm:$0xff]  }
 0x6e4   :  { %v9005_v32 = vld [vmem:[#allocation6 + $0x20] ss:$16 sps:$4 sm:$0xff]  }
 0x6e5   :  { %5435 = vst [vmem:[#allocation3 + $0x58] sm:$0xf] %v8475_v6  ;;  %6029 = vmatmul.mubr.bf16.vlgmr.msra.gmra.mxu0 %v5426_v60  ;;  %6072 = vmatmul.mubr.bf16.vlgmr.msra.gmra.mxu1 %v5426_v60  ;;  %9481 = vrcp.f32 %v5766_v7  ;;  %v9002_v60 = vld [vmem:[#allocation6 + $0x48] ss:$16 sps:$4 sm:$0xff]   ;;  %v9007_v6 = vld [vmem:[#allocation6 + $0x24] ss:$16 sps:$4 sm:$0xff]  }
 0x6e6   :  { %6353 = vmatpush1.bf16.msra.mxu0 %v10971_v18  ;;  %6396 = vmatpush1.bf16.msra.mxu1 %v10973_v30  ;;  %v9014_v7 = vld [vmem:[#allocation6 + $0x8] ss:$16 sps:$4 sm:$0xff]  }
 0x6e7   :  { %v9470_v9 = vpop.eup %9469  ;;  %6354 = vmatprep.subr.bf16.mxu0 %v10975_v39  ;;  %6397 = vmatprep.subr.bf16.mxu1 %v10977_v15 }
 0x6e8   :  { %v9472_v62 = vpop.eup %9471  ;;  %v5774_v41 = vmul.f32 %v9470_v9, %v9466_v59  ;;  %6384 = vmatprep.mubr.bf16.mxu0 %v11455_v11  ;;  %6427 = vmatprep.mubr.bf16.mxu1 %v11455_v11  ;;  %v9010_v59 = vld [vmem:[#allocation6 + $0x2c] ss:$16 sps:$4 sm:$0xff]   ;;  %v9008_v9 = vld [vmem:[#allocation6 + $0x28] ss:$16 sps:$4 sm:$0xff]  }
 0x6e9   :  { %v9474_v54 = vpop.eup %9473 }
 0x6ea   :  { %v9476_v42 = vpop.eup %9475  ;;  %v5772_v52 = vmul.f32 %v9474_v54, %v11006_v56  ;;  %6355 = vmatpush1.bf16.msra.mxu0 %v10981_v63  ;;  %6398 = vmatpush1.bf16.msra.mxu1 %v10983_v17  ;;  %v11560_v56 = vld [vmem:[#allocation79_spill] sm:$0xff]  ;;  %v9011_v54 = vld [vmem:[#allocation6] ss:$16 sps:$4 sm:$0xff]  }
 0x6eb   :  { %v9478_v18 = vpop.eup %9477  ;;  %6356 = vmatprep.subr.bf16.mxu0 %v10987_v12  ;;  %6399 = vmatprep.subr.bf16.mxu1 %v10989_v3  ;;  %v5767_v43 = vadd.f32 1.0, %v9476_v42  ;;  %v11556_v12 = vld [vmem:[#allocation75_spill] sm:$0xff]  ;;  %v11557_v3 = vld [vmem:[#allocation76_spill] sm:$0xff] }
 0x6ec   :  { %v11142_v30 = vadd.f32 %v5774_v41, %v5772_v52  ;;  %v5775_v39 = vmul.f32 %v9478_v18, %v9472_v62  ;;  %v9013_v62 = vld [vmem:[#allocation6 + $0x4] ss:$16 sps:$4 sm:$0xff]   ;;  %v9016_v41 = vld [vmem:[#allocation6 + $0xc] ss:$16 sps:$4 sm:$0xff]  }
 0x6ed   :  { %v9019_v42 = vld [vmem:[#allocation8 + $0xe4] ss:$16 sps:$4 sm:$0xff]   ;;  %v9022_v52 = vld [vmem:[#allocation8 + $0xec] ss:$16 sps:$4 sm:$0xff]  }
 0x6ee   :  { %v9480_v15 = vpop.eup %9479  ;;  %6357 = vmatpush1.bf16.msra.mxu0 %v10996_v49  ;;  %6400 = vmatpush1.bf16.msra.mxu1 %v10998_v4  ;;  %9483 = vtanh.f32 %v11142_v30  ;;  %v11558_v49 = vld [vmem:[#allocation77_spill] sm:$0xff]  ;;  %v11559_v4 = vld [vmem:[#allocation78_spill] sm:$0xff] }
 0x6ef   :  { %v5773_v63 = vmul.f32 %v9480_v15, %v11022_v5  ;;  %6358 = vmatprep.subr.bf16.mxu0 %v11002_v57  ;;  %6401 = vmatprep.subr.bf16.mxu1 %v11004_v27  ;;  %9485 = vrcp.f32 %v5767_v43  ;;  %v11561_v57 = vld [vmem:[#allocation80_spill] sm:$0xff]  ;;  %v11562_v27 = vld [vmem:[#allocation81_spill] sm:$0xff] }
 0x6f0   :  { %v11567_v18 = vld [vmem:[#allocation21_spill] sm:$0xff] }
 0x6f1   :  { %v11150_v17 = vadd.f32 %v5775_v39, %v5773_v63  ;;  %v5796_v39 = vunpack.c.l.bf16 %v11567_v18 }
 0x6f2   :  { %6359 = vmatpush1.bf16.msra.mxu0 %v11010_v14  ;;  %6402 = vmatpush1.bf16.msra.mxu1 %v11556_v12  ;;  %v9482_v5 = vpop.eup %9481  ;;  %v11564_v14 = vld [vmem:[#allocation22_spill] sm:$0xff]  ;;  %v5797_v12 = vunpack.c.h.bf16 %v11567_v18 }
 0x6f3   :  { %6360 = vmatprep.subr.bf16.mxu0 %v11557_v3  ;;  %6403 = vmatprep.subr.bf16.mxu1 %v11558_v49  ;;  %9487 = vtanh.f32 %v11150_v17 }
 0x6f6   :  { %6361 = vmatpush1.bf16.msra.mxu0 %v11559_v4  ;;  %6404 = vmatpush1.bf16.msra.mxu1 %v11560_v56  ;;  %v11568_v56 = vld [vmem:[#allocation23_spill] sm:$0xff] }
 0x6f7   :  { %6362 = vmatprep.subr.bf16.mxu0 %v11561_v57  ;;  %6405 = vmatprep.subr.bf16.mxu1 %v11562_v27  ;;  %v5800_v57 = vunpack.c.l.bf16 %v11568_v56 }
 0x6fa   :  { %6363 = vmatpush1.bf16.msra.mxu0 %v11563_v13  ;;  %6406 = vmatpush1.bf16.msra.mxu1 %v11564_v14 }
 0x6fb   :  { %v9484_v48 = vpop.eup %9483  ;;  %6364 = vmatprep.subr.bf16.mxu0 %v11565_v25  ;;  %6407 = vmatprep.subr.bf16.mxu1 %v11566_v36 }
 0x6fc   :  { %v5780_v61 = vmul.f32 %v9484_v48, %v9482_v5  ;;  %v9486_v0 = vpop.eup %9485  ;;  %v5801_v48 = vunpack.c.h.bf16 %v11568_v56 }
 0x6fe   :  { %6365 = vmatpush1.bf16.msra.mxu0 %v11051_v16  ;;  %6408 = vmatpush1.bf16.msra.mxu1 %v11053_v28  ;;  %v8476_v53 = vpack.c.bf16 %v5780_v61, %v5780_v61  ;;  %v8971_v28 = vld [vmem:[#allocation6 + $0xe4] ss:$16 sps:$4 sm:$0xff]   ;;  %v8969_v16 = vld [vmem:[#allocation6 + $0xe0] ss:$16 sps:$4 sm:$0xff]  }
 0x6ff   :  { %6366 = vmatprep.subr.bf16.mxu0 %v11057_v8  ;;  %6409 = vmatprep.subr.bf16.mxu1 %v11059_v40  ;;  %v8974_v8 = vld [vmem:[#allocation6 + $0xec] ss:$16 sps:$4 sm:$0xff]   ;;  %v8972_v40 = vld [vmem:[#allocation6 + $0xe8] ss:$16 sps:$4 sm:$0xff]  }
 0x700   :  { %v9488_v33 = vpop.eup %9487  ;;  %5790 = vst [vmem:[#allocation3 + $0x24] sm:$0xf] %v8476_v53 }
 0x701   :  { %v5781_v20 = vmul.f32 %v9488_v33, %v9486_v0  ;;  %v11569_v33 = vld [vmem:[#allocation53_spill] sm:$0xff] }
 0x702   :  { %6367 = vmatpush1.bf16.msra.mxu0 %v11063_v58  ;;  %6410 = vmatpush1.bf16.msra.mxu1 %v11065_v26  ;;  %v8977_v58 = vld [vmem:[#allocation6 + $0xc4] ss:$16 sps:$4 sm:$0xff]   ;;  %v8975_v26 = vld [vmem:[#allocation6 + $0xc0] ss:$16 sps:$4 sm:$0xff]  }
 0x703   :  { %v5782_v50 = vpack.c.bf16 %v5781_v20, %v5780_v61  ;;  %v8477_v22 = vpack.c.bf16 %v5781_v20, %v5781_v20  ;;  %6708 = vmatprep.subr.bf16.mxu0 %v8971_v28  ;;  %6751 = vmatprep.subr.bf16.mxu1 %v8974_v8  ;;  %v5799_v20 = vunpack.c.h.bf16 %v11569_v33  ;;  %v11570_v8 = vld [vmem:[#allocation55_spill] sm:$0xff] }
 0x705   :  { %5791 = vst [vmem:[#allocation3 + $0x2c] sm:$0xf] %v8477_v22  ;;  %6385 = vmatmul.mubr.bf16.vlgmr.msra.gmra.mxu0 %v5782_v50  ;;  %6428 = vmatmul.mubr.bf16.vlgmr.msra.gmra.mxu1 %v5782_v50  ;;  %v5798_v22 = vunpack.c.l.bf16 %v11569_v33 }
 0x706   :  { %6740 = vmatprep.mubr.bf16.mxu0 %v11455_v11  ;;  %6783 = vmatprep.mubr.bf16.mxu1 %v11455_v11 }
 0x707   :  { %6709 = vmatpush1.bf16.msra.mxu0 %v8969_v16  ;;  %6752 = vmatpush1.bf16.msra.mxu1 %v8972_v40  ;;  %v5803_v16 = vunpack.c.h.bf16 %v11570_v8 }
 0x708   :  { %6710 = vmatprep.subr.bf16.mxu0 %v8977_v58  ;;  %6753 = vmatprep.subr.bf16.mxu1 %v8980_v23  ;;  %v5802_v23 = vunpack.c.l.bf16 %v11570_v8 }
 0x70b   :  { %6711 = vmatpush1.bf16.msra.mxu0 %v8975_v26  ;;  %6754 = vmatpush1.bf16.msra.mxu1 %v8978_v31 }
 0x70c   :  { %6712 = vmatprep.subr.bf16.mxu0 %v8983_v38  ;;  %6755 = vmatprep.subr.bf16.mxu1 %v8986_v2 }
 0x70f   :  { %6713 = vmatpush1.bf16.msra.mxu0 %v8981_v35  ;;  %6756 = vmatpush1.bf16.msra.mxu1 %v8984_v29 }
 0x710   :  { %6714 = vmatprep.subr.bf16.mxu0 %v8989_v19  ;;  %6757 = vmatprep.subr.bf16.mxu1 %v8992_v10 }
 0x713   :  { %6715 = vmatpush1.bf16.msra.mxu0 %v8987_v47  ;;  %6758 = vmatpush1.bf16.msra.mxu1 %v8990_v21 }
 0x714   :  { %6716 = vmatprep.subr.bf16.mxu0 %v8995_v51  ;;  %6759 = vmatprep.subr.bf16.mxu1 %v8998_v1  ;;  %v11571_v1 = vld [vmem:[#allocation31_spill] sm:$0xff] }
 0x717   :  { %6717 = vmatpush1.bf16.msra.mxu0 %v8993_v45  ;;  %6760 = vmatpush1.bf16.msra.mxu1 %v8996_v44  ;;  %v6152_v45 = vunpack.c.l.bf16 %v11571_v1 }
 0x718   :  { %6718 = vmatprep.subr.bf16.mxu0 %v9001_v46  ;;  %6761 = vmatprep.subr.bf16.mxu1 %v9004_v55 }
 0x71b   :  { %6719 = vmatpush1.bf16.msra.mxu0 %v8999_v37  ;;  %6762 = vmatpush1.bf16.msra.mxu1 %v9002_v60 }
 0x71c   :  { %6720 = vmatprep.subr.bf16.mxu0 %v9007_v6  ;;  %6763 = vmatprep.subr.bf16.mxu1 %v9010_v59  ;;  %v6153_v6 = vunpack.c.h.bf16 %v11571_v1 }
 0x71f   :  { %6721 = vmatpush1.bf16.msra.mxu0 %v9005_v32  ;;  %6764 = vmatpush1.bf16.msra.mxu1 %v9008_v9 }
 0x720   :  { %6722 = vmatprep.subr.bf16.mxu0 %v9013_v62  ;;  %6765 = vmatprep.subr.bf16.mxu1 %v9016_v41 }
 0x723   :  { %6723 = vmatpush1.bf16.msra.mxu0 %v9011_v54  ;;  %6766 = vmatpush1.bf16.msra.mxu1 %v9014_v7  ;;  %v11572_v7 = vld [vmem:[#allocation33_spill] sm:$0xff] }
 0x724   :  { %7064 = vmatprep.subr.bf16.mxu0 %v9019_v42  ;;  %7107 = vmatprep.subr.bf16.mxu1 %v9022_v52  ;;  %v6156_v42 = vunpack.c.l.bf16 %v11572_v7 }
 0x7a5   :  { %v6030_v15 = vpop.f32.mrf.mxu0  ;;  %v6073_v63 = vpop.f32.mrf.mxu1 }
 0x7a6   :  { %v6082_v43 = vadd.f32 %v6030_v15, %v5796_v39  ;;  %v6084_v40 = vadd.f32 %v6073_v63, %v5798_v22  ;;  %v11574_v22 = vld [vmem:[#allocation62_spill] sm:$0xff] }
 0x7a7   :  { %v6032_v3 = vpop.f32.mrf.mxu0  ;;  %v6075_v13 = vpop.f32.mrf.mxu1 }
 0x7a8   :  { %v8229_v49 = vmul.f32 -1.442695, %v6082_v43  ;;  %v6083_v4 = vadd.f32 %v6032_v3, %v5797_v12  ;;  %v6085_v50 = vadd.f32 %v6075_v13, %v5799_v20 }
 0x7a9   :  { %v6034_v27 = vpop.f32.mrf.mxu0  ;;  %v6077_v53 = vpop.f32.mrf.mxu1 }
 0x7aa   :  { %9489 = vpow2.f32 %v8229_v49  ;;  %v8231_v5 = vmul.f32 -1.442695, %v6083_v4  ;;  %v6086_v14 = vadd.f32 %v6034_v27, %v5800_v57  ;;  %v8233_v58 = vmul.f32 -1.442695, %v6085_v50 }
 0x7ab   :  { %v6036_v25 = vpop.f32.mrf.mxu0  ;;  %v6079_v28 = vpop.f32.mrf.mxu1  ;;  %v6088_v38 = vadd.f32 %v6077_v53, %v5802_v23  ;;  %v6157_v4 = vunpack.c.h.bf16 %v11572_v7 }
 0x7ac   :  { %9491 = vpow2.f32 %v8231_v5  ;;  %v8230_v36 = vmul.f32 -1.442695, %v6086_v14  ;;  %v6087_v61 = vadd.f32 %v6036_v25, %v5801_v48  ;;  %v6089_v26 = vadd.f32 %v6079_v28, %v5803_v16 }
 0x7ad   :  { %v6159_v28 = vunpack.c.h.bf16 %v11574_v22  ;;  %v6158_v16 = vunpack.c.l.bf16 %v11574_v22  ;;  %v9050_v22 = vld [vmem:[#allocation8 + $0x48] ss:$16 sps:$4 sm:$0xff]  }
 0x7ae   :  { %9493 = vpow2.f32 %v8230_v36  ;;  %v8232_v0 = vmul.f32 -1.442695, %v6087_v61  ;;  %v8234_v29 = vmul.f32 -1.442695, %v6089_v26  ;;  %v11573_v36 = vld [vmem:[#allocation61_spill] sm:$0xff] }
 0x7af   :  { %v6155_v61 = vunpack.c.h.bf16 %v11573_v36  ;;  %v6154_v20 = vunpack.c.l.bf16 %v11573_v36  ;;  %v9046_v36 = vld [vmem:[#allocation8 + $0x6c] ss:$16 sps:$4 sm:$0xff]  }
 0x7b0   :  { %9495 = vpow2.f32 %v8232_v0 }
 0x7b1   :  { %9497 = vtanh.f32 %v6084_v40 }
 0x7b2   :  { %9499 = vpow2.f32 %v8233_v58 }
 0x7b7   :  { %v9490_v31 = vpop.eup %9489 }
 0x7b8   :  { %v6096_v2 = vadd.f32 1.0, %v9490_v31 }
 0x7b9   :  { %v9492_v35 = vpop.eup %9491 }
 0x7ba   :  { %9501 = vrcp.f32 %v6096_v2  ;;  %v6108_v19 = vadd.f32 1.0, %v9492_v35 }
 0x7bb   :  { %v9494_v10 = vpop.eup %9493  ;;  %9503 = vtanh.f32 %v6088_v38 }
 0x7bc   :  { %9505 = vrcp.f32 %v6108_v19  ;;  %v6097_v47 = vadd.f32 1.0, %v9494_v10 }
 0x7bd   :  { %v9496_v21 = vpop.eup %9495  ;;  %9507 = vpow2.f32 %v8234_v29 }
 0x7be   :  { %9509 = vrcp.f32 %v6097_v47  ;;  %v6109_v51 = vadd.f32 1.0, %v9496_v21  ;;  %v9498_v44 = vpop.eup %9497 }
 0x7bf   :  { %v9500_v55 = vpop.eup %9499 }
 0x7c0   :  { %9511 = vrcp.f32 %v6109_v51  ;;  %v6122_v49 = vadd.f32 1.0, %v9500_v55  ;;  %v9017_v55 = vld [vmem:[#allocation8 + $0xe0] ss:$16 sps:$4 sm:$0xff]  }
 0x7c5   :  { %v6386_v46 = vpop.f32.mrf.mxu0  ;;  %v6429_v60 = vpop.f32.mrf.mxu1 }
 0x7c6   :  { %v6438_v37 = vadd.f32 %v6386_v46, %v6152_v45 }
 0x7c7   :  { %v9502_v59 = vpop.eup %9501  ;;  %v6388_v32 = vpop.f32.mrf.mxu0 }
 0x7c8   :  { %v9504_v9 = vpop.eup %9503  ;;  %v6130_v62 = vmul.f32 %v9502_v59, %v9498_v44  ;;  %v8269_v41 = vmul.f32 -1.442695, %v6438_v37  ;;  %v6439_v54 = vadd.f32 %v6388_v32, %v6153_v6  ;;  %v6431_v63 = vpop.f32.mrf.mxu1  ;;  %v9020_v37 = vld [vmem:[#allocation8 + $0xe8] ss:$16 sps:$4 sm:$0xff]   ;;  %v9025_v59 = vld [vmem:[#allocation8 + $0xc4] ss:$16 sps:$4 sm:$0xff]  }
 0x7c9   :  { %v9506_v52 = vpop.eup %9505  ;;  %v6390_v18 = vpop.f32.mrf.mxu0  ;;  %v6441_v33 = vadd.f32 %v6431_v63, %v6155_v61  ;;  %v9028_v32 = vld [vmem:[#allocation8 + $0xcc] ss:$16 sps:$4 sm:$0xff]  }
 0x7ca   :  { %v9508_v39 = vpop.eup %9507  ;;  %v6128_v15 = vmul.f32 %v9506_v52, %v11120_v34  ;;  %9513 = vpow2.f32 %v8269_v41  ;;  %v8271_v43 = vmul.f32 -1.442695, %v6439_v54  ;;  %v6442_v12 = vadd.f32 %v6390_v18, %v6156_v42  ;;  %v6433_v34 = vpop.f32.mrf.mxu1  ;;  %v9023_v41 = vld [vmem:[#allocation8 + $0xc0] ss:$16 sps:$4 sm:$0xff]   ;;  %v9026_v54 = vld [vmem:[#allocation8 + $0xc8] ss:$16 sps:$4 sm:$0xff]  }
 0x7cb   :  { %v9510_v3 = vpop.eup %9509  ;;  %v6392_v56 = vpop.f32.mrf.mxu0  ;;  %v6123_v25 = vadd.f32 1.0, %v9508_v39  ;;  %v8273_v8 = vmul.f32 -1.442695, %v6441_v33  ;;  %v6444_v23 = vadd.f32 %v6433_v34, %v6158_v16  ;;  %v9031_v42 = vld [vmem:[#allocation8 + $0xa4] ss:$16 sps:$4 sm:$0xff]  }
 0x7cc   :  { %v11186_v57 = vadd.f32 %v6130_v62, %v6128_v15  ;;  %v6131_v27 = vmul.f32 %v9510_v3, %v9504_v9  ;;  %9515 = vpow2.f32 %v8271_v43  ;;  %v8270_v5 = vmul.f32 -1.442695, %v6442_v12  ;;  %v6435_v50 = vpop.f32.mrf.mxu1  ;;  %v9034_v52 = vld [vmem:[#allocation8 + $0xac] ss:$16 sps:$4 sm:$0xff]   ;;  %v9029_v3 = vld [vmem:[#allocation8 + $0xa0] ss:$16 sps:$4 sm:$0xff]  }
 0x7cd   :  { %v9512_v13 = vpop.eup %9511  ;;  %v6443_v14 = vadd.f32 %v6392_v56, %v6157_v4  ;;  %v6445_v40 = vadd.f32 %v6435_v50, %v6159_v28  ;;  %v9037_v56 = vld [vmem:[#allocation8 + $0x84] ss:$16 sps:$4 sm:$0xff]   ;;  %v9044_v33 = vld [vmem:[#allocation8 + $0x68] ss:$16 sps:$4 sm:$0xff]   ;;  %v9052_v50 = vld [vmem:[#allocation8 + $0x4c] ss:$16 sps:$4 sm:$0xff]  }
 0x7ce   :  { %v6129_v48 = vmul.f32 %v9512_v13, %v11124_v24  ;;  %9517 = vpow2.f32 %v8270_v5  ;;  %v6440_v24 = vadd.f32 %v6429_v60, %v6154_v20  ;;  %v9043_v34 = vld [vmem:[#allocation8 + $0x64] ss:$16 sps:$4 sm:$0xff]   ;;  %v9053_v16 = vld [vmem:[#allocation8 + $0x20] ss:$16 sps:$4 sm:$0xff]  }
 0x7cf   :  { %9519 = vrcp.f32 %v6122_v49  ;;  %v8272_v53 = vmul.f32 -1.442695, %v6443_v14  ;;  %v8274_v38 = vmul.f32 -1.442695, %v6445_v40  ;;  %v9032_v49 = vld [vmem:[#allocation8 + $0xa8] ss:$16 sps:$4 sm:$0xff]  }
 0x7d0   :  { %v11190_v0 = vadd.f32 %v6131_v27, %v6129_v48  ;;  %9521 = vtanh.f32 %v11186_v57  ;;  %v9040_v27 = vld [vmem:[#allocation8 + $0x8c] ss:$16 sps:$4 sm:$0xff]   ;;  %v9035_v48 = vld [vmem:[#allocation8 + $0x80] ss:$16 sps:$4 sm:$0xff]   ;;  %v9049_v20 = vld [vmem:[#allocation8 + $0x44] ss:$16 sps:$4 sm:$0xff]  }
 0x7d1   :  { %9523 = vpow2.f32 %v8272_v53  ;;  %v9041_v53 = vld [vmem:[#allocation8 + $0x60] ss:$16 sps:$4 sm:$0xff]   ;;  %v9055_v28 = vld [vmem:[#allocation8 + $0x24] ss:$16 sps:$4 sm:$0xff]   ;;  %v9056_v40 = vld [vmem:[#allocation8 + $0x28] ss:$16 sps:$4 sm:$0xff]  }
 0x7d2   :  { %9525 = vrcp.f32 %v6123_v25  ;;  %v9038_v25 = vld [vmem:[#allocation8 + $0x88] ss:$16 sps:$4 sm:$0xff]  }
 0x7d3   :  { %9527 = vtanh.f32 %v11190_v0 }
 0x7d4   :  { %9529 = vtanh.f32 %v6440_v24  ;;  %v9058_v24 = vld [vmem:[#allocation8 + $0x2c] ss:$16 sps:$4 sm:$0xff]  }
 0x7d5   :  { %9531 = vpow2.f32 %v8273_v8 }
 0x7d7   :  { %v9514_v58 = vpop.eup %9513 }
 0x7d8   :  { %v6452_v26 = vadd.f32 1.0, %v9514_v58 }
 0x7d9   :  { %v9516_v31 = vpop.eup %9515 }
 0x7da   :  { %9533 = vrcp.f32 %v6452_v26  ;;  %v6464_v2 = vadd.f32 1.0, %v9516_v31  ;;  %v9064_v26 = vld [vmem:[#allocation8 + $0xc] ss:$16 sps:$4 sm:$0xff]  }
 0x7db   :  { %v9518_v35 = vpop.eup %9517  ;;  %9535 = vtanh.f32 %v6444_v23  ;;  %v9061_v23 = vld [vmem:[#allocation8 + $0x4] ss:$16 sps:$4 sm:$0xff]  }
 0x7dc   :  { %v9520_v29 = vpop.eup %9519  ;;  %9537 = vrcp.f32 %v6464_v2  ;;  %v6453_v19 = vadd.f32 1.0, %v9518_v35  ;;  %v9062_v2 = vld [vmem:[#allocation8 + $0x8] ss:$16 sps:$4 sm:$0xff]  }
 0x7dd   :  { %v9522_v10 = vpop.eup %9521  ;;  %9539 = vpow2.f32 %v8274_v38  ;;  %v9059_v38 = vld [vmem:[#allocation8] ss:$16 sps:$4 sm:$0xff]  }
 0x7de   :  { %v9524_v47 = vpop.eup %9523  ;;  %9541 = vrcp.f32 %v6453_v19  ;;  %v6136_v21 = vmul.f32 %v9522_v10, %v9520_v29 }
 0x7df   :  { %v9526_v51 = vpop.eup %9525  ;;  %v6465_v1 = vadd.f32 1.0, %v9524_v47 }
 0x7e0   :  { %v9528_v45 = vpop.eup %9527  ;;  %v8478_v44 = vpack.c.bf16 %v6136_v21, %v6136_v21 }
 0x7e1   :  { %9543 = vrcp.f32 %v6465_v1  ;;  %v6137_v46 = vmul.f32 %v9528_v45, %v9526_v51  ;;  %v9530_v9 = vpop.eup %9529  ;;  %v9065_v51 = vld [vmem:[#allocation9 + $0x78] sm:$0xff]   ;;  %v9067_v45 = vld [vmem:[#allocation9 + $0x70] sm:$0xff]  }
 0x7e2   :  { %6146 = vst [vmem:[#allocation3 + $0x60] sm:$0xf] %v8478_v44  ;;  %v9532_v62 = vpop.eup %9531  ;;  %v9066_v1 = vld [vmem:[#allocation9 + $0x38] sm:$0xff]   ;;  %v9068_v44 = vld [vmem:[#allocation9 + $0x30] sm:$0xff]  }
 0x7e3   :  { %v6138_v60 = vpack.c.bf16 %v6137_v46, %v6136_v21  ;;  %v8479_v6 = vpack.c.bf16 %v6137_v46, %v6137_v46  ;;  %v6478_v43 = vadd.f32 1.0, %v9532_v62  ;;  %v9069_v46 = vld [vmem:[#allocation9 + $0x68] sm:$0xff]  }
 0x7e4   :  { %v9077_v62 = vld [vmem:[#allocation9 + $0x48] sm:$0xff]  }
 0x7e5   :  { %6147 = vst [vmem:[#allocation3 + $0x68] sm:$0xf] %v8479_v6  ;;  %6741 = vmatmul.mubr.bf16.vlgmr.msra.gmra.mxu0 %v6138_v60  ;;  %6784 = vmatmul.mubr.bf16.vlgmr.msra.gmra.mxu1 %v6138_v60  ;;  %9545 = vrcp.f32 %v6478_v43  ;;  %v9072_v60 = vld [vmem:[#allocation9 + $0x20] sm:$0xff]   ;;  %v9073_v6 = vld [vmem:[#allocation9 + $0x58] sm:$0xff]  }
 0x7e6   :  { %7065 = vmatpush1.bf16.msra.mxu0 %v9017_v55  ;;  %7108 = vmatpush1.bf16.msra.mxu1 %v9020_v37  ;;  %v9070_v55 = vld [vmem:[#allocation9 + $0x28] sm:$0xff]   ;;  %v9071_v37 = vld [vmem:[#allocation9 + $0x60] sm:$0xff]  }
 0x7e7   :  { %v9534_v7 = vpop.eup %9533  ;;  %7066 = vmatprep.subr.bf16.mxu0 %v9025_v59  ;;  %7109 = vmatprep.subr.bf16.mxu1 %v9028_v32  ;;  %v9074_v59 = vld [vmem:[#allocation9 + $0x18] sm:$0xff]   ;;  %v9075_v32 = vld [vmem:[#allocation9 + $0x50] sm:$0xff]  }
 0x7e8   :  { %v9536_v18 = vpop.eup %9535  ;;  %v6486_v39 = vmul.f32 %v9534_v7, %v9530_v9  ;;  %7096 = vmatprep.mubr.bf16.mxu0 %v11455_v11  ;;  %7139 = vmatprep.mubr.bf16.mxu1 %v11455_v11  ;;  %v9076_v9 = vld [vmem:[#allocation9 + $0x10] sm:$0xff]   ;;  %v9080_v7 = vld [vmem:[#allocation9] sm:$0xff]  }
 0x7e9   :  { %v9538_v15 = vpop.eup %9537 }
 0x7ea   :  { %v9540_v63 = vpop.eup %9539  ;;  %v6484_v12 = vmul.f32 %v9538_v15, %v11142_v30  ;;  %7067 = vmatpush1.bf16.msra.mxu0 %v9023_v41  ;;  %7110 = vmatpush1.bf16.msra.mxu1 %v9026_v54  ;;  %v9078_v41 = vld [vmem:[#allocation9 + $0x8] sm:$0xff]   ;;  %v9079_v54 = vld [vmem:[#allocation9 + $0x40] sm:$0xff]  }
 0x7eb   :  { %v9542_v4 = vpop.eup %9541  ;;  %7068 = vmatprep.subr.bf16.mxu0 %v9031_v42  ;;  %7111 = vmatprep.subr.bf16.mxu1 %v9034_v52  ;;  %v6479_v11 = vadd.f32 1.0, %v9540_v63  ;;  %v11575_v42 = vld [vmem:[#allocation25_spill] sm:$0xff] }
 0x7ec   :  { %v11200_v5 = vadd.f32 %v6486_v39, %v6484_v12  ;;  %v6487_v13 = vmul.f32 %v9542_v4, %v9536_v18  ;;  %v6508_v52 = vunpack.c.l.bf16 %v11575_v42  ;;  %v6509_v43 = vunpack.c.h.bf16 %v11575_v42  ;;  %v11576_v4 = vld [vmem:[#allocation27_spill] sm:$0xff] }
 0x7ee   :  { %v9544_v14 = vpop.eup %9543  ;;  %7069 = vmatpush1.bf16.msra.mxu0 %v9029_v3  ;;  %7112 = vmatpush1.bf16.msra.mxu1 %v9032_v49  ;;  %9547 = vtanh.f32 %v11200_v5 }
 0x7ef   :  { %v6485_v30 = vmul.f32 %v9544_v14, %v11150_v17  ;;  %7070 = vmatprep.subr.bf16.mxu0 %v9037_v56  ;;  %7113 = vmatprep.subr.bf16.mxu1 %v9040_v27  ;;  %9549 = vrcp.f32 %v6479_v11  ;;  %v9047_v17 = vld [vmem:[#allocation8 + $0x40] ss:$16 sps:$4 sm:$0xff]   ;;  %v6512_v56 = vunpack.c.l.bf16 %v11576_v4  ;;  %v6513_v11 = vunpack.c.h.bf16 %v11576_v4 }
 0x7f1   :  { %v11204_v61 = vadd.f32 %v6487_v13, %v6485_v30 }
 0x7f2   :  { %7071 = vmatpush1.bf16.msra.mxu0 %v9035_v48  ;;  %7114 = vmatpush1.bf16.msra.mxu1 %v9038_v25  ;;  %v9546_v8 = vpop.eup %9545 }
 0x7f3   :  { %7072 = vmatprep.subr.bf16.mxu0 %v9043_v34  ;;  %7115 = vmatprep.subr.bf16.mxu1 %v9046_v36  ;;  %9551 = vtanh.f32 %v11204_v61 }
 0x7f6   :  { %7073 = vmatpush1.bf16.msra.mxu0 %v9041_v53  ;;  %7116 = vmatpush1.bf16.msra.mxu1 %v9044_v33  ;;  %v11577_v53 = vld [vmem:[#allocation57_spill] sm:$0xff] }
 0x7f7   :  { %7074 = vmatprep.subr.bf16.mxu0 %v9049_v20  ;;  %7117 = vmatprep.subr.bf16.mxu1 %v9052_v50  ;;  %v6511_v33 = vunpack.c.h.bf16 %v11577_v53 }
 0x7fa   :  { %7075 = vmatpush1.bf16.msra.mxu0 %v9047_v17  ;;  %7118 = vmatpush1.bf16.msra.mxu1 %v9050_v22  ;;  %v11578_v17 = vld [vmem:[#allocation58_spill] sm:$0xff] }
 0x7fb   :  { %v9548_v58 = vpop.eup %9547  ;;  %7076 = vmatprep.subr.bf16.mxu0 %v9055_v28  ;;  %7119 = vmatprep.subr.bf16.mxu1 %v9058_v24  ;;  %v6515_v22 = vunpack.c.h.bf16 %v11578_v17  ;;  %v6510_v28 = vunpack.c.l.bf16 %v11577_v53 }
 0x7fc   :  { %v6492_v31 = vmul.f32 %v9548_v58, %v9546_v8  ;;  %v9550_v29 = vpop.eup %9549  ;;  %v6514_v58 = vunpack.c.l.bf16 %v11578_v17 }
 0x7fe   :  { %7077 = vmatpush1.bf16.msra.mxu0 %v9053_v16  ;;  %7120 = vmatpush1.bf16.msra.mxu1 %v9056_v40  ;;  %v8480_v35 = vpack.c.bf16 %v6492_v31, %v6492_v31 }
 0x7ff   :  { %7078 = vmatprep.subr.bf16.mxu0 %v9061_v23  ;;  %7121 = vmatprep.subr.bf16.mxu1 %v9064_v26 }
 0x800   :  { %v9552_v19 = vpop.eup %9551  ;;  %6502 = vst [vmem:[#allocation3 + $0x14] sm:$0xf] %v8480_v35 }
 0x801   :  { %v6493_v10 = vmul.f32 %v9552_v19, %v9550_v29 }
 0x802   :  { %7079 = vmatpush1.bf16.msra.mxu0 %v9059_v38  ;;  %7122 = vmatpush1.bf16.msra.mxu1 %v9062_v2 }
 0x803   :  { %v6494_v47 = vpack.c.bf16 %v6493_v10, %v6492_v31  ;;  %v8481_v21 = vpack.c.bf16 %v6493_v10, %v6493_v10  ;;  %8486 = vmatprep.subr.bf16.mxu0 %v9065_v51 }
 0x805   :  { %6503 = vst [vmem:[#allocation3 + $0x1c] sm:$0xf] %v8481_v21  ;;  %7097 = vmatmul.mubr.bf16.vlgmr.msra.gmra.mxu0 %v6494_v47  ;;  %7140 = vmatmul.mubr.bf16.vlgmr.msra.gmra.mxu1 %v6494_v47  ;;  %v11579_v47 = vld [vmem:[#allocation28_spill] sm:$0xff] }
 0x806   :  { %8487 = vmatpush3.bf16.msra.mxu0 %v9066_v1  ;;  %v6864_v21 = vunpack.c.l.bf16 %v11579_v47 }
 0x807   :  { %8488 = vmatprep.subr.bf16.mxu0 %v9067_v45 }
 0x80a   :  { %8489 = vmatpush3.bf16.msra.mxu0 %v9068_v44 }
 0x80b   :  { %8490 = vmatprep.subr.bf16.mxu0 %v9069_v46  ;;  %v6865_v46 = vunpack.c.h.bf16 %v11579_v47 }
 0x80e   :  { %8491 = vmatpush3.bf16.msra.mxu0 %v9070_v55 }
 0x80f   :  { %8492 = vmatprep.subr.bf16.mxu0 %v9071_v37 }
 0x812   :  { %8493 = vmatpush3.bf16.msra.mxu0 %v9072_v60 }
 0x813   :  { %8494 = vmatprep.subr.bf16.mxu0 %v9073_v6 }
 0x816   :  { %8495 = vmatpush3.bf16.msra.mxu0 %v9074_v59 }
 0x817   :  { %8496 = vmatprep.subr.bf16.mxu0 %v9075_v32 }
 0x81a   :  { %8497 = vmatpush3.bf16.msra.mxu0 %v9076_v9 }
 0x81b   :  { %8498 = vmatprep.subr.bf16.mxu0 %v9077_v62  ;;  %v11580_v62 = vld [vmem:[#allocation29_spill] sm:$0xff] }
 0x81e   :  { %8499 = vmatpush3.bf16.msra.mxu0 %v9078_v41  ;;  %v6868_v41 = vunpack.c.l.bf16 %v11580_v62 }
 0x81f   :  { %8500 = vmatprep.subr.bf16.mxu0 %v9079_v54 }
 0x822   :  { %8501 = vmatpush3.bf16.msra.mxu0 %v9080_v7 }
 0x8a5   :  { %v6742_v18 = vpop.f32.mrf.mxu0  ;;  %v6785_v39 = vpop.f32.mrf.mxu1 }
 0x8a6   :  { %v6794_v15 = vadd.f32 %v6742_v18, %v6508_v52  ;;  %v6796_v8 = vadd.f32 %v6785_v39, %v6510_v28 }
 0x8a7   :  { %v6744_v63 = vpop.f32.mrf.mxu0  ;;  %v6787_v49 = vpop.f32.mrf.mxu1 }
 0x8a8   :  { %v8309_v12 = vmul.f32 -1.442695, %v6794_v15  ;;  %v6795_v3 = vadd.f32 %v6744_v63, %v6509_v43  ;;  %v6797_v50 = vadd.f32 %v6787_v49, %v6511_v33 }
 0x8a9   :  { %v6746_v27 = vpop.f32.mrf.mxu0  ;;  %v6789_v30 = vpop.f32.mrf.mxu1 }
 0x8aa   :  { %9553 = vpow2.f32 %v8309_v12  ;;  %v8311_v13 = vmul.f32 -1.442695, %v6795_v3  ;;  %v6798_v14 = vadd.f32 %v6746_v27, %v6512_v56  ;;  %v8313_v16 = vmul.f32 -1.442695, %v6797_v50  ;;  %v11582_v50 = vld [vmem:[#allocation60_spill] sm:$0xff] }
 0x8ab   :  { %v6748_v48 = vpop.f32.mrf.mxu0  ;;  %v6791_v20 = vpop.f32.mrf.mxu1  ;;  %v6800_v38 = vadd.f32 %v6789_v30, %v6514_v58  ;;  %v6869_v3 = vunpack.c.h.bf16 %v11580_v62  ;;  %v6871_v17 = vunpack.c.h.bf16 %v11582_v50 }
 0x8ac   :  { %9555 = vpow2.f32 %v8311_v13  ;;  %v8310_v25 = vmul.f32 -1.442695, %v6798_v14  ;;  %v6799_v34 = vadd.f32 %v6748_v48, %v6513_v11  ;;  %v6801_v24 = vadd.f32 %v6791_v20, %v6515_v22 }
 0x8ae   :  { %9557 = vpow2.f32 %v8310_v25  ;;  %v8312_v36 = vmul.f32 -1.442695, %v6799_v34  ;;  %v8314_v23 = vmul.f32 -1.442695, %v6801_v24 }
 0x8b0   :  { %9559 = vpow2.f32 %v8312_v36 }
 0x8b1   :  { %9561 = vtanh.f32 %v6796_v8 }
 0x8b2   :  { %9563 = vpow2.f32 %v8313_v16 }
 0x8b7   :  { %v9554_v40 = vpop.eup %9553 }
 0x8b8   :  { %v6808_v26 = vadd.f32 1.0, %v9554_v40 }
 0x8b9   :  { %v9556_v31 = vpop.eup %9555 }
 0x8ba   :  { %9565 = vrcp.f32 %v6808_v26  ;;  %v6820_v2 = vadd.f32 1.0, %v9556_v31 }
 0x8bb   :  { %v9558_v35 = vpop.eup %9557  ;;  %9567 = vpow2.f32 %v8314_v23 }
 0x8bc   :  { %9569 = vrcp.f32 %v6820_v2  ;;  %v6809_v29 = vadd.f32 1.0, %v9558_v35 }
 0x8bd   :  { %v9560_v19 = vpop.eup %9559  ;;  %9571 = vtanh.f32 %v6800_v38 }
 0x8be   :  { %9573 = vrcp.f32 %v6809_v29  ;;  %v6821_v10 = vadd.f32 1.0, %v9560_v19  ;;  %v9562_v51 = vpop.eup %9561 }
 0x8bf   :  { %v9564_v45 = vpop.eup %9563 }
 0x8c0   :  { %9575 = vrcp.f32 %v6821_v10  ;;  %v6834_v7 = vadd.f32 1.0, %v9564_v45 }
 0x8c5   :  { %v7098_v1 = vpop.f32.mrf.mxu0  ;;  %v7141_v37 = vpop.f32.mrf.mxu1 }
 0x8c6   :  { %v7150_v44 = vadd.f32 %v7098_v1, %v6864_v21 }
 0x8c7   :  { %v9566_v55 = vpop.eup %9565  ;;  %v7100_v60 = vpop.f32.mrf.mxu0 }
 0x8c8   :  { %v9568_v6 = vpop.eup %9567  ;;  %v6842_v59 = vmul.f32 %v9566_v55, %v9562_v51  ;;  %v8349_v32 = vmul.f32 -1.442695, %v7150_v44  ;;  %v7151_v9 = vadd.f32 %v7100_v60, %v6865_v46  ;;  %v7143_v12 = vpop.f32.mrf.mxu1 }
 0x8c9   :  { %v9570_v54 = vpop.eup %9569  ;;  %v7102_v42 = vpop.f32.mrf.mxu0  ;;  %v6835_v63 = vadd.f32 1.0, %v9568_v6 }
 0x8ca   :  { %v9572_v52 = vpop.eup %9571  ;;  %v6840_v18 = vmul.f32 %v9570_v54, %v11186_v57  ;;  %9577 = vpow2.f32 %v8349_v32  ;;  %v8351_v39 = vmul.f32 -1.442695, %v7151_v9  ;;  %v7154_v15 = vadd.f32 %v7102_v42, %v6868_v41  ;;  %v11581_v57 = vld [vmem:[#allocation59_spill] sm:$0xff]  ;;  %v7145_v25 = vpop.f32.mrf.mxu1 }
 0x8cb   :  { %v9574_v43 = vpop.eup %9573  ;;  %v7104_v49 = vpop.f32.mrf.mxu0  ;;  %v6867_v48 = vunpack.c.h.bf16 %v11581_v57  ;;  %v6866_v53 = vunpack.c.l.bf16 %v11581_v57  ;;  %v9095_v57 = vld [vmem:[#allocation3 + $0x44] ss:$8 sps:$4 sm:$0xff]  }
 0x8cc   :  { %v6844_v4 = vadd.f32 %v6842_v59, %v6840_v18  ;;  %v6843_v56 = vmul.f32 %v9574_v43, %v9572_v52  ;;  %9579 = vpow2.f32 %v8351_v39  ;;  %v8350_v27 = vmul.f32 -1.442695, %v7154_v15  ;;  %v7147_v33 = vpop.f32.mrf.mxu1 }
 0x8cd   :  { %v9576_v13 = vpop.eup %9575  ;;  %9581 = vrcp.f32 %v6834_v7  ;;  %v7155_v14 = vadd.f32 %v7104_v49, %v6869_v3  ;;  %v7153_v36 = vadd.f32 %v7143_v12, %v6867_v48  ;;  %v7152_v20 = vadd.f32 %v7141_v37, %v6866_v53  ;;  %v9081_v49 = vld [vmem:[#allocation3] ss:$8 sps:$4 sm:$0xff]   ;;  %v9104_v53 = vld [vmem:[#allocation3 + $0x74] ss:$8 sps:$4 sm:$0xff]  }
 0x8ce   :  { %9583 = vtanh.f32 %v6844_v4  ;;  %v6841_v11 = vmul.f32 %v9576_v13, %v11190_v0  ;;  %v7157_v28 = vadd.f32 %v7147_v33, %v6871_v17  ;;  %v6870_v0 = vunpack.c.l.bf16 %v11582_v50  ;;  %v9087_v13 = vld [vmem:[#allocation3 + $0x20] ss:$8 sps:$4 sm:$0xff]  }
 0x8cf   :  { %9585 = vpow2.f32 %v8350_v27  ;;  %v8352_v30 = vmul.f32 -1.442695, %v7155_v14  ;;  %v8353_v22 = vmul.f32 -1.442695, %v7153_v36  ;;  %v9089_v27 = vld [vmem:[#allocation3 + $0x24] ss:$8 sps:$4 sm:$0xff]  }
 0x8d0   :  { %v6845_v34 = vadd.f32 %v6843_v56, %v6841_v11  ;;  %9587 = vrcp.f32 %v6835_v63  ;;  %v7156_v40 = vadd.f32 %v7145_v25, %v6870_v0  ;;  %v8354_v26 = vmul.f32 -1.442695, %v7157_v28  ;;  %v9086_v56 = vld [vmem:[#allocation3 + $0x14] ss:$8 sps:$4 sm:$0xff]   ;;  %v9090_v11 = vld [vmem:[#allocation3 + $0x30] ss:$8 sps:$4 sm:$0xff]  }
 0x8d1   :  { %9589 = vpow2.f32 %v8352_v30  ;;  %v9092_v14 = vld [vmem:[#allocation3 + $0x34] ss:$8 sps:$4 sm:$0xff]   ;;  %v9093_v48 = vld [vmem:[#allocation3 + $0x40] ss:$8 sps:$4 sm:$0xff]   ;;  %v9096_v30 = vld [vmem:[#allocation3 + $0x50] ss:$8 sps:$4 sm:$0xff]  }
 0x8d2   :  { %9591 = vtanh.f32 %v6845_v34  ;;  %v9098_v25 = vld [vmem:[#allocation3 + $0x54] ss:$8 sps:$4 sm:$0xff]   ;;  %v9101_v34 = vld [vmem:[#allocation3 + $0x64] ss:$8 sps:$4 sm:$0xff]   ;;  %v9099_v36 = vld [vmem:[#allocation3 + $0x60] ss:$8 sps:$4 sm:$0xff]  }
 0x8d3   :  { %9593 = vtanh.f32 %v7152_v20  ;;  %v11230_v50 = vld [vmem:[%s11302_s6] ss:$0 sm:$0xff] }
 0x8d4   :  { %9595 = vpow2.f32 %v8353_v22 }
 0x8d7   :  { %v9578_v24 = vpop.eup %9577 }
 0x8d8   :  { %v7164_v8 = vadd.f32 1.0, %v9578_v24 }
 0x8d9   :  { %v9580_v16 = vpop.eup %9579 }
 0x8da   :  { %v9582_v58 = vpop.eup %9581  ;;  %9597 = vrcp.f32 %v7164_v8  ;;  %v7176_v23 = vadd.f32 1.0, %v9580_v16 }
 0x8db   :  { %v9584_v31 = vpop.eup %9583 }
 0x8dc   :  { %v9586_v38 = vpop.eup %9585  ;;  %v6848_v2 = vmul.f32 %v9584_v31, %v9582_v58  ;;  %9599 = vrcp.f32 %v7176_v23 }
 0x8dd   :  { %v9588_v35 = vpop.eup %9587  ;;  %v7165_v29 = vadd.f32 1.0, %v9586_v38  ;;  %9601 = vtanh.f32 %v7156_v40 }
 0x8de   :  { %v9590_v19 = vpop.eup %9589  ;;  %v8482_v10 = vpack.c.bf16 %v6848_v2, %v6848_v2  ;;  %9603 = vpow2.f32 %v8354_v26 }
 0x8df   :  { %v9592_v47 = vpop.eup %9591  ;;  %9605 = vrcp.f32 %v7165_v29  ;;  %v7177_v21 = vadd.f32 1.0, %v9590_v19 }
 0x8e0   :  { %6858 = vst [vmem:[#allocation3 + $0x70] sm:$0xf] %v8482_v10  ;;  %v6849_v51 = vmul.f32 %v9592_v47, %v9588_v35  ;;  %v9594_v45 = vpop.eup %9593 }
 0x8e1   :  { %9607 = vrcp.f32 %v7177_v21  ;;  %v9596_v44 = vpop.eup %9595 }
 0x8e2   :  { %v8483_v1 = vpack.c.bf16 %v6849_v51, %v6849_v51  ;;  %v7190_v60 = vadd.f32 1.0, %v9596_v44 }
 0x8e4   :  { %6859 = vst [vmem:[#allocation3 + $0x78] sm:$0xf] %v8483_v1  ;;  %9609 = vrcp.f32 %v7190_v60 }
 0x8e7   :  { %v9598_v46 = vpop.eup %9597 }
 0x8e8   :  { %v7198_v55 = vmul.f32 %v9598_v46, %v9594_v45 }
 0x8e9   :  { %v9600_v37 = vpop.eup %9599 }
 0x8ea   :  { %v9602_v6 = vpop.eup %9601  ;;  %v7196_v59 = vmul.f32 %v9600_v37, %v11200_v5 }
 0x8eb   :  { %v9604_v32 = vpop.eup %9603  ;;  %v9102_v33 = vld [vmem:[#allocation3 + $0x70] ss:$8 sps:$4 sm:$0xff]  }
 0x8ec   :  { %v9606_v9 = vpop.eup %9605  ;;  %v7200_v62 = vadd.f32 %v7198_v55, %v7196_v59  ;;  %v7191_v7 = vadd.f32 1.0, %v9604_v32 }
 0x8ed   :  { %v7199_v41 = vmul.f32 %v9606_v9, %v9602_v6 }
 0x8ee   :  { %v9608_v54 = vpop.eup %9607  ;;  %9611 = vtanh.f32 %v7200_v62 }
 0x8ef   :  { %v7197_v42 = vmul.f32 %v9608_v54, %v11204_v61  ;;  %9613 = vrcp.f32 %v7191_v7  ;;  %v9084_v61 = vld [vmem:[#allocation3 + $0x10] ss:$8 sps:$4 sm:$0xff]  }
 0x8f1   :  { %v7201_v52 = vadd.f32 %v7199_v41, %v7197_v42  ;;  %v9610_v18 = vpop.eup %9609 }
 0x8f3   :  { %9615 = vtanh.f32 %v7201_v52 }
 0x8fb   :  { %v9612_v39 = vpop.eup %9611 }
 0x8fc   :  { %v7204_v15 = vmul.f32 %v9612_v39, %v9610_v18  ;;  %v9614_v63 = vpop.eup %9613 }
 0x8fe   :  { %v8484_v43 = vpack.c.bf16 %v7204_v15, %v7204_v15 }
 0x900   :  { %v9616_v12 = vpop.eup %9615  ;;  %7214 = vst [vmem:[#allocation3 + $0x4] sm:$0xf] %v8484_v43 }
 0x901   :  { %v7205_v5 = vmul.f32 %v9616_v12, %v9614_v63 }
 0x903   :  { %v8485_v3 = vpack.c.bf16 %v7205_v5, %v7205_v5 }
 0x905   :  { %7215 = vst [vmem:[#allocation3 + $0xc] sm:$0xf] %v8485_v3 }
 0x90c   :  { %v9083_v4 = vld [vmem:[#allocation3 + $0x4] ss:$8 sps:$4 sm:$0xff]  }
 0x90d   :  { %7479 = vmatprep.mubr.bf16.mxu0 %v9083_v4 }
 0x90e   :  { %7480 = vmatmul.mubr.bf16.vlgmr.msra.gmra.mxu0 %v9081_v49 }
 0x90f   :  { %7487 = vmatprep.mubr.bf16.mxu0 %v9086_v56 }
 0x916   :  { %7488 = vmatmul.mubr.bf16.gmra.mxu0 %v9084_v61 }
 0x917   :  { %7495 = vmatprep.mubr.bf16.mxu0 %v9089_v27 }
 0x91e   :  { %7496 = vmatmul.mubr.bf16.gmra.mxu0 %v9087_v13 }
 0x91f   :  { %7503 = vmatprep.mubr.bf16.mxu0 %v9092_v14 }
 0x926   :  { %7504 = vmatmul.mubr.bf16.gmra.mxu0 %v9090_v11 }
 0x927   :  { %7511 = vmatprep.mubr.bf16.mxu0 %v9095_v57 }
 0x92e   :  { %7512 = vmatmul.mubr.bf16.gmra.mxu0 %v9093_v48 }
 0x92f   :  { %7519 = vmatprep.mubr.bf16.mxu0 %v9098_v25 }
 0x936   :  { %7520 = vmatmul.mubr.bf16.gmra.mxu0 %v9096_v30 }
 0x937   :  { %7527 = vmatprep.mubr.bf16.mxu0 %v9101_v34 }
 0x93e   :  { %7528 = vmatmul.mubr.bf16.gmra.mxu0 %v9099_v36 }
 0x93f   :  { %7535 = vmatprep.mubr.bf16.mxu0 %v9104_v53 }
 0x946   :  { %7536 = vmatmul.mubr.bf16.gmra.mxu0 %v9102_v33 }
 0x9ce   :  { %v8502_v20 = vpop.f32.mrf.mxu0 }
 0x9d0   :  { %v8503_v17 = vpop.f32.mrf.mxu0 }
 0x9d1   :  { %v8504_v22 = vadd.f32 %v8503_v17, %v8502_v20 }
 0x9d2   :  { %v8505_v28 = vpop.f32.mrf.mxu0 }
 0x9d3   :  { %v7482_v24 = vadd.f32 %v8504_v22, %v11230_v50 }
 0x9d4   :  { %v8506_v0 = vpop.f32.mrf.mxu0 }
 0x9d5   :  { %7544 = vst [vmem:[%s11303_s7] sm:$0xff] %v7482_v24  ;;  %v8507_v8 = vadd.f32 %v8506_v0, %v8505_v28 }
 0x9d6   :  { %v8508_v16 = vpop.f32.mrf.mxu0 }
 0x9d7   :  { %v7485_v40 = vadd.f32 %v8507_v8, %v11230_v50 }
 0x9d8   :  { %v8509_v58 = vpop.f32.mrf.mxu0 }
 0x9d9   :  { %7545 = vst [vmem:[%s11303_s7 + $0x8] sm:$0xff] %v7485_v40  ;;  %v8510_v23 = vadd.f32 %v8509_v58, %v8508_v16 }
 0x9da   :  { %v8511_v26 = vpop.f32.mrf.mxu0 }
 0x9db   :  { %v7490_v31 = vadd.f32 %v8510_v23, %v11230_v50 }
 0x9dc   :  { %v8512_v38 = vpop.f32.mrf.mxu0 }
 0x9dd   :  { %7546 = vst [vmem:[%s11303_s7 + $0x10] sm:$0xff] %v7490_v31  ;;  %v8513_v2 = vadd.f32 %v8512_v38, %v8511_v26 }
 0x9de   :  { %v8514_v35 = vpop.f32.mrf.mxu0 }
 0x9df   :  { %v7493_v29 = vadd.f32 %v8513_v2, %v11230_v50 }
 0x9e0   :  { %v8515_v19 = vpop.f32.mrf.mxu0 }
 0x9e1   :  { %7547 = vst [vmem:[%s11303_s7 + $0x18] sm:$0xff] %v7493_v29  ;;  %v8516_v10 = vadd.f32 %v8515_v19, %v8514_v35 }
 0x9e2   :  { %v8517_v47 = vpop.f32.mrf.mxu0 }
 0x9e3   :  { %v7498_v21 = vadd.f32 %v8516_v10, %v11230_v50 }
 0x9e4   :  { %v8518_v51 = vpop.f32.mrf.mxu0 }
 0x9e5   :  { %7548 = vst [vmem:[%s11303_s7 + $0x20] sm:$0xff] %v7498_v21  ;;  %v8519_v1 = vadd.f32 %v8518_v51, %v8517_v47 }
 0x9e6   :  { %v8520_v45 = vpop.f32.mrf.mxu0 }
 0x9e7   :  { %v7501_v44 = vadd.f32 %v8519_v1, %v11230_v50 }
 0x9e8   :  { %v8521_v46 = vpop.f32.mrf.mxu0 }
 0x9e9   :  { %7549 = vst [vmem:[%s11303_s7 + $0x28] sm:$0xff] %v7501_v44  ;;  %v8522_v55 = vadd.f32 %v8521_v46, %v8520_v45 }
 0x9ea   :  { %v8523_v37 = vpop.f32.mrf.mxu0 }
 0x9eb   :  { %v7506_v60 = vadd.f32 %v8522_v55, %v11230_v50 }
 0x9ec   :  { %v8524_v6 = vpop.f32.mrf.mxu0 }
 0x9ed   :  { %7550 = vst [vmem:[%s11303_s7 + $0x30] sm:$0xff] %v7506_v60  ;;  %v8525_v59 = vadd.f32 %v8524_v6, %v8523_v37 }
 0x9ee   :  { %v8526_v32 = vpop.f32.mrf.mxu0 }
 0x9ef   :  { %v7509_v9 = vadd.f32 %v8525_v59, %v11230_v50 }
 0x9f0   :  { %v8527_v62 = vpop.f32.mrf.mxu0 }
 0x9f1   :  { %7551 = vst [vmem:[%s11303_s7 + $0x38] sm:$0xff] %v7509_v9  ;;  %v8528_v41 = vadd.f32 %v8527_v62, %v8526_v32 }
 0x9f2   :  { %v8529_v54 = vpop.f32.mrf.mxu0 }
 0x9f3   :  { %v7514_v7 = vadd.f32 %v8528_v41, %v11230_v50 }
 0x9f4   :  { %v8530_v42 = vpop.f32.mrf.mxu0 }
 0x9f5   :  { %7552 = vst [vmem:[%s11303_s7 + $0x40] sm:$0xff] %v7514_v7  ;;  %v8531_v52 = vadd.f32 %v8530_v42, %v8529_v54 }
 0x9f6   :  { %v8532_v18 = vpop.f32.mrf.mxu0 }
 0x9f7   :  { %v7517_v39 = vadd.f32 %v8531_v52, %v11230_v50 }
 0x9f8   :  { %v8533_v15 = vpop.f32.mrf.mxu0 }
 0x9f9   :  { %7553 = vst [vmem:[%s11303_s7 + $0x48] sm:$0xff] %v7517_v39  ;;  %v8534_v43 = vadd.f32 %v8533_v15, %v8532_v18 }
 0x9fa   :  { %v8535_v63 = vpop.f32.mrf.mxu0 }
 0x9fb   :  { %v7522_v12 = vadd.f32 %v8534_v43, %v11230_v50 }
 0x9fc   :  { %v8536_v5 = vpop.f32.mrf.mxu0 }
 0x9fd   :  { %7554 = vst [vmem:[%s11303_s7 + $0x50] sm:$0xff] %v7522_v12  ;;  %v8537_v3 = vadd.f32 %v8536_v5, %v8535_v63 }
 0x9fe   :  { %v8538_v49 = vpop.f32.mrf.mxu0 }
 0x9ff   :  { %v7525_v4 = vadd.f32 %v8537_v3, %v11230_v50 }
 0xa00   :  { %v8539_v56 = vpop.f32.mrf.mxu0 }
 0xa01   :  { %7555 = vst [vmem:[%s11303_s7 + $0x58] sm:$0xff] %v7525_v4  ;;  %v8540_v61 = vadd.f32 %v8539_v56, %v8538_v49 }
 0xa02   :  { %v8541_v27 = vpop.f32.mrf.mxu0 }
 0xa03   :  { %v7530_v13 = vadd.f32 %v8540_v61, %v11230_v50 }
 0xa04   :  { %v8542_v14 = vpop.f32.mrf.mxu0 }
 0xa05   :  { %7556 = vst [vmem:[%s11303_s7 + $0x60] sm:$0xff] %v7530_v13  ;;  %v8543_v11 = vadd.f32 %v8542_v14, %v8541_v27 }
 0xa06   :  { %v8544_v57 = vpop.f32.mrf.mxu0 }
 0xa07   :  { %v7533_v48 = vadd.f32 %v8543_v11, %v11230_v50 }
 0xa08   :  { %v8545_v25 = vpop.f32.mrf.mxu0 }
 0xa09   :  { %7557 = vst [vmem:[%s11303_s7 + $0x68] sm:$0xff] %v7533_v48  ;;  %v8546_v30 = vadd.f32 %v8545_v25, %v8544_v57 }
 0xa0a   :  { %v8547_v34 = vpop.f32.mrf.mxu0 }
 0xa0b   :  { %v7538_v36 = vadd.f32 %v8546_v30, %v11230_v50 }
 0xa0c   :  { %v8548_v53 = vpop.f32.mrf.mxu0 }
 0xa0d   :  { %7558 = vst [vmem:[%s11303_s7 + $0x70] sm:$0xff] %v7538_v36  ;;  %v8549_v33 = vadd.f32 %v8548_v53, %v8547_v34 }
 0xa0f   :  { %v7541_v20 = vadd.f32 %v8549_v33, %v11230_v50 }
 0xa11   :  { %7559 = vst [vmem:[%s11303_s7 + $0x78] sm:$0xff] %v7541_v20 }
 0xa12   :  { %7564 = vsyncpa [#allocation5], 1 }
 0xa13   :  { %7565 = vsyncpa [#allocation7], 1 }
 0xa14   :  { %7566 = vsyncpa [#allocation10], 1 }

</bundles_post_ra>
